<compile_context>
chip_gen: v7x
topology: tpu7x:2x2x1
jax: 0.10.0
libtpu: 0.0.40
codegen_flags: <defaults>
</compile_context>

<pallas_src>
import functools

import jax
import jax.numpy as jnp
from jax.experimental import pallas as pl
from jax.experimental.pallas import tpu as pltpu

LN_EPS = 1e-5  # PyTorch nn.LayerNorm default


def _layernorm(x, g, b):
    mu = jnp.mean(x, axis=-1, keepdims=True)
    var = jnp.mean((x - mu) ** 2, axis=-1, keepdims=True)
    return (x - mu) * jax.lax.rsqrt(var + LN_EPS) * g + b


# ---------------------------------------------------------------------------
# Stage 1: geometry + MultipleInputEmbedding  ->  e (bf16, HBM), adjacency
# ---------------------------------------------------------------------------

def rel_embed_kernel(tgt_ref, src_ref,
                     rw_in_ref, rb_in_ref, rb_lng_ref, rb_lnb_ref,
                     rw_out0_ref, rw_out1_ref, rb_out_ref,
                     ra_lng_ref, ra_lnb_ref, ra_w_ref, ra_b_ref,
                     e_ref, adj_ref):
    i = pl.program_id(0)
    T = tgt_ref.shape[0]
    N = src_ref.shape[1]
    D = rw_in_ref.shape[1]

    tgt = tgt_ref[...]          # [T, 9]: px py r00 r01 r10 r11 cos sin valid
    src = src_ref[...]          # [5, N]: px py cos sin valid
    px_i, py_i = tgt[:, 0:1], tgt[:, 1:2]
    r00, r01 = tgt[:, 2:3], tgt[:, 3:4]
    r10, r11 = tgt[:, 4:5], tgt[:, 5:6]
    ci, si, val_i = tgt[:, 6:7], tgt[:, 7:8], tgt[:, 8:9]
    px_j, py_j = src[0:1, :], src[1:2, :]
    cj, sj, val_j = src[2:3, :], src[3:4, :], src[4:5, :]

    dx = px_j - px_i                      # positions[source] - positions[target]
    dy = py_j - py_i
    rx = dx * r00 + dy * r10              # rel_pos @ rotate_mat[target]
    ry = dx * r01 + dy * r11
    ct = cj * ci + sj * si                # cos(theta_src - theta_tgt)
    st = sj * ci - cj * si                # sin(theta_src - theta_tgt)

    rows = jax.lax.broadcasted_iota(jnp.int32, (T, N), 0) + i * T
    cols = jax.lax.broadcasted_iota(jnp.int32, (T, N), 1)
    adj_ref[...] = val_i * val_j * (rows != cols).astype(jnp.float32)

    def branch(u, v, k):
        # K=2 contraction as a VPU broadcast-FMA (no sliver MXU matmul).
        h = (u[:, :, None] * rw_in_ref[2 * k:2 * k + 1, :]
             + v[:, :, None] * rw_in_ref[2 * k + 1:2 * k + 2, :]
             + rb_in_ref[k:k + 1, :])
        h = _layernorm(h, rb_lng_ref[k:k + 1, :], rb_lnb_ref[k:k + 1, :])
        return jnp.maximum(h, 0.0).reshape(T * N, D).astype(jnp.bfloat16)

    hp = branch(rx, ry, 0)
    ha = branch(ct, st, 1)
    # No [E, 2D] concat: two bf16 [E,D]@[D,D] matmuls summed (f32 accumulation).
    s = (jnp.dot(hp, rw_out0_ref[...], preferred_element_type=jnp.float32)
         + jnp.dot(ha, rw_out1_ref[...], preferred_element_type=jnp.float32)
         + rb_out_ref[...])
    s = jnp.maximum(_layernorm(s, ra_lng_ref[0:1, :], ra_lnb_ref[0:1, :]), 0.0)
    s = jnp.dot(s.astype(jnp.bfloat16), ra_w_ref[...],
                preferred_element_type=jnp.float32) + ra_b_ref[...]
    e = _layernorm(s, ra_lng_ref[1:2, :], ra_lnb_ref[1:2, :])
    e_ref[...] = e.reshape(T, N, D).astype(jnp.bfloat16)


# ---------------------------------------------------------------------------
# Stage 2: GlobalInteractorLayer stack + final LayerNorm
# grid = (num_layers, num_target_tiles), sequential; x / norm1(x) / k,v carried
# in VMEM scratch, e + adjacency + one layer's weights streamed per step.
# ---------------------------------------------------------------------------

def layer_stack_kernel(x_in_ref, e_ref, adj_ref,
                       w_tgt_ref, b_tgt_ref, w_src_ref, b_src_ref,
                       w_edge_ref, b_edge_ref, w_ih_ref, b_ih_ref,
                       w_out_ref, b_out_ref, ln_g_ref, ln_b_ref,
                       w1_ref, b1_ref, w2_ref, b2_ref,
                       fn_g_ref, fn_b_ref,
                       out_ref,
                       x_cur_ref, x_next_ref, xn_ref, kv_ref,
                       *, num_heads):
    l = pl.program_id(0)
    i = pl.program_id(1)
    n_layers = pl.num_programs(0)
    n_tiles = pl.num_programs(1)

    T, N, D = e_ref.shape
    H = num_heads
    hd = D // H
    inv_scale = 1.0 / (float(hd) ** 0.5)

    lng = ln_g_ref[0]                       # [2, D]
    lnb = ln_b_ref[0]

    @pl.when(jnp.logical_and(l == 0, i == 0))
    def _():
        x_cur_ref[...] = x_in_ref[...]

    # Once per layer (tile 0): norm1(x) and source-side [k_node | v_node] for all nodes.
    @pl.when(i == 0)
    def _():
        xn_all = _layernorm(x_cur_ref[...], lng[0:1, :], lnb[0:1, :])
        xn_ref[...] = xn_all
        kv_ref[...] = (jnp.dot(xn_all, w_src_ref[0],
                               preferred_element_type=jnp.float32) + b_src_ref[0])

    row0 = pl.multiple_of(i * T, T)
    xn_t = xn_ref[pl.ds(row0, T), :]                                  # [T, D]

    # Fused target-side linear: [q | self | hh] (head-interleaved columns).
    nh = jnp.dot(xn_t, w_tgt_ref[0], preferred_element_type=jnp.float32) + b_tgt_ref[0]
    q = nh[:, 0:D] * inv_scale              # 1/sqrt(hd) folded into q once
    selfx = nh[:, D:2 * D]
    hhx = nh[:, 2 * D:3 * D]

    kv = kv_ref[...]
    kn, vn = kv[:, 0:D], kv[:, D:2 * D]                               # [N, D]

    # Fused edge-side linear (bf16 MXU operands): [k_edge | v_edge].
    e_t = e_ref[...]                                                  # [T, N, D] bf16
    eh = (jnp.dot(e_t.reshape(T * N, D), w_edge_ref[0],
                  preferred_element_type=jnp.float32) + b_edge_ref[0])
    ke = eh[:, 0:D].reshape(T, N, D)
    ve = eh[:, D:2 * D].reshape(T, N, D)

    # Per-head scores: head-interleaved layout -> sum of hd contiguous H-wide slices
    # (pure VPU; no [D,H] sliver MXU matmul, no 4-D reshapes).
    prod = q[:, None, :] * (kn[None, :, :] + ke)                      # [T, N, D]
    alpha = prod[:, :, 0:H]
    for k in range(1, hd):
        alpha = alpha + prod[:, :, k * H:(k + 1) * H]                 # [T, N, H]

    # Masked softmax over sources (matches PyG scatter-softmax per target node).
    mask = adj_ref[...][:, :, None] > 0.5                             # [T, N, 1]
    a_m = jnp.where(mask, alpha, jnp.float32(-1e30))
    m = jnp.max(a_m, axis=1, keepdims=True)
    p = jnp.exp(a_m - m) * mask.astype(jnp.float32)
    den = jnp.sum(p, axis=1, keepdims=True)
    attn = p * pl.reciprocal(jnp.where(den > 0, den, 1.0), approx=True)   # [T, N, H]

    # Broadcast each head's weight across its hd lanes via a lane concat (no [H,D] MXU).
    attn_d = jnp.concatenate([attn] * hd, axis=-1)                    # [T, N, D]
    inputs = jnp.sum((vn[None, :, :] + ve) * attn_d, axis=1)          # [T, D] scatter-add

    ih = jnp.dot(inputs, w_ih_ref[0], preferred_element_type=jnp.float32) + b_ih_ref[0]
    gate = jax.nn.sigmoid(ih + hhx)
    upd = inputs + gate * (selfx - inputs)

    x_t = x_cur_ref[pl.ds(row0, T), :]
    x_mid = x_t + jnp.dot(upd, w_out_ref[0], preferred_element_type=jnp.float32) + b_out_ref[0]

    xn2 = _layernorm(x_mid, lng[1:2, :], lnb[1:2, :])
    h1 = jnp.maximum(
        jnp.dot(xn2, w1_ref[0], preferred_element_type=jnp.float32) + b1_ref[0], 0.0)
    x_new = x_mid + jnp.dot(h1, w2_ref[0], preferred_element_type=jnp.float32) + b2_ref[0]

    x_next_ref[pl.ds(row0, T), :] = x_new

    # The output block for tile i is revisited at every layer; only the last write counts.
    out_ref[...] = jnp.where(l == n_layers - 1,
                             _layernorm(x_new, fn_g_ref[...], fn_b_ref[...]),
                             x_new)

    @pl.when(i == n_tiles - 1)
    def _():
        x_cur_ref[...] = x_next_ref[...]


# ---------------------------------------------------------------------------
# Parameter packing: module-like params -> kernel params
#   * per-layer weights stacked on a leading [L] axis (streamed one layer at a time)
#   * node-side linears fused: target [q|self|hh], source [k_node|v_node], edge [k_e|v_e]
#   * attention columns permuted to a head-interleaved layout; the inverse permutation
#     is folded into lin_ih / out_proj so the math is exact.
# ---------------------------------------------------------------------------

def pack_params(params, num_heads):
    rel = params["rel"]
    layers = params["layers"]
    D = rel["a_w"].shape[0]
    hd = D // num_heads
    bf = jnp.bfloat16

    # head-interleaved permutation: kernel lane d <- original feature (d % H)*hd + d//H
    d_idx = jnp.arange(D)
    perm = (d_idx % num_heads) * hd + d_idx // num_heads

    def wc(lp, k):      # permute output columns (head layout)
        return lp["w"][k][:, perm]

    def bc(lp, k):
        return lp["b"][k][perm]

    def stack_w(fn):
        return jnp.stack([fn(lp) for lp in layers])

    return dict(
        # rel_embed (MultipleInputEmbedding)
        rw_in=jnp.concatenate([rel["b_win"][0], rel["b_win"][1]], axis=0),      # [4, D]
        rb_in=rel["b_bin"],                                                     # [2, D]
        rb_lng=rel["b_lng"], rb_lnb=rel["b_lnb"],
        rw_out0=rel["b_wout"][0].astype(bf),
        rw_out1=rel["b_wout"][1].astype(bf),
        # valid because both branch outputs are summed before the aggregate LayerNorm
        rb_out=(rel["b_bout"][0] + rel["b_bout"][1]).reshape(1, D),
        ra_lng=rel["a_lng"], ra_lnb=rel["a_lnb"],
        ra_w=rel["a_w"].astype(bf), ra_b=rel["a_b"],
        # layer stack (indices: 0 q, 1 k_node, 2 k_edge, 3 v_node, 4 v_edge, 5 self,
        #                       6 ih, 7 hh, 8 out_proj)
        w_tgt=stack_w(lambda lp: jnp.concatenate([wc(lp, 0), wc(lp, 5), wc(lp, 7)], axis=1)),
        b_tgt=stack_w(lambda lp: jnp.concatenate([bc(lp, 0), bc(lp, 5), bc(lp, 7)])[None, :]),
        w_src=stack_w(lambda lp: jnp.concatenate([wc(lp, 1), wc(lp, 3)], axis=1)),
        b_src=stack_w(lambda lp: jnp.concatenate([bc(lp, 1), bc(lp, 3)])[None, :]),
        w_edge=stack_w(lambda lp: jnp.concatenate([wc(lp, 2), wc(lp, 4)], axis=1)).astype(bf),
        b_edge=stack_w(lambda lp: jnp.concatenate([bc(lp, 2), bc(lp, 4)])[None, :]),
        w_ih=stack_w(lambda lp: lp["w"][6][perm, :][:, perm]),
        b_ih=stack_w(lambda lp: lp["b"][6][perm][None, :]),
        w_out=stack_w(lambda lp: lp["w"][8][perm, :]),
        b_out=stack_w(lambda lp: lp["b"][8][None, :]),
        ln_g=jnp.stack([lp["lng"] for lp in layers]),
        ln_b=jnp.stack([lp["lnb"] for lp in layers]),
        w1=jnp.stack([lp["w1"] for lp in layers]),
        b1=jnp.stack([lp["b1"] for lp in layers]),
        w2=jnp.stack([lp["w2"] for lp in layers]),
        b2=jnp.stack([lp["b2"] for lp in layers]),
        fn_g=params["norm"]["g"], fn_b=params["norm"]["b"],
    )


def _vmem_budget(tile_n, n, d):
    # per-step working set: e tile (bf16, double-buffered) + a handful of f32
    # [tile_n, n, d] temporaries + one layer's weights + x / xn / kv scratch.
    est = (2 * tile_n * n * d * 2
           + 8 * tile_n * n * d * 4
           + 2 * (16 * d * d) * 4
           + 8 * n * d * 4)
    return int(min(max(2 * est, 16 << 20), 64 << 20))


# ---------------------------------------------------------------------------
# Forward: tiny O(N) prep in JAX, then the two tiled Pallas calls
# ---------------------------------------------------------------------------

def global_interactor_forward(kp, positions, rotate_mat, rotate_angles,
                              padding_mask, local_embed, *,
                              historical_steps, num_heads, tile_n=8):
    N, D = local_embed.shape
    L = kp["w_tgt"].shape[0]
    assert N % tile_n == 0
    n_tiles = N // tile_n

    t = historical_steps - 1
    valid = jnp.logical_not(padding_mask[:, t]).astype(jnp.float32)    # [N]
    pos_t = positions[:, t, :].astype(jnp.float32)                     # [N, 2]
    ca = jnp.cos(rotate_angles).astype(jnp.float32)
    sa = jnp.sin(rotate_angles).astype(jnp.float32)

    tgt = jnp.concatenate(
        [pos_t, rotate_mat.reshape(N, 4).astype(jnp.float32),
         ca[:, None], sa[:, None], valid[:, None]], axis=1)            # [N, 9]
    src = jnp.stack([pos_t[:, 0], pos_t[:, 1], ca, sa, valid], axis=0)  # [5, N]

    resident = pl.BlockSpec(memory_space=pltpu.MemorySpace.VMEM)
    vmem_bytes = _vmem_budget(tile_n, N, D)

    # ----- stage 1: geometry + rel_embed -> e (bf16, HBM), adjacency ---------
    rel_args = (tgt, src, kp["rw_in"], kp["rb_in"], kp["rb_lng"], kp["rb_lnb"],
                kp["rw_out0"], kp["rw_out1"], kp["rb_out"],
                kp["ra_lng"], kp["ra_lnb"], kp["ra_w"], kp["ra_b"])
    rel_in_specs = ([pl.BlockSpec((tile_n, 9), lambda i: (i, 0))]
                    + [resident] * (len(rel_args) - 1))
    rel_cost = pl.CostEstimate(
        flops=int(2 * N * N * 3 * D * D + 24 * N * N * D),
        transcendentals=int(4 * N * N),
        bytes_accessed=int(N * 9 * 4 + 5 * N * 4 + N * N * D * 2 + N * N * 4))
    e, adj = pl.pallas_call(
        rel_embed_kernel,
        grid=(n_tiles,),
        in_specs=rel_in_specs,
        out_specs=[pl.BlockSpec((tile_n, N, D), lambda i: (i, 0, 0)),
                   pl.BlockSpec((tile_n, N), lambda i: (i, 0))],
        out_shape=[jax.ShapeDtypeStruct((N, N, D), jnp.bfloat16),
                   jax.ShapeDtypeStruct((N, N), jnp.float32)],
        compiler_params=pltpu.CompilerParams(
            dimension_semantics=("parallel",),
            vmem_limit_bytes=vmem_bytes),
        cost_estimate=rel_cost,
    )(*rel_args)

    # ----- stage 2: layer stack + final norm ----------------------------------
    layer_args = (local_embed.astype(jnp.float32), e, adj,
                  kp["w_tgt"], kp["b_tgt"], kp["w_src"], kp["b_src"],
                  kp["w_edge"], kp["b_edge"], kp["w_ih"], kp["b_ih"],
                  kp["w_out"], kp["b_out"], kp["ln_g"], kp["ln_b"],
                  kp["w1"], kp["b1"], kp["w2"], kp["b2"],
                  kp["fn_g"], kp["fn_b"])

    def lspec(a):
        # one layer's worth of a stacked [L, ...] parameter per grid step
        nd = a.ndim
        return pl.BlockSpec((1,) + a.shape[1:], lambda l, i, _nd=nd: (l,) + (0,) * (_nd - 1))

    layer_in_specs = (
        [resident,                                                    # x_in
         pl.BlockSpec((tile_n, N, D), lambda l, i: (i, 0, 0)),        # e tile (bf16)
         pl.BlockSpec((tile_n, N), lambda l, i: (i, 0))]              # adjacency tile
        + [lspec(kp[name]) for name in
           ("w_tgt", "b_tgt", "w_src", "b_src", "w_edge", "b_edge",
            "w_ih", "b_ih", "w_out", "b_out", "ln_g", "ln_b",
            "w1", "b1", "w2", "b2")]
        + [resident, resident])                                       # fn_g, fn_b

    layer_cost = pl.CostEstimate(
        flops=int(L * (2 * N * N * D * 2 * D + 10 * N * N * D
                       + 2 * N * D * (5 * D + 9 * D))),
        transcendentals=int(L * N * N * num_heads),
        bytes_accessed=int(L * (N * N * D * 2 + N * N * 4) + 2 * N * D * 4),
    )

    out = pl.pallas_call(
        functools.partial(layer_stack_kernel, num_heads=num_heads),
        grid=(L, n_tiles),
        in_specs=layer_in_specs,
        out_specs=pl.BlockSpec((tile_n, D), lambda l, i: (i, 0)),
        out_shape=jax.ShapeDtypeStruct((N, D), jnp.float32),
        scratch_shapes=[pltpu.VMEM((N, D), jnp.float32),      # x (current layer input)
                        pltpu.VMEM((N, D), jnp.float32),      # x (next layer)
                        pltpu.VMEM((N, D), jnp.float32),      # norm1(x)
                        pltpu.VMEM((N, 2 * D), jnp.float32)],  # [k_node | v_node]
        compiler_params=pltpu.CompilerParams(
            dimension_semantics=("arbitrary", "arbitrary"),
            vmem_limit_bytes=vmem_bytes),
        cost_estimate=layer_cost,
    )(*layer_args)
    return out


# ---------------------------------------------------------------------------
# Pure-JAX reference (same math, f32, no Pallas) for a correctness check
# ---------------------------------------------------------------------------

def _ref_forward(params, positions, rotate_mat, rotate_angles, padding_mask,
                 local_embed, *, historical_steps, num_heads):
    N, D = local_embed.shape
    t = historical_steps - 1
    valid = jnp.logical_not(padding_mask[:, t])
    eye = jnp.eye(N, dtype=bool)
    adj = (valid[:, None] & valid[None, :] & jnp.logical_not(eye)).astype(jnp.float32)
    pos_t = positions[:, t, :]
    rel_pos = pos_t[None, :, :] - pos_t[:, None, :]
    rel_pos_rot = jnp.einsum("ijk,ikl->ijl", rel_pos, rotate_mat)
    rel_theta = rotate_angles[None, :] - rotate_angles[:, None]
    ang = jnp.stack([jnp.cos(rel_theta), jnp.sin(rel_theta)], axis=-1)
    E = N * N
    rp = rel_pos_rot.reshape(E, 2)
    an = ang.reshape(E, 2)

    rel = params["rel"]

    def branch(inp, k):
        w = rel["b_win"][k]
        h = inp[:, 0:1] * w[0] + inp[:, 1:2] * w[1] + rel["b_bin"][k]
        h = _layernorm(h, rel["b_lng"][k], rel["b_lnb"][k])
        h = jnp.maximum(h, 0.0)
        return h @ rel["b_wout"][k] + rel["b_bout"][k]

    s = branch(rp, 0) + branch(an, 1)
    s = _layernorm(s, rel["a_lng"][0], rel["a_lnb"][0])
    s = jnp.maximum(s, 0.0)
    s = s @ rel["a_w"] + rel["a_b"]
    e = _layernorm(s, rel["a_lng"][1], rel["a_lnb"][1])

    H = num_heads
    hd = D // H
    x = local_embed
    for lp in params["layers"]:
        xn = _layernorm(x, lp["lng"][0], lp["lnb"][0])

        def lin(inp, k):
            return inp @ lp["w"][k] + lp["b"][k]

        q = lin(xn, 0).reshape(N, H, hd)
        kn = lin(xn, 1).reshape(N, H, hd)
        ke = lin(e, 2).reshape(N, N, H, hd)
        vn = lin(xn, 3).reshape(N, H, hd)
        ve = lin(e, 4).reshape(N, N, H, hd)
        alpha = (q[:, None] * (kn[None] + ke)).sum(-1) / (hd ** 0.5)     # [N, N, H]
        mask = adj[:, :, None] > 0.5
        am = jnp.where(mask, alpha, -1e30)
        m = am.max(axis=1, keepdims=True)
        p = jnp.exp(am - m) * mask
        den = p.sum(axis=1, keepdims=True)
        attn = p / jnp.where(den > 0, den, 1.0)
        msg = (vn[None] + ve) * attn[..., None]
        inputs = msg.sum(axis=1).reshape(N, D)
        gate = jax.nn.sigmoid(lin(inputs, 6) + lin(xn, 7))
        upd = inputs + gate * (lin(xn, 5) - inputs)
        x = x + lin(upd, 8)
        xn2 = _layernorm(x, lp["lng"][1], lp["lnb"][1])
        ff = jnp.maximum(xn2 @ lp["w1"] + lp["b1"], 0.0) @ lp["w2"] + lp["b2"]
        x = x + ff
    return _layernorm(x, params["norm"]["g"], params["norm"]["b"])


# ---------------------------------------------------------------------------
# Deterministic parameter init (module-like layout)
# ---------------------------------------------------------------------------

def init_params(key, embed_dim, edge_dim, num_layers):
    D = embed_dim
    keys = iter(jax.random.split(key, 256))

    def lin_w(shape):
        fan_in = shape[0]
        return (jax.random.normal(next(keys), shape, jnp.float32)
                / jnp.sqrt(fan_in)).astype(jnp.float32)

    def lin_b(shape):
        return (jax.random.normal(next(keys), shape, jnp.float32) * 0.02).astype(jnp.float32)

    rel = dict(
        b_win=jnp.stack([lin_w((edge_dim, D)) for _ in range(2)]),   # [2, edge_dim, D]
        b_bin=jnp.stack([lin_b((D,)) for _ in range(2)]),            # [2, D]
        b_lng=jnp.ones((2, D), jnp.float32),
        b_lnb=jnp.zeros((2, D), jnp.float32),
        b_wout=jnp.stack([lin_w((D, D)) for _ in range(2)]),
        b_bout=jnp.stack([lin_b((D,)) for _ in range(2)]),
        a_lng=jnp.ones((2, D), jnp.float32),
        a_lnb=jnp.zeros((2, D), jnp.float32),
        a_w=lin_w((D, D)),
        a_b=lin_b((1, D)),
    )
    layers = []
    for _ in range(num_layers):
        layers.append(dict(
            w=jnp.stack([lin_w((D, D)) for _ in range(9)]),          # [9, D, D]
            b=jnp.stack([lin_b((D,)) for _ in range(9)]),            # [9, D]
            lng=jnp.ones((2, D), jnp.float32),
            lnb=jnp.zeros((2, D), jnp.float32),
            w1=lin_w((D, 4 * D)),
            b1=lin_b((1, 4 * D)),
            w2=lin_w((4 * D, D)),
            b2=lin_b((1, D)),
        ))
    norm = dict(g=jnp.ones((1, D), jnp.float32), b=jnp.zeros((1, D), jnp.float32))
    return dict(rel=rel, layers=layers, norm=norm)


# ---------------------------------------------------------------------------
# main
# ---------------------------------------------------------------------------

if __name__ == "__main__":
    historical_steps = 4
    embed_dim = 32
    edge_dim = 2
    num_heads = 8
    num_layers = 3
    N = 16               # number of agents (nodes) -> 2 target tiles of 8
    T = historical_steps

    root = jax.random.PRNGKey(0)
    k_par, k_pos, k_ang, k_emb = jax.random.split(root, 4)

    params = init_params(k_par, embed_dim, edge_dim, num_layers)
    kparams = pack_params(params, num_heads)

    positions = jax.random.normal(k_pos, (N, T, 2), jnp.float32) * 5.0
    rotate_angles = jax.random.uniform(k_ang, (N,), jnp.float32,
                                       minval=-jnp.pi, maxval=jnp.pi)
    cos, sin = jnp.cos(rotate_angles), jnp.sin(rotate_angles)
    rotate_mat = jnp.stack(
        [jnp.stack([cos, -sin], axis=-1), jnp.stack([sin, cos], axis=-1)], axis=-2)   # [N, 2, 2]
    local_embed = jax.random.normal(k_emb, (N, embed_dim), jnp.float32)

    padding_mask = jnp.zeros((N, T), dtype=bool)
    padding_mask = padding_mask.at[N - 1, :].set(True)          # last agent fully padded
    padding_mask = padding_mask.at[N - 2, T - 1].set(True)      # another padded at t = H-1

    fwd = jax.jit(functools.partial(global_interactor_forward,
                                    historical_steps=historical_steps,
                                    num_heads=num_heads,
                                    tile_n=8))
    out = jax.block_until_ready(
        fwd(kparams, positions, rotate_mat, rotate_angles, padding_mask, local_embed))

    with jax.default_matmul_precision("float32"):
        ref = jax.block_until_ready(_ref_forward(
            params, positions, rotate_mat, rotate_angles, padding_mask, local_embed,
            historical_steps=historical_steps, num_heads=num_heads))

    assert out.shape == (N, embed_dim)
    assert bool(jnp.all(jnp.isfinite(out)))
    # Tolerance accounts for bf16 MXU operands in the kernel vs the f32 reference.
    assert bool(jnp.allclose(out, ref, atol=5e-2, rtol=5e-2)), \
        "Pallas output mismatch vs JAX reference"

    print("KERNEL_OK")
</pallas_src>

<mosaic_0001>
module attributes {stable_mosaic.version = 11 : i64} {
  func.func @rel_embed_kernel(%arg0: i32, %arg1: memref<8x9xf32, #tpu.memory_space<vmem>>, %arg2: memref<5x16xf32, #tpu.memory_space<vmem>>, %arg3: memref<4x32xf32, #tpu.memory_space<vmem>>, %arg4: memref<2x32xf32, #tpu.memory_space<vmem>>, %arg5: memref<2x32xf32, #tpu.memory_space<vmem>>, %arg6: memref<2x32xf32, #tpu.memory_space<vmem>>, %arg7: memref<32x32xbf16, #tpu.memory_space<vmem>>, %arg8: memref<32x32xbf16, #tpu.memory_space<vmem>>, %arg9: memref<1x32xf32, #tpu.memory_space<vmem>>, %arg10: memref<2x32xf32, #tpu.memory_space<vmem>>, %arg11: memref<2x32xf32, #tpu.memory_space<vmem>>, %arg12: memref<32x32xbf16, #tpu.memory_space<vmem>>, %arg13: memref<1x32xf32, #tpu.memory_space<vmem>>, %arg14: memref<8x16x32xbf16, #tpu.memory_space<vmem>>, %arg15: memref<8x16xf32, #tpu.memory_space<vmem>>) attributes {dimension_semantics = [#tpu.dimension_semantics<parallel>], iteration_bounds = array<i64: 2>, scalar_prefetch = 0 : i64, scratch_operands = 0 : i64, tpu.core_type = #tpu.core_type<tc>, window_params = [{transform_indices = @transform_0, window_bounds = array<i64: 8, 9>}, {pipeline_mode = #tpu.pipeline_mode<synchronous>, transform_indices = @transform_1, window_bounds = array<i64: 5, 16>}, {pipeline_mode = #tpu.pipeline_mode<synchronous>, transform_indices = @transform_2, window_bounds = array<i64: 4, 32>}, {pipeline_mode = #tpu.pipeline_mode<synchronous>, transform_indices = @transform_3, window_bounds = array<i64: 2, 32>}, {pipeline_mode = #tpu.pipeline_mode<synchronous>, transform_indices = @transform_4, window_bounds = array<i64: 2, 32>}, {pipeline_mode = #tpu.pipeline_mode<synchronous>, transform_indices = @transform_5, window_bounds = array<i64: 2, 32>}, {pipeline_mode = #tpu.pipeline_mode<synchronous>, transform_indices = @transform_6, window_bounds = array<i64: 32, 32>}, {pipeline_mode = #tpu.pipeline_mode<synchronous>, transform_indices = @transform_7, window_bounds = array<i64: 32, 32>}, {pipeline_mode = #tpu.pipeline_mode<synchronous>, transform_indices = @transform_8, window_bounds = array<i64: 1, 32>}, {pipeline_mode = #tpu.pipeline_mode<synchronous>, transform_indices = @transform_9, window_bounds = array<i64: 2, 32>}, {pipeline_mode = #tpu.pipeline_mode<synchronous>, transform_indices = @transform_10, window_bounds = array<i64: 2, 32>}, {pipeline_mode = #tpu.pipeline_mode<synchronous>, transform_indices = @transform_11, window_bounds = array<i64: 32, 32>}, {pipeline_mode = #tpu.pipeline_mode<synchronous>, transform_indices = @transform_12, window_bounds = array<i64: 1, 32>}, {transform_indices = @transform_13, window_bounds = array<i64: 8, 16, 32>}, {transform_indices = @transform_14, window_bounds = array<i64: 8, 16>}]} {
    %c0 = arith.constant 0 : index
    %c0_0 = arith.constant 0 : index
    %0 = vector.load %arg1[%c0, %c0_0] : memref<8x9xf32, #tpu.memory_space<vmem>>, vector<8x9xf32>
    %c0_1 = arith.constant 0 : index
    %c0_2 = arith.constant 0 : index
    %1 = vector.load %arg2[%c0_1, %c0_2] : memref<5x16xf32, #tpu.memory_space<vmem>>, vector<5x16xf32>
    %2 = vector.extract_strided_slice %0 {offsets = [0, 0], sizes = [8, 1], strides = [1, 1]} : vector<8x9xf32> to vector<8x1xf32>
    %3 = vector.extract_strided_slice %0 {offsets = [0, 1], sizes = [8, 1], strides = [1, 1]} : vector<8x9xf32> to vector<8x1xf32>
    %4 = vector.extract_strided_slice %0 {offsets = [0, 2], sizes = [8, 1], strides = [1, 1]} : vector<8x9xf32> to vector<8x1xf32>
    %5 = vector.extract_strided_slice %0 {offsets = [0, 3], sizes = [8, 1], strides = [1, 1]} : vector<8x9xf32> to vector<8x1xf32>
    %6 = vector.extract_strided_slice %0 {offsets = [0, 4], sizes = [8, 1], strides = [1, 1]} : vector<8x9xf32> to vector<8x1xf32>
    %7 = vector.extract_strided_slice %0 {offsets = [0, 5], sizes = [8, 1], strides = [1, 1]} : vector<8x9xf32> to vector<8x1xf32>
    %8 = vector.extract_strided_slice %0 {offsets = [0, 6], sizes = [8, 1], strides = [1, 1]} : vector<8x9xf32> to vector<8x1xf32>
    %9 = vector.extract_strided_slice %0 {offsets = [0, 7], sizes = [8, 1], strides = [1, 1]} : vector<8x9xf32> to vector<8x1xf32>
    %10 = vector.extract_strided_slice %0 {offsets = [0, 8], sizes = [8, 1], strides = [1, 1]} : vector<8x9xf32> to vector<8x1xf32>
    %11 = vector.extract_strided_slice %1 {offsets = [0, 0], sizes = [1, 16], strides = [1, 1]} : vector<5x16xf32> to vector<1x16xf32>
    %12 = vector.extract_strided_slice %1 {offsets = [1, 0], sizes = [1, 16], strides = [1, 1]} : vector<5x16xf32> to vector<1x16xf32>
    %13 = vector.extract_strided_slice %1 {offsets = [2, 0], sizes = [1, 16], strides = [1, 1]} : vector<5x16xf32> to vector<1x16xf32>
    %14 = vector.extract_strided_slice %1 {offsets = [3, 0], sizes = [1, 16], strides = [1, 1]} : vector<5x16xf32> to vector<1x16xf32>
    %15 = vector.extract_strided_slice %1 {offsets = [4, 0], sizes = [1, 16], strides = [1, 1]} : vector<5x16xf32> to vector<1x16xf32>
    %16 = vector.broadcast %11 : vector<1x16xf32> to vector<8x16xf32>
    %17 = vector.broadcast %2 : vector<8x1xf32> to vector<8x16xf32>
    %18 = arith.subf %16, %17 : vector<8x16xf32>
    %19 = vector.broadcast %12 : vector<1x16xf32> to vector<8x16xf32>
    %20 = vector.broadcast %3 : vector<8x1xf32> to vector<8x16xf32>
    %21 = arith.subf %19, %20 : vector<8x16xf32>
    %22 = vector.broadcast %4 : vector<8x1xf32> to vector<8x16xf32>
    %23 = arith.mulf %18, %22 : vector<8x16xf32>
    %24 = vector.broadcast %6 : vector<8x1xf32> to vector<8x16xf32>
    %25 = arith.mulf %21, %24 : vector<8x16xf32>
    %26 = arith.addf %23, %25 : vector<8x16xf32>
    %27 = vector.broadcast %5 : vector<8x1xf32> to vector<8x16xf32>
    %28 = arith.mulf %18, %27 : vector<8x16xf32>
    %29 = vector.broadcast %7 : vector<8x1xf32> to vector<8x16xf32>
    %30 = arith.mulf %21, %29 : vector<8x16xf32>
    %31 = arith.addf %28, %30 : vector<8x16xf32>
    %32 = vector.broadcast %13 : vector<1x16xf32> to vector<8x16xf32>
    %33 = vector.broadcast %8 : vector<8x1xf32> to vector<8x16xf32>
    %34 = arith.mulf %32, %33 : vector<8x16xf32>
    %35 = vector.broadcast %14 : vector<1x16xf32> to vector<8x16xf32>
    %36 = vector.broadcast %9 : vector<8x1xf32> to vector<8x16xf32>
    %37 = arith.mulf %35, %36 : vector<8x16xf32>
    %38 = arith.addf %34, %37 : vector<8x16xf32>
    %39 = vector.broadcast %14 : vector<1x16xf32> to vector<8x16xf32>
    %40 = vector.broadcast %8 : vector<8x1xf32> to vector<8x16xf32>
    %41 = arith.mulf %39, %40 : vector<8x16xf32>
    %42 = vector.broadcast %13 : vector<1x16xf32> to vector<8x16xf32>
    %43 = vector.broadcast %9 : vector<8x1xf32> to vector<8x16xf32>
    %44 = arith.mulf %42, %43 : vector<8x16xf32>
    %45 = arith.subf %41, %44 : vector<8x16xf32>
    %46 = tpu.iota {dimensions = array<i32: 0>} : vector<8x16xi32>
    %c8_i32 = arith.constant 8 : i32
    %47 = arith.muli %arg0, %c8_i32 : i32
    %48 = vector.broadcast %47 : i32 to vector<8x16xi32>
    %49 = arith.addi %46, %48 : vector<8x16xi32>
    %50 = tpu.iota {dimensions = array<i32: 1>} : vector<8x16xi32>
    %51 = vector.broadcast %10 : vector<8x1xf32> to vector<8x16xf32>
    %52 = vector.broadcast %15 : vector<1x16xf32> to vector<8x16xf32>
    %53 = arith.mulf %51, %52 : vector<8x16xf32>
    %54 = arith.cmpi ne, %49, %50 : vector<8x16xi32>
    %55 = arith.extui %54 : vector<8x16xi1> to vector<8x16xi32>
    %56 = arith.sitofp %55 : vector<8x16xi32> to vector<8x16xf32>
    %57 = arith.mulf %53, %56 : vector<8x16xf32>
    %c0_3 = arith.constant 0 : index
    %c0_4 = arith.constant 0 : index
    %58 = vector.load %arg15[%c0_3, %c0_4] : memref<8x16xf32, #tpu.memory_space<vmem>>, vector<8x16xf32>
    tpu.vector_store %arg15[%c0_3, %c0_4], %57 {strides = array<i32>} : memref<8x16xf32, #tpu.memory_space<vmem>>, vector<8x16xf32>,
    %59 = vector.shape_cast %26 : vector<8x16xf32> to vector<8x16x1xf32>
    %c0_5 = arith.constant 0 : index
    %c0_6 = arith.constant 0 : index
    %60 = vector.load %arg3[%c0_5, %c0_6] : memref<4x32xf32, #tpu.memory_space<vmem>>, vector<1x32xf32>
    %61 = vector.shape_cast %60 : vector<1x32xf32> to vector<1x1x32xf32>
    %62 = vector.broadcast %59 : vector<8x16x1xf32> to vector<8x16x32xf32>
    %63 = vector.broadcast %61 : vector<1x1x32xf32> to vector<8x16x32xf32>
    %64 = arith.mulf %62, %63 : vector<8x16x32xf32>
    %65 = vector.shape_cast %31 : vector<8x16xf32> to vector<8x16x1xf32>
    %c1 = arith.constant 1 : index
    %c0_7 = arith.constant 0 : index
    %66 = vector.load %arg3[%c1, %c0_7] : memref<4x32xf32, #tpu.memory_space<vmem>>, vector<1x32xf32>
    %67 = vector.shape_cast %66 : vector<1x32xf32> to vector<1x1x32xf32>
    %68 = vector.broadcast %65 : vector<8x16x1xf32> to vector<8x16x32xf32>
    %69 = vector.broadcast %67 : vector<1x1x32xf32> to vector<8x16x32xf32>
    %70 = arith.mulf %68, %69 : vector<8x16x32xf32>
    %71 = arith.addf %64, %70 : vector<8x16x32xf32>
    %c0_8 = arith.constant 0 : index
    %c0_9 = arith.constant 0 : index
    %72 = vector.load %arg4[%c0_8, %c0_9] : memref<2x32xf32, #tpu.memory_space<vmem>>, vector<1x32xf32>
    %73 = vector.shape_cast %72 : vector<1x32xf32> to vector<1x1x32xf32>
    %74 = vector.broadcast %73 : vector<1x1x32xf32> to vector<8x16x32xf32>
    %75 = arith.addf %71, %74 : vector<8x16x32xf32>
    %c0_10 = arith.constant 0 : index
    %c0_11 = arith.constant 0 : index
    %76 = vector.load %arg5[%c0_10, %c0_11] : memref<2x32xf32, #tpu.memory_space<vmem>>, vector<1x32xf32>
    %c0_12 = arith.constant 0 : index
    %c0_13 = arith.constant 0 : index
    %77 = vector.load %arg6[%c0_12, %c0_13] : memref<2x32xf32, #tpu.memory_space<vmem>>, vector<1x32xf32>
    %cst = arith.constant dense<0.000000e+00> : vector<8x16xf32>
    %78 = vector.multi_reduction <add>, %75, %cst [2] : vector<8x16x32xf32> to vector<8x16xf32>
    %79 = vector.shape_cast %78 : vector<8x16xf32> to vector<8x16x1xf32>
    %cst_14 = arith.constant 3.200000e+01 : f32
    %80 = vector.broadcast %cst_14 : f32 to vector<8x16x1xf32>
    %81 = arith.divf %79, %80 : vector<8x16x1xf32>
    %82 = vector.broadcast %81 : vector<8x16x1xf32> to vector<8x16x32xf32>
    %83 = arith.subf %75, %82 : vector<8x16x32xf32>
    %84 = arith.mulf %83, %83 : vector<8x16x32xf32>
    %cst_15 = arith.constant dense<0.000000e+00> : vector<8x16xf32>
    %85 = vector.multi_reduction <add>, %84, %cst_15 [2] : vector<8x16x32xf32> to vector<8x16xf32>
    %86 = vector.shape_cast %85 : vector<8x16xf32> to vector<8x16x1xf32>
    %cst_16 = arith.constant 3.200000e+01 : f32
    %87 = vector.broadcast %cst_16 : f32 to vector<8x16x1xf32>
    %88 = arith.divf %86, %87 : vector<8x16x1xf32>
    %89 = vector.broadcast %81 : vector<8x16x1xf32> to vector<8x16x32xf32>
    %90 = arith.subf %75, %89 : vector<8x16x32xf32>
    %cst_17 = arith.constant 9.99999974E-6 : f32
    %91 = vector.broadcast %cst_17 : f32 to vector<8x16x1xf32>
    %92 = arith.addf %88, %91 : vector<8x16x1xf32>
    %93 = math.rsqrt %92 : vector<8x16x1xf32>
    %94 = vector.broadcast %93 : vector<8x16x1xf32> to vector<8x16x32xf32>
    %95 = arith.mulf %90, %94 : vector<8x16x32xf32>
    %96 = vector.shape_cast %76 : vector<1x32xf32> to vector<1x1x32xf32>
    %97 = vector.broadcast %96 : vector<1x1x32xf32> to vector<8x16x32xf32>
    %98 = arith.mulf %95, %97 : vector<8x16x32xf32>
    %99 = vector.shape_cast %77 : vector<1x32xf32> to vector<1x1x32xf32>
    %100 = vector.broadcast %99 : vector<1x1x32xf32> to vector<8x16x32xf32>
    %101 = arith.addf %98, %100 : vector<8x16x32xf32>
    %cst_18 = arith.constant 0.000000e+00 : f32
    %102 = vector.broadcast %cst_18 : f32 to vector<8x16x32xf32>
    %103 = arith.maximumf %101, %102 : vector<8x16x32xf32>
    %104 = vector.shape_cast %103 : vector<8x16x32xf32> to vector<128x32xf32>
    %105 = arith.truncf %104 : vector<128x32xf32> to vector<128x32xbf16>
    %106 = vector.shape_cast %38 : vector<8x16xf32> to vector<8x16x1xf32>
    %c2 = arith.constant 2 : index
    %c0_19 = arith.constant 0 : index
    %107 = vector.load %arg3[%c2, %c0_19] : memref<4x32xf32, #tpu.memory_space<vmem>>, vector<1x32xf32>
    %108 = vector.shape_cast %107 : vector<1x32xf32> to vector<1x1x32xf32>
    %109 = vector.broadcast %106 : vector<8x16x1xf32> to vector<8x16x32xf32>
    %110 = vector.broadcast %108 : vector<1x1x32xf32> to vector<8x16x32xf32>
    %111 = arith.mulf %109, %110 : vector<8x16x32xf32>
    %112 = vector.shape_cast %45 : vector<8x16xf32> to vector<8x16x1xf32>
    %c3 = arith.constant 3 : index
    %c0_20 = arith.constant 0 : index
    %113 = vector.load %arg3[%c3, %c0_20] : memref<4x32xf32, #tpu.memory_space<vmem>>, vector<1x32xf32>
    %114 = vector.shape_cast %113 : vector<1x32xf32> to vector<1x1x32xf32>
    %115 = vector.broadcast %112 : vector<8x16x1xf32> to vector<8x16x32xf32>
    %116 = vector.broadcast %114 : vector<1x1x32xf32> to vector<8x16x32xf32>
    %117 = arith.mulf %115, %116 : vector<8x16x32xf32>
    %118 = arith.addf %111, %117 : vector<8x16x32xf32>
    %c1_21 = arith.constant 1 : index
    %c0_22 = arith.constant 0 : index
    %119 = vector.load %arg4[%c1_21, %c0_22] : memref<2x32xf32, #tpu.memory_space<vmem>>, vector<1x32xf32>
    %120 = vector.shape_cast %119 : vector<1x32xf32> to vector<1x1x32xf32>
    %121 = vector.broadcast %120 : vector<1x1x32xf32> to vector<8x16x32xf32>
    %122 = arith.addf %118, %121 : vector<8x16x32xf32>
    %c1_23 = arith.constant 1 : index
    %c0_24 = arith.constant 0 : index
    %123 = vector.load %arg5[%c1_23, %c0_24] : memref<2x32xf32, #tpu.memory_space<vmem>>, vector<1x32xf32>
    %c1_25 = arith.constant 1 : index
    %c0_26 = arith.constant 0 : index
    %124 = vector.load %arg6[%c1_25, %c0_26] : memref<2x32xf32, #tpu.memory_space<vmem>>, vector<1x32xf32>
    %cst_27 = arith.constant dense<0.000000e+00> : vector<8x16xf32>
    %125 = vector.multi_reduction <add>, %122, %cst_27 [2] : vector<8x16x32xf32> to vector<8x16xf32>
    %126 = vector.shape_cast %125 : vector<8x16xf32> to vector<8x16x1xf32>
    %cst_28 = arith.constant 3.200000e+01 : f32
    %127 = vector.broadcast %cst_28 : f32 to vector<8x16x1xf32>
    %128 = arith.divf %126, %127 : vector<8x16x1xf32>
    %129 = vector.broadcast %128 : vector<8x16x1xf32> to vector<8x16x32xf32>
    %130 = arith.subf %122, %129 : vector<8x16x32xf32>
    %131 = arith.mulf %130, %130 : vector<8x16x32xf32>
    %cst_29 = arith.constant dense<0.000000e+00> : vector<8x16xf32>
    %132 = vector.multi_reduction <add>, %131, %cst_29 [2] : vector<8x16x32xf32> to vector<8x16xf32>
    %133 = vector.shape_cast %132 : vector<8x16xf32> to vector<8x16x1xf32>
    %cst_30 = arith.constant 3.200000e+01 : f32
    %134 = vector.broadcast %cst_30 : f32 to vector<8x16x1xf32>
    %135 = arith.divf %133, %134 : vector<8x16x1xf32>
    %136 = vector.broadcast %128 : vector<8x16x1xf32> to vector<8x16x32xf32>
    %137 = arith.subf %122, %136 : vector<8x16x32xf32>
    %cst_31 = arith.constant 9.99999974E-6 : f32
    %138 = vector.broadcast %cst_31 : f32 to vector<8x16x1xf32>
    %139 = arith.addf %135, %138 : vector<8x16x1xf32>
    %140 = math.rsqrt %139 : vector<8x16x1xf32>
    %141 = vector.broadcast %140 : vector<8x16x1xf32> to vector<8x16x32xf32>
    %142 = arith.mulf %137, %141 : vector<8x16x32xf32>
    %143 = vector.shape_cast %123 : vector<1x32xf32> to vector<1x1x32xf32>
    %144 = vector.broadcast %143 : vector<1x1x32xf32> to vector<8x16x32xf32>
    %145 = arith.mulf %142, %144 : vector<8x16x32xf32>
    %146 = vector.shape_cast %124 : vector<1x32xf32> to vector<1x1x32xf32>
    %147 = vector.broadcast %146 : vector<1x1x32xf32> to vector<8x16x32xf32>
    %148 = arith.addf %145, %147 : vector<8x16x32xf32>
    %cst_32 = arith.constant 0.000000e+00 : f32
    %149 = vector.broadcast %cst_32 : f32 to vector<8x16x32xf32>
    %150 = arith.maximumf %148, %149 : vector<8x16x32xf32>
    %151 = vector.shape_cast %150 : vector<8x16x32xf32> to vector<128x32xf32>
    %152 = arith.truncf %151 : vector<128x32xf32> to vector<128x32xbf16>
    %c0_33 = arith.constant 0 : index
    %c0_34 = arith.constant 0 : index
    %153 = vector.load %arg7[%c0_33, %c0_34] : memref<32x32xbf16, #tpu.memory_space<vmem>>, vector<32x32xbf16>
    %cst_35 = arith.constant dense<0.000000e+00> : vector<128x32xf32>
    %154 = tpu.matmul %105, %153, %cst_35 {dimension_numbers = #tpu.dot_dimension_numbers<[1], [0], [0], [1], [0, 0, 1, 1], [], []>} : vector<128x32xbf16>, vector<32x32xbf16>, vector<128x32xf32> -> vector<128x32xf32>
    %c0_36 = arith.constant 0 : index
    %c0_37 = arith.constant 0 : index
    %155 = vector.load %arg8[%c0_36, %c0_37] : memref<32x32xbf16, #tpu.memory_space<vmem>>, vector<32x32xbf16>
    %cst_38 = arith.constant dense<0.000000e+00> : vector<128x32xf32>
    %156 = tpu.matmul %152, %155, %cst_38 {dimension_numbers = #tpu.dot_dimension_numbers<[1], [0], [0], [1], [0, 0, 1, 1], [], []>} : vector<128x32xbf16>, vector<32x32xbf16>, vector<128x32xf32> -> vector<128x32xf32>
    %157 = arith.addf %154, %156 : vector<128x32xf32>
    %c0_39 = arith.constant 0 : index
    %c0_40 = arith.constant 0 : index
    %158 = vector.load %arg9[%c0_39, %c0_40] : memref<1x32xf32, #tpu.memory_space<vmem>>, vector<1x32xf32>
    %159 = vector.broadcast %158 : vector<1x32xf32> to vector<128x32xf32>
    %160 = arith.addf %157, %159 : vector<128x32xf32>
    %c0_41 = arith.constant 0 : index
    %c0_42 = arith.constant 0 : index
    %161 = vector.load %arg10[%c0_41, %c0_42] : memref<2x32xf32, #tpu.memory_space<vmem>>, vector<1x32xf32>
    %c0_43 = arith.constant 0 : index
    %c0_44 = arith.constant 0 : index
    %162 = vector.load %arg11[%c0_43, %c0_44] : memref<2x32xf32, #tpu.memory_space<vmem>>, vector<1x32xf32>
    %cst_45 = arith.constant dense<0.000000e+00> : vector<128xf32>
    %163 = vector.multi_reduction <add>, %160, %cst_45 [1] : vector<128x32xf32> to vector<128xf32>
    %164 = vector.shape_cast %163 : vector<128xf32> to vector<128x1xf32>
    %cst_46 = arith.constant 3.200000e+01 : f32
    %165 = vector.broadcast %cst_46 : f32 to vector<128x1xf32>
    %166 = arith.divf %164, %165 : vector<128x1xf32>
    %167 = vector.broadcast %166 : vector<128x1xf32> to vector<128x32xf32>
    %168 = arith.subf %160, %167 : vector<128x32xf32>
    %169 = arith.mulf %168, %168 : vector<128x32xf32>
    %cst_47 = arith.constant dense<0.000000e+00> : vector<128xf32>
    %170 = vector.multi_reduction <add>, %169, %cst_47 [1] : vector<128x32xf32> to vector<128xf32>
    %171 = vector.shape_cast %170 : vector<128xf32> to vector<128x1xf32>
    %cst_48 = arith.constant 3.200000e+01 : f32
    %172 = vector.broadcast %cst_48 : f32 to vector<128x1xf32>
    %173 = arith.divf %171, %172 : vector<128x1xf32>
    %174 = vector.broadcast %166 : vector<128x1xf32> to vector<128x32xf32>
    %175 = arith.subf %160, %174 : vector<128x32xf32>
    %cst_49 = arith.constant 9.99999974E-6 : f32
    %176 = vector.broadcast %cst_49 : f32 to vector<128x1xf32>
    %177 = arith.addf %173, %176 : vector<128x1xf32>
    %178 = math.rsqrt %177 : vector<128x1xf32>
    %179 = vector.broadcast %178 : vector<128x1xf32> to vector<128x32xf32>
    %180 = arith.mulf %175, %179 : vector<128x32xf32>
    %181 = vector.broadcast %161 : vector<1x32xf32> to vector<128x32xf32>
    %182 = arith.mulf %180, %181 : vector<128x32xf32>
    %183 = vector.broadcast %162 : vector<1x32xf32> to vector<128x32xf32>
    %184 = arith.addf %182, %183 : vector<128x32xf32>
    %cst_50 = arith.constant 0.000000e+00 : f32
    %185 = vector.broadcast %cst_50 : f32 to vector<128x32xf32>
    %186 = arith.maximumf %184, %185 : vector<128x32xf32>
    %187 = arith.truncf %186 : vector<128x32xf32> to vector<128x32xbf16>
    %c0_51 = arith.constant 0 : index
    %c0_52 = arith.constant 0 : index
    %188 = vector.load %arg12[%c0_51, %c0_52] : memref<32x32xbf16, #tpu.memory_space<vmem>>, vector<32x32xbf16>
    %cst_53 = arith.constant dense<0.000000e+00> : vector<128x32xf32>
    %189 = tpu.matmul %187, %188, %cst_53 {dimension_numbers = #tpu.dot_dimension_numbers<[1], [0], [0], [1], [0, 0, 1, 1], [], []>} : vector<128x32xbf16>, vector<32x32xbf16>, vector<128x32xf32> -> vector<128x32xf32>
    %c0_54 = arith.constant 0 : index
    %c0_55 = arith.constant 0 : index
    %190 = vector.load %arg13[%c0_54, %c0_55] : memref<1x32xf32, #tpu.memory_space<vmem>>, vector<1x32xf32>
    %191 = vector.broadcast %190 : vector<1x32xf32> to vector<128x32xf32>
    %192 = arith.addf %189, %191 : vector<128x32xf32>
    %c1_56 = arith.constant 1 : index
    %c0_57 = arith.constant 0 : index
    %193 = vector.load %arg10[%c1_56, %c0_57] : memref<2x32xf32, #tpu.memory_space<vmem>>, vector<1x32xf32>
    %c1_58 = arith.constant 1 : index
    %c0_59 = arith.constant 0 : index
    %194 = vector.load %arg11[%c1_58, %c0_59] : memref<2x32xf32, #tpu.memory_space<vmem>>, vector<1x32xf32>
    %cst_60 = arith.constant dense<0.000000e+00> : vector<128xf32>
    %195 = vector.multi_reduction <add>, %192, %cst_60 [1] : vector<128x32xf32> to vector<128xf32>
    %196 = vector.shape_cast %195 : vector<128xf32> to vector<128x1xf32>
    %cst_61 = arith.constant 3.200000e+01 : f32
    %197 = vector.broadcast %cst_61 : f32 to vector<128x1xf32>
    %198 = arith.divf %196, %197 : vector<128x1xf32>
    %199 = vector.broadcast %198 : vector<128x1xf32> to vector<128x32xf32>
    %200 = arith.subf %192, %199 : vector<128x32xf32>
    %201 = arith.mulf %200, %200 : vector<128x32xf32>
    %cst_62 = arith.constant dense<0.000000e+00> : vector<128xf32>
    %202 = vector.multi_reduction <add>, %201, %cst_62 [1] : vector<128x32xf32> to vector<128xf32>
    %203 = vector.shape_cast %202 : vector<128xf32> to vector<128x1xf32>
    %cst_63 = arith.constant 3.200000e+01 : f32
    %204 = vector.broadcast %cst_63 : f32 to vector<128x1xf32>
    %205 = arith.divf %203, %204 : vector<128x1xf32>
    %206 = vector.broadcast %198 : vector<128x1xf32> to vector<128x32xf32>
    %207 = arith.subf %192, %206 : vector<128x32xf32>
    %cst_64 = arith.constant 9.99999974E-6 : f32
    %208 = vector.broadcast %cst_64 : f32 to vector<128x1xf32>
    %209 = arith.addf %205, %208 : vector<128x1xf32>
    %210 = math.rsqrt %209 : vector<128x1xf32>
    %211 = vector.broadcast %210 : vector<128x1xf32> to vector<128x32xf32>
    %212 = arith.mulf %207, %211 : vector<128x32xf32>
    %213 = vector.broadcast %193 : vector<1x32xf32> to vector<128x32xf32>
    %214 = arith.mulf %212, %213 : vector<128x32xf32>
    %215 = vector.broadcast %194 : vector<1x32xf32> to vector<128x32xf32>
    %216 = arith.addf %214, %215 : vector<128x32xf32>
    %217 = vector.shape_cast %216 : vector<128x32xf32> to vector<8x16x32xf32>
    %218 = arith.truncf %217 : vector<8x16x32xf32> to vector<8x16x32xbf16>
    %c0_65 = arith.constant 0 : index
    %c0_66 = arith.constant 0 : index
    %c0_67 = arith.constant 0 : index
    %219 = vector.load %arg14[%c0_65, %c0_66, %c0_67] : memref<8x16x32xbf16, #tpu.memory_space<vmem>>, vector<8x16x32xbf16>
    tpu.vector_store %arg14[%c0_65, %c0_66, %c0_67], %218 {strides = array<i32>} : memref<8x16x32xbf16, #tpu.memory_space<vmem>>, vector<8x16x32xbf16>,
    return
  }
  func.func @transform_0(%arg0: i32) -> (i32, i32) {
    %c0_i32 = arith.constant 0 : i32
    %c0_i32_0 = arith.constant 0 : i32
    return %arg0, %c0_i32 : i32, i32
  }
  func.func @transform_1(%arg0: i32) -> (i32, i32) {
    %c0_i32 = arith.constant 0 : i32
    %c0_i32_0 = arith.constant 0 : i32
    %c0_i32_1 = arith.constant 0 : i32
    return %c0_i32, %c0_i32_0 : i32, i32
  }
  func.func @transform_2(%arg0: i32) -> (i32, i32) {
    %c0_i32 = arith.constant 0 : i32
    %c0_i32_0 = arith.constant 0 : i32
    %c0_i32_1 = arith.constant 0 : i32
    return %c0_i32, %c0_i32_0 : i32, i32
  }
  func.func @transform_3(%arg0: i32) -> (i32, i32) {
    %c0_i32 = arith.constant 0 : i32
    %c0_i32_0 = arith.constant 0 : i32
    %c0_i32_1 = arith.constant 0 : i32
    return %c0_i32, %c0_i32_0 : i32, i32
  }
  func.func @transform_4(%arg0: i32) -> (i32, i32) {
    %c0_i32 = arith.constant 0 : i32
    %c0_i32_0 = arith.constant 0 : i32
    %c0_i32_1 = arith.constant 0 : i32
    return %c0_i32, %c0_i32_0 : i32, i32
  }
  func.func @transform_5(%arg0: i32) -> (i32, i32) {
    %c0_i32 = arith.constant 0 : i32
    %c0_i32_0 = arith.constant 0 : i32
    %c0_i32_1 = arith.constant 0 : i32
    return %c0_i32, %c0_i32_0 : i32, i32
  }
  func.func @transform_6(%arg0: i32) -> (i32, i32) {
    %c0_i32 = arith.constant 0 : i32
    %c0_i32_0 = arith.constant 0 : i32
    %c0_i32_1 = arith.constant 0 : i32
    return %c0_i32, %c0_i32_0 : i32, i32
  }
  func.func @transform_7(%arg0: i32) -> (i32, i32) {
    %c0_i32 = arith.constant 0 : i32
    %c0_i32_0 = arith.constant 0 : i32
    %c0_i32_1 = arith.constant 0 : i32
    return %c0_i32, %c0_i32_0 : i32, i32
  }
  func.func @transform_8(%arg0: i32) -> (i32, i32) {
    %c0_i32 = arith.constant 0 : i32
    %c0_i32_0 = arith.constant 0 : i32
    %c0_i32_1 = arith.constant 0 : i32
    return %c0_i32, %c0_i32_0 : i32, i32
  }
  func.func @transform_9(%arg0: i32) -> (i32, i32) {
    %c0_i32 = arith.constant 0 : i32
    %c0_i32_0 = arith.constant 0 : i32
    %c0_i32_1 = arith.constant 0 : i32
    return %c0_i32, %c0_i32_0 : i32, i32
  }
  func.func @transform_10(%arg0: i32) -> (i32, i32) {
    %c0_i32 = arith.constant 0 : i32
    %c0_i32_0 = arith.constant 0 : i32
    %c0_i32_1 = arith.constant 0 : i32
    return %c0_i32, %c0_i32_0 : i32, i32
  }
  func.func @transform_11(%arg0: i32) -> (i32, i32) {
    %c0_i32 = arith.constant 0 : i32
    %c0_i32_0 = arith.constant 0 : i32
    %c0_i32_1 = arith.constant 0 : i32
    return %c0_i32, %c0_i32_0 : i32, i32
  }
  func.func @transform_12(%arg0: i32) -> (i32, i32) {
    %c0_i32 = arith.constant 0 : i32
    %c0_i32_0 = arith.constant 0 : i32
    %c0_i32_1 = arith.constant 0 : i32
    return %c0_i32, %c0_i32_0 : i32, i32
  }
  func.func @transform_13(%arg0: i32) -> (i32, i32, i32) {
    %c0_i32 = arith.constant 0 : i32
    %c0_i32_0 = arith.constant 0 : i32
    %c0_i32_1 = arith.constant 0 : i32
    return %arg0, %c0_i32, %c0_i32_0 : i32, i32, i32
  }
  func.func @transform_14(%arg0: i32) -> (i32, i32) {
    %c0_i32 = arith.constant 0 : i32
    %c0_i32_0 = arith.constant 0 : i32
    return %arg0, %c0_i32 : i32, i32
  }
}

module attributes {stable_mosaic.version = 11 : i64} {
  func.func @layer_stack_kernel(%arg0: i32, %arg1: i32, %arg2: memref<16x32xf32, #tpu.memory_space<vmem>>, %arg3: memref<8x16x32xbf16, #tpu.memory_space<vmem>>, %arg4: memref<8x16xf32, #tpu.memory_space<vmem>>, %arg5: memref<1x32x96xf32, #tpu.memory_space<vmem>>, %arg6: memref<1x1x96xf32, #tpu.memory_space<vmem>>, %arg7: memref<1x32x64xf32, #tpu.memory_space<vmem>>, %arg8: memref<1x1x64xf32, #tpu.memory_space<vmem>>, %arg9: memref<1x32x64xbf16, #tpu.memory_space<vmem>>, %arg10: memref<1x1x64xf32, #tpu.memory_space<vmem>>, %arg11: memref<1x32x32xf32, #tpu.memory_space<vmem>>, %arg12: memref<1x1x32xf32, #tpu.memory_space<vmem>>, %arg13: memref<1x32x32xf32, #tpu.memory_space<vmem>>, %arg14: memref<1x1x32xf32, #tpu.memory_space<vmem>>, %arg15: memref<1x2x32xf32, #tpu.memory_space<vmem>>, %arg16: memref<1x2x32xf32, #tpu.memory_space<vmem>>, %arg17: memref<1x32x128xf32, #tpu.memory_space<vmem>>, %arg18: memref<1x1x128xf32, #tpu.memory_space<vmem>>, %arg19: memref<1x128x32xf32, #tpu.memory_space<vmem>>, %arg20: memref<1x1x32xf32, #tpu.memory_space<vmem>>, %arg21: memref<1x32xf32, #tpu.memory_space<vmem>>, %arg22: memref<1x32xf32, #tpu.memory_space<vmem>>, %arg23: memref<8x32xf32, #tpu.memory_space<vmem>>, %arg24: memref<16x32xf32, #tpu.memory_space<vmem>>, %arg25: memref<16x32xf32, #tpu.memory_space<vmem>>, %arg26: memref<16x32xf32, #tpu.memory_space<vmem>>, %arg27: memref<16x64xf32, #tpu.memory_space<vmem>>) attributes {dimension_semantics = [#tpu.dimension_semantics<arbitrary>, #tpu.dimension_semantics<arbitrary>], iteration_bounds = array<i64: 3, 2>, scalar_prefetch = 0 : i64, scratch_operands = 4 : i64, tpu.core_type = #tpu.core_type<tc>, window_params = [{pipeline_mode = #tpu.pipeline_mode<synchronous>, transform_indices = @transform_0, window_bounds = array<i64: 16, 32>}, {transform_indices = @transform_1, window_bounds = array<i64: 8, 16, 32>}, {transform_indices = @transform_2, window_bounds = array<i64: 8, 16>}, {transform_indices = @transform_3, window_bounds = array<i64: 1, 32, 96>}, {transform_indices = @transform_4, window_bounds = array<i64: 1, 1, 96>}, {transform_indices = @transform_5, window_bounds = array<i64: 1, 32, 64>}, {transform_indices = @transform_6, window_bounds = array<i64: 1, 1, 64>}, {transform_indices = @transform_7, window_bounds = array<i64: 1, 32, 64>}, {transform_indices = @transform_8, window_bounds = array<i64: 1, 1, 64>}, {transform_indices = @transform_9, window_bounds = array<i64: 1, 32, 32>}, {transform_indices = @transform_10, window_bounds = array<i64: 1, 1, 32>}, {transform_indices = @transform_11, window_bounds = array<i64: 1, 32, 32>}, {transform_indices = @transform_12, window_bounds = array<i64: 1, 1, 32>}, {transform_indices = @transform_13, window_bounds = array<i64: 1, 2, 32>}, {transform_indices = @transform_14, window_bounds = array<i64: 1, 2, 32>}, {transform_indices = @transform_15, window_bounds = array<i64: 1, 32, 128>}, {transform_indices = @transform_16, window_bounds = array<i64: 1, 1, 128>}, {transform_indices = @transform_17, window_bounds = array<i64: 1, 128, 32>}, {transform_indices = @transform_18, window_bounds = array<i64: 1, 1, 32>}, {pipeline_mode = #tpu.pipeline_mode<synchronous>, transform_indices = @transform_19, window_bounds = array<i64: 1, 32>}, {pipeline_mode = #tpu.pipeline_mode<synchronous>, transform_indices = @transform_20, window_bounds = array<i64: 1, 32>}, {transform_indices = @transform_21, window_bounds = array<i64: 8, 32>}]} {
    %c0 = arith.constant 0 : index
    %c0_0 = arith.constant 0 : index
    %c0_1 = arith.constant 0 : index
    %0 = vector.load %arg15[%c0, %c0_0, %c0_1] : memref<1x2x32xf32, #tpu.memory_space<vmem>>, vector<1x2x32xf32>
    %1 = vector.shape_cast %0 : vector<1x2x32xf32> to vector<2x32xf32>
    %c0_2 = arith.constant 0 : index
    %c0_3 = arith.constant 0 : index
    %c0_4 = arith.constant 0 : index
    %2 = vector.load %arg16[%c0_2, %c0_3, %c0_4] : memref<1x2x32xf32, #tpu.memory_space<vmem>>, vector<1x2x32xf32>
    %3 = vector.shape_cast %2 : vector<1x2x32xf32> to vector<2x32xf32>
    %c0_i32 = arith.constant 0 : i32
    %4 = arith.cmpi eq, %arg0, %c0_i32 : i32
    %c0_i32_5 = arith.constant 0 : i32
    %5 = arith.cmpi eq, %arg1, %c0_i32_5 : i32
    %6 = arith.andi %4, %5 : i1
    %7 = arith.extui %6 : i1 to i32
    %c0_i32_6 = arith.constant 0 : i32
    %8 = arith.cmpi ne, %7, %c0_i32_6 : i32
    scf.if %8 {
      %c0_87 = arith.constant 0 : index
      %c0_88 = arith.constant 0 : index
      %188 = vector.load %arg2[%c0_87, %c0_88] : memref<16x32xf32, #tpu.memory_space<vmem>>, vector<16x32xf32>
      %c0_89 = arith.constant 0 : index
      %c0_90 = arith.constant 0 : index
      %189 = vector.load %arg24[%c0_89, %c0_90] : memref<16x32xf32, #tpu.memory_space<vmem>>, vector<16x32xf32>
      tpu.vector_store %arg24[%c0_89, %c0_90], %188 {strides = array<i32>} : memref<16x32xf32, #tpu.memory_space<vmem>>, vector<16x32xf32>,
    } else {
    }
    %c0_i32_7 = arith.constant 0 : i32
    %9 = arith.cmpi eq, %arg1, %c0_i32_7 : i32
    %10 = arith.extui %9 : i1 to i32
    %c0_i32_8 = arith.constant 0 : i32
    %11 = arith.cmpi ne, %10, %c0_i32_8 : i32
    scf.if %11 {
      %c0_87 = arith.constant 0 : index
      %c0_88 = arith.constant 0 : index
      %188 = vector.load %arg24[%c0_87, %c0_88] : memref<16x32xf32, #tpu.memory_space<vmem>>, vector<16x32xf32>
      %189 = vector.extract_strided_slice %1 {offsets = [0, 0], sizes = [1, 32], strides = [1, 1]} : vector<2x32xf32> to vector<1x32xf32>
      %190 = vector.extract_strided_slice %3 {offsets = [0, 0], sizes = [1, 32], strides = [1, 1]} : vector<2x32xf32> to vector<1x32xf32>
      %cst_89 = arith.constant dense<0.000000e+00> : vector<16xf32>
      %191 = vector.multi_reduction <add>, %188, %cst_89 [1] : vector<16x32xf32> to vector<16xf32>
      %192 = vector.shape_cast %191 : vector<16xf32> to vector<16x1xf32>
      %cst_90 = arith.constant 3.200000e+01 : f32
      %193 = vector.broadcast %cst_90 : f32 to vector<16x1xf32>
      %194 = arith.divf %192, %193 : vector<16x1xf32>
      %195 = vector.broadcast %194 : vector<16x1xf32> to vector<16x32xf32>
      %196 = arith.subf %188, %195 : vector<16x32xf32>
      %197 = arith.mulf %196, %196 : vector<16x32xf32>
      %cst_91 = arith.constant dense<0.000000e+00> : vector<16xf32>
      %198 = vector.multi_reduction <add>, %197, %cst_91 [1] : vector<16x32xf32> to vector<16xf32>
      %199 = vector.shape_cast %198 : vector<16xf32> to vector<16x1xf32>
      %cst_92 = arith.constant 3.200000e+01 : f32
      %200 = vector.broadcast %cst_92 : f32 to vector<16x1xf32>
      %201 = arith.divf %199, %200 : vector<16x1xf32>
      %202 = vector.broadcast %194 : vector<16x1xf32> to vector<16x32xf32>
      %203 = arith.subf %188, %202 : vector<16x32xf32>
      %cst_93 = arith.constant 9.99999974E-6 : f32
      %204 = vector.broadcast %cst_93 : f32 to vector<16x1xf32>
      %205 = arith.addf %201, %204 : vector<16x1xf32>
      %206 = math.rsqrt %205 : vector<16x1xf32>
      %207 = vector.broadcast %206 : vector<16x1xf32> to vector<16x32xf32>
      %208 = arith.mulf %203, %207 : vector<16x32xf32>
      %209 = vector.broadcast %189 : vector<1x32xf32> to vector<16x32xf32>
      %210 = arith.mulf %208, %209 : vector<16x32xf32>
      %211 = vector.broadcast %190 : vector<1x32xf32> to vector<16x32xf32>
      %212 = arith.addf %210, %211 : vector<16x32xf32>
      %c0_94 = arith.constant 0 : index
      %c0_95 = arith.constant 0 : index
      %213 = vector.load %arg26[%c0_94, %c0_95] : memref<16x32xf32, #tpu.memory_space<vmem>>, vector<16x32xf32>
      tpu.vector_store %arg26[%c0_94, %c0_95], %212 {strides = array<i32>} : memref<16x32xf32, #tpu.memory_space<vmem>>, vector<16x32xf32>,
      %c0_96 = arith.constant 0 : index
      %c0_97 = arith.constant 0 : index
      %c0_98 = arith.constant 0 : index
      %214 = vector.load %arg7[%c0_96, %c0_97, %c0_98] : memref<1x32x64xf32, #tpu.memory_space<vmem>>, vector<1x32x64xf32>
      %215 = vector.shape_cast %214 : vector<1x32x64xf32> to vector<32x64xf32>
      %cst_99 = arith.constant dense<0.000000e+00> : vector<16x64xf32>
      %216 = tpu.matmul %212, %215, %cst_99 {dimension_numbers = #tpu.dot_dimension_numbers<[1], [0], [0], [1], [0, 0, 1, 1], [], []>} : vector<16x32xf32>, vector<32x64xf32>, vector<16x64xf32> -> vector<16x64xf32>
      %c0_100 = arith.constant 0 : index
      %c0_101 = arith.constant 0 : index
      %c0_102 = arith.constant 0 : index
      %217 = vector.load %arg8[%c0_100, %c0_101, %c0_102] : memref<1x1x64xf32, #tpu.memory_space<vmem>>, vector<1x1x64xf32>
      %218 = vector.shape_cast %217 : vector<1x1x64xf32> to vector<1x64xf32>
      %219 = vector.broadcast %218 : vector<1x64xf32> to vector<16x64xf32>
      %220 = arith.addf %216, %219 : vector<16x64xf32>
      %c0_103 = arith.constant 0 : index
      %c0_104 = arith.constant 0 : index
      %221 = vector.load %arg27[%c0_103, %c0_104] : memref<16x64xf32, #tpu.memory_space<vmem>>, vector<16x64xf32>
      tpu.vector_store %arg27[%c0_103, %c0_104], %220 {strides = array<i32>} : memref<16x64xf32, #tpu.memory_space<vmem>>, vector<16x64xf32>,
    } else {
    }
    %c8_i32 = arith.constant 8 : i32
    %12 = arith.muli %arg1, %c8_i32 : i32
    %13 = tpu.assume_multiple %12, 8 : i32
    %14 = arith.index_cast %13 : i32 to index
    %c0_9 = arith.constant 0 : index
    %15 = vector.load %arg26[%14, %c0_9] : memref<16x32xf32, #tpu.memory_space<vmem>>, vector<8x32xf32>
    %c0_10 = arith.constant 0 : index
    %c0_11 = arith.constant 0 : index
    %c0_12 = arith.constant 0 : index
    %16 = vector.load %arg5[%c0_10, %c0_11, %c0_12] : memref<1x32x96xf32, #tpu.memory_space<vmem>>, vector<1x32x96xf32>
    %17 = vector.shape_cast %16 : vector<1x32x96xf32> to vector<32x96xf32>
    %cst = arith.constant dense<0.000000e+00> : vector<8x96xf32>
    %18 = tpu.matmul %15, %17, %cst {dimension_numbers = #tpu.dot_dimension_numbers<[1], [0], [0], [1], [0, 0, 1, 1], [], []>} : vector<8x32xf32>, vector<32x96xf32>, vector<8x96xf32> -> vector<8x96xf32>
    %c0_13 = arith.constant 0 : index
    %c0_14 = arith.constant 0 : index
    %c0_15 = arith.constant 0 : index
    %19 = vector.load %arg6[%c0_13, %c0_14, %c0_15] : memref<1x1x96xf32, #tpu.memory_space<vmem>>, vector<1x1x96xf32>
    %20 = vector.shape_cast %19 : vector<1x1x96xf32> to vector<1x96xf32>
    %21 = vector.broadcast %20 : vector<1x96xf32> to vector<8x96xf32>
    %22 = arith.addf %18, %21 : vector<8x96xf32>
    %23 = vector.extract_strided_slice %22 {offsets = [0, 0], sizes = [8, 32], strides = [1, 1]} : vector<8x96xf32> to vector<8x32xf32>
    %cst_16 = arith.constant 5.000000e-01 : f32
    %24 = vector.broadcast %cst_16 : f32 to vector<8x32xf32>
    %25 = arith.mulf %23, %24 : vector<8x32xf32>
    %26 = vector.extract_strided_slice %22 {offsets = [0, 32], sizes = [8, 32], strides = [1, 1]} : vector<8x96xf32> to vector<8x32xf32>
    %27 = vector.extract_strided_slice %22 {offsets = [0, 64], sizes = [8, 32], strides = [1, 1]} : vector<8x96xf32> to vector<8x32xf32>
    %c0_17 = arith.constant 0 : index
    %c0_18 = arith.constant 0 : index
    %28 = vector.load %arg27[%c0_17, %c0_18] : memref<16x64xf32, #tpu.memory_space<vmem>>, vector<16x64xf32>
    %29 = vector.extract_strided_slice %28 {offsets = [0, 0], sizes = [16, 32], strides = [1, 1]} : vector<16x64xf32> to vector<16x32xf32>
    %30 = vector.extract_strided_slice %28 {offsets = [0, 32], sizes = [16, 32], strides = [1, 1]} : vector<16x64xf32> to vector<16x32xf32>
    %c0_19 = arith.constant 0 : index
    %c0_20 = arith.constant 0 : index
    %c0_21 = arith.constant 0 : index
    %31 = vector.load %arg3[%c0_19, %c0_20, %c0_21] : memref<8x16x32xbf16, #tpu.memory_space<vmem>>, vector<8x16x32xbf16>
    %32 = vector.shape_cast %31 : vector<8x16x32xbf16> to vector<128x32xbf16>
    %c0_22 = arith.constant 0 : index
    %c0_23 = arith.constant 0 : index
    %c0_24 = arith.constant 0 : index
    %33 = vector.load %arg9[%c0_22, %c0_23, %c0_24] : memref<1x32x64xbf16, #tpu.memory_space<vmem>>, vector<1x32x64xbf16>
    %34 = vector.shape_cast %33 : vector<1x32x64xbf16> to vector<32x64xbf16>
    %cst_25 = arith.constant dense<0.000000e+00> : vector<128x64xf32>
    %35 = tpu.matmul %32, %34, %cst_25 {dimension_numbers = #tpu.dot_dimension_numbers<[1], [0], [0], [1], [0, 0, 1, 1], [], []>} : vector<128x32xbf16>, vector<32x64xbf16>, vector<128x64xf32> -> vector<128x64xf32>
    %c0_26 = arith.constant 0 : index
    %c0_27 = arith.constant 0 : index
    %c0_28 = arith.constant 0 : index
    %36 = vector.load %arg10[%c0_26, %c0_27, %c0_28] : memref<1x1x64xf32, #tpu.memory_space<vmem>>, vector<1x1x64xf32>
    %37 = vector.shape_cast %36 : vector<1x1x64xf32> to vector<1x64xf32>
    %38 = vector.broadcast %37 : vector<1x64xf32> to vector<128x64xf32>
    %39 = arith.addf %35, %38 : vector<128x64xf32>
    %40 = vector.extract_strided_slice %39 {offsets = [0, 0], sizes = [128, 32], strides = [1, 1]} : vector<128x64xf32> to vector<128x32xf32>
    %41 = vector.shape_cast %40 : vector<128x32xf32> to vector<8x16x32xf32>
    %42 = vector.extract_strided_slice %39 {offsets = [0, 32], sizes = [128, 32], strides = [1, 1]} : vector<128x64xf32> to vector<128x32xf32>
    %43 = vector.shape_cast %42 : vector<128x32xf32> to vector<8x16x32xf32>
    %44 = vector.shape_cast %25 : vector<8x32xf32> to vector<8x1x32xf32>
    %45 = vector.shape_cast %29 : vector<16x32xf32> to vector<1x16x32xf32>
    %46 = vector.broadcast %45 : vector<1x16x32xf32> to vector<8x16x32xf32>
    %47 = arith.addf %46, %41 : vector<8x16x32xf32>
    %48 = vector.broadcast %44 : vector<8x1x32xf32> to vector<8x16x32xf32>
    %49 = arith.mulf %48, %47 : vector<8x16x32xf32>
    %50 = vector.extract_strided_slice %49 {offsets = [0, 0, 0], sizes = [8, 16, 8], strides = [1, 1, 1]} : vector<8x16x32xf32> to vector<8x16x8xf32>
    %51 = vector.extract_strided_slice %49 {offsets = [0, 0, 8], sizes = [8, 16, 8], strides = [1, 1, 1]} : vector<8x16x32xf32> to vector<8x16x8xf32>
    %52 = arith.addf %50, %51 : vector<8x16x8xf32>
    %53 = vector.extract_strided_slice %49 {offsets = [0, 0, 16], sizes = [8, 16, 8], strides = [1, 1, 1]} : vector<8x16x32xf32> to vector<8x16x8xf32>
    %54 = arith.addf %52, %53 : vector<8x16x8xf32>
    %55 = vector.extract_strided_slice %49 {offsets = [0, 0, 24], sizes = [8, 16, 8], strides = [1, 1, 1]} : vector<8x16x32xf32> to vector<8x16x8xf32>
    %56 = arith.addf %54, %55 : vector<8x16x8xf32>
    %c0_29 = arith.constant 0 : index
    %c0_30 = arith.constant 0 : index
    %57 = vector.load %arg4[%c0_29, %c0_30] : memref<8x16xf32, #tpu.memory_space<vmem>>, vector<8x16xf32>
    %58 = vector.shape_cast %57 : vector<8x16xf32> to vector<8x16x1xf32>
    %cst_31 = arith.constant 5.000000e-01 : f32
    %59 = vector.broadcast %cst_31 : f32 to vector<8x16x1xf32>
    %60 = arith.cmpf ogt, %58, %59 : vector<8x16x1xf32>
    %cst_32 = arith.constant -1.000000e+30 : f32
    %61 = vector.shape_cast %60 : vector<8x16x1xi1> to vector<8x16x1xi1>
    %62 = vector.broadcast %61 : vector<8x16x1xi1> to vector<8x16x8xi1>
    %63 = vector.broadcast %cst_32 : f32 to vector<8x16x8xf32>
    %64 = arith.select %62, %56, %63 : vector<8x16x8xi1>, vector<8x16x8xf32>
    %cst_33 = arith.constant dense<0xFF800000> : vector<8x8xf32>
    %65 = vector.multi_reduction <maximumf>, %64, %cst_33 [1] : vector<8x16x8xf32> to vector<8x8xf32>
    %66 = vector.shape_cast %65 : vector<8x8xf32> to vector<8x1x8xf32>
    %67 = vector.broadcast %66 : vector<8x1x8xf32> to vector<8x16x8xf32>
    %68 = arith.subf %64, %67 : vector<8x16x8xf32>
    %69 = math.exp %68 : vector<8x16x8xf32>
    %70 = arith.extui %60 : vector<8x16x1xi1> to vector<8x16x1xi32>
    %71 = arith.sitofp %70 : vector<8x16x1xi32> to vector<8x16x1xf32>
    %72 = vector.broadcast %71 : vector<8x16x1xf32> to vector<8x16x8xf32>
    %73 = arith.mulf %69, %72 : vector<8x16x8xf32>
    %cst_34 = arith.constant dense<0.000000e+00> : vector<8x8xf32>
    %74 = vector.multi_reduction <add>, %73, %cst_34 [1] : vector<8x16x8xf32> to vector<8x8xf32>
    %75 = vector.shape_cast %74 : vector<8x8xf32> to vector<8x1x8xf32>
    %cst_35 = arith.constant 0.000000e+00 : f32
    %76 = vector.broadcast %cst_35 : f32 to vector<8x1x8xf32>
    %77 = arith.cmpf ogt, %75, %76 : vector<8x1x8xf32>
    %cst_36 = arith.constant 1.000000e+00 : f32
    %78 = vector.broadcast %cst_36 : f32 to vector<8x1x8xf32>
    %79 = arith.select %77, %75, %78 : vector<8x1x8xi1>, vector<8x1x8xf32>
    %80 = tpu.reciprocal %79 {approx = true} : vector<8x1x8xf32> -> vector<8x1x8xf32>
    %81 = vector.broadcast %80 : vector<8x1x8xf32> to vector<8x16x8xf32>
    %82 = arith.mulf %73, %81 : vector<8x16x8xf32>
    %83 = tpu.concatenate %82, %82, %82, %82 in 2 : vector<8x16x8xf32>, vector<8x16x8xf32>, vector<8x16x8xf32>, vector<8x16x8xf32> -> vector<8x16x32xf32>
    %84 = vector.shape_cast %30 : vector<16x32xf32> to vector<1x16x32xf32>
    %85 = vector.broadcast %84 : vector<1x16x32xf32> to vector<8x16x32xf32>
    %86 = arith.addf %85, %43 : vector<8x16x32xf32>
    %87 = arith.mulf %86, %83 : vector<8x16x32xf32>
    %cst_37 = arith.constant dense<0.000000e+00> : vector<8x32xf32>
    %88 = vector.multi_reduction <add>, %87, %cst_37 [1] : vector<8x16x32xf32> to vector<8x32xf32>
    %c0_38 = arith.constant 0 : index
    %c0_39 = arith.constant 0 : index
    %c0_40 = arith.constant 0 : index
    %89 = vector.load %arg11[%c0_38, %c0_39, %c0_40] : memref<1x32x32xf32, #tpu.memory_space<vmem>>, vector<1x32x32xf32>
    %90 = vector.shape_cast %89 : vector<1x32x32xf32> to vector<32x32xf32>
    %cst_41 = arith.constant dense<0.000000e+00> : vector<8x32xf32>
    %91 = tpu.matmul %88, %90, %cst_41 {dimension_numbers = #tpu.dot_dimension_numbers<[1], [0], [0], [1], [0, 0, 1, 1], [], []>} : vector<8x32xf32>, vector<32x32xf32>, vector<8x32xf32> -> vector<8x32xf32>
    %c0_42 = arith.constant 0 : index
    %c0_43 = arith.constant 0 : index
    %c0_44 = arith.constant 0 : index
    %92 = vector.load %arg12[%c0_42, %c0_43, %c0_44] : memref<1x1x32xf32, #tpu.memory_space<vmem>>, vector<1x1x32xf32>
    %93 = vector.shape_cast %92 : vector<1x1x32xf32> to vector<1x32xf32>
    %94 = vector.broadcast %93 : vector<1x32xf32> to vector<8x32xf32>
    %95 = arith.addf %91, %94 : vector<8x32xf32>
    %96 = arith.addf %95, %27 : vector<8x32xf32>
    %97 = arith.negf %96 : vector<8x32xf32>
    %98 = math.exp %97 : vector<8x32xf32>
    %cst_45 = arith.constant 1.000000e+00 : f32
    %99 = vector.broadcast %cst_45 : f32 to vector<8x32xf32>
    %100 = arith.addf %99, %98 : vector<8x32xf32>
    %101 = arith.divf %99, %100 : vector<8x32xf32>
    %102 = arith.subf %26, %88 : vector<8x32xf32>
    %103 = arith.mulf %101, %102 : vector<8x32xf32>
    %104 = arith.addf %88, %103 : vector<8x32xf32>
    %105 = arith.index_cast %13 : i32 to index
    %c0_46 = arith.constant 0 : index
    %106 = vector.load %arg24[%105, %c0_46] : memref<16x32xf32, #tpu.memory_space<vmem>>, vector<8x32xf32>
    %c0_47 = arith.constant 0 : index
    %c0_48 = arith.constant 0 : index
    %c0_49 = arith.constant 0 : index
    %107 = vector.load %arg13[%c0_47, %c0_48, %c0_49] : memref<1x32x32xf32, #tpu.memory_space<vmem>>, vector<1x32x32xf32>
    %108 = vector.shape_cast %107 : vector<1x32x32xf32> to vector<32x32xf32>
    %cst_50 = arith.constant dense<0.000000e+00> : vector<8x32xf32>
    %109 = tpu.matmul %104, %108, %cst_50 {dimension_numbers = #tpu.dot_dimension_numbers<[1], [0], [0], [1], [0, 0, 1, 1], [], []>} : vector<8x32xf32>, vector<32x32xf32>, vector<8x32xf32> -> vector<8x32xf32>
    %110 = arith.addf %106, %109 : vector<8x32xf32>
    %c0_51 = arith.constant 0 : index
    %c0_52 = arith.constant 0 : index
    %c0_53 = arith.constant 0 : index
    %111 = vector.load %arg14[%c0_51, %c0_52, %c0_53] : memref<1x1x32xf32, #tpu.memory_space<vmem>>, vector<1x1x32xf32>
    %112 = vector.shape_cast %111 : vector<1x1x32xf32> to vector<1x32xf32>
    %113 = vector.broadcast %112 : vector<1x32xf32> to vector<8x32xf32>
    %114 = arith.addf %110, %113 : vector<8x32xf32>
    %115 = vector.extract_strided_slice %1 {offsets = [1, 0], sizes = [1, 32], strides = [1, 1]} : vector<2x32xf32> to vector<1x32xf32>
    %116 = vector.extract_strided_slice %3 {offsets = [1, 0], sizes = [1, 32], strides = [1, 1]} : vector<2x32xf32> to vector<1x32xf32>
    %cst_54 = arith.constant dense<0.000000e+00> : vector<8xf32>
    %117 = vector.multi_reduction <add>, %114, %cst_54 [1] : vector<8x32xf32> to vector<8xf32>
    %118 = vector.shape_cast %117 : vector<8xf32> to vector<8x1xf32>
    %cst_55 = arith.constant 3.200000e+01 : f32
    %119 = vector.broadcast %cst_55 : f32 to vector<8x1xf32>
    %120 = arith.divf %118, %119 : vector<8x1xf32>
    %121 = vector.broadcast %120 : vector<8x1xf32> to vector<8x32xf32>
    %122 = arith.subf %114, %121 : vector<8x32xf32>
    %123 = arith.mulf %122, %122 : vector<8x32xf32>
    %cst_56 = arith.constant dense<0.000000e+00> : vector<8xf32>
    %124 = vector.multi_reduction <add>, %123, %cst_56 [1] : vector<8x32xf32> to vector<8xf32>
    %125 = vector.shape_cast %124 : vector<8xf32> to vector<8x1xf32>
    %cst_57 = arith.constant 3.200000e+01 : f32
    %126 = vector.broadcast %cst_57 : f32 to vector<8x1xf32>
    %127 = arith.divf %125, %126 : vector<8x1xf32>
    %128 = vector.broadcast %120 : vector<8x1xf32> to vector<8x32xf32>
    %129 = arith.subf %114, %128 : vector<8x32xf32>
    %cst_58 = arith.constant 9.99999974E-6 : f32
    %130 = vector.broadcast %cst_58 : f32 to vector<8x1xf32>
    %131 = arith.addf %127, %130 : vector<8x1xf32>
    %132 = math.rsqrt %131 : vector<8x1xf32>
    %133 = vector.broadcast %132 : vector<8x1xf32> to vector<8x32xf32>
    %134 = arith.mulf %129, %133 : vector<8x32xf32>
    %135 = vector.broadcast %115 : vector<1x32xf32> to vector<8x32xf32>
    %136 = arith.mulf %134, %135 : vector<8x32xf32>
    %137 = vector.broadcast %116 : vector<1x32xf32> to vector<8x32xf32>
    %138 = arith.addf %136, %137 : vector<8x32xf32>
    %c0_59 = arith.constant 0 : index
    %c0_60 = arith.constant 0 : index
    %c0_61 = arith.constant 0 : index
    %139 = vector.load %arg17[%c0_59, %c0_60, %c0_61] : memref<1x32x128xf32, #tpu.memory_space<vmem>>, vector<1x32x128xf32>
    %140 = vector.shape_cast %139 : vector<1x32x128xf32> to vector<32x128xf32>
    %cst_62 = arith.constant dense<0.000000e+00> : vector<8x128xf32>
    %141 = tpu.matmul %138, %140, %cst_62 {dimension_numbers = #tpu.dot_dimension_numbers<[1], [0], [0], [1], [0, 0, 1, 1], [], []>} : vector<8x32xf32>, vector<32x128xf32>, vector<8x128xf32> -> vector<8x128xf32>
    %c0_63 = arith.constant 0 : index
    %c0_64 = arith.constant 0 : index
    %c0_65 = arith.constant 0 : index
    %142 = vector.load %arg18[%c0_63, %c0_64, %c0_65] : memref<1x1x128xf32, #tpu.memory_space<vmem>>, vector<1x1x128xf32>
    %143 = vector.shape_cast %142 : vector<1x1x128xf32> to vector<1x128xf32>
    %144 = vector.broadcast %143 : vector<1x128xf32> to vector<8x128xf32>
    %145 = arith.addf %141, %144 : vector<8x128xf32>
    %cst_66 = arith.constant 0.000000e+00 : f32
    %146 = vector.broadcast %cst_66 : f32 to vector<8x128xf32>
    %147 = arith.maximumf %145, %146 : vector<8x128xf32>
    %c0_67 = arith.constant 0 : index
    %c0_68 = arith.constant 0 : index
    %c0_69 = arith.constant 0 : index
    %148 = vector.load %arg19[%c0_67, %c0_68, %c0_69] : memref<1x128x32xf32, #tpu.memory_space<vmem>>, vector<1x128x32xf32>
    %149 = vector.shape_cast %148 : vector<1x128x32xf32> to vector<128x32xf32>
    %cst_70 = arith.constant dense<0.000000e+00> : vector<8x32xf32>
    %150 = tpu.matmul %147, %149, %cst_70 {dimension_numbers = #tpu.dot_dimension_numbers<[1], [0], [0], [1], [0, 0, 1, 1], [], []>} : vector<8x128xf32>, vector<128x32xf32>, vector<8x32xf32> -> vector<8x32xf32>
    %151 = arith.addf %114, %150 : vector<8x32xf32>
    %c0_71 = arith.constant 0 : index
    %c0_72 = arith.constant 0 : index
    %c0_73 = arith.constant 0 : index
    %152 = vector.load %arg20[%c0_71, %c0_72, %c0_73] : memref<1x1x32xf32, #tpu.memory_space<vmem>>, vector<1x1x32xf32>
    %153 = vector.shape_cast %152 : vector<1x1x32xf32> to vector<1x32xf32>
    %154 = vector.broadcast %153 : vector<1x32xf32> to vector<8x32xf32>
    %155 = arith.addf %151, %154 : vector<8x32xf32>
    %156 = arith.index_cast %13 : i32 to index
    %c0_74 = arith.constant 0 : index
    %157 = vector.load %arg25[%156, %c0_74] : memref<16x32xf32, #tpu.memory_space<vmem>>, vector<8x32xf32>
    tpu.vector_store %arg25[%156, %c0_74], %155 {strides = array<i32>} : memref<16x32xf32, #tpu.memory_space<vmem>>, vector<8x32xf32>,
    %c2_i32 = arith.constant 2 : i32
    %158 = arith.cmpi eq, %arg0, %c2_i32 : i32
    %c0_75 = arith.constant 0 : index
    %c0_76 = arith.constant 0 : index
    %159 = vector.load %arg21[%c0_75, %c0_76] : memref<1x32xf32, #tpu.memory_space<vmem>>, vector<1x32xf32>
    %c0_77 = arith.constant 0 : index
    %c0_78 = arith.constant 0 : index
    %160 = vector.load %arg22[%c0_77, %c0_78] : memref<1x32xf32, #tpu.memory_space<vmem>>, vector<1x32xf32>
    %cst_79 = arith.constant dense<0.000000e+00> : vector<8xf32>
    %161 = vector.multi_reduction <add>, %155, %cst_79 [1] : vector<8x32xf32> to vector<8xf32>
    %162 = vector.shape_cast %161 : vector<8xf32> to vector<8x1xf32>
    %cst_80 = arith.constant 3.200000e+01 : f32
    %163 = vector.broadcast %cst_80 : f32 to vector<8x1xf32>
    %164 = arith.divf %162, %163 : vector<8x1xf32>
    %165 = vector.broadcast %164 : vector<8x1xf32> to vector<8x32xf32>
    %166 = arith.subf %155, %165 : vector<8x32xf32>
    %167 = arith.mulf %166, %166 : vector<8x32xf32>
    %cst_81 = arith.constant dense<0.000000e+00> : vector<8xf32>
    %168 = vector.multi_reduction <add>, %167, %cst_81 [1] : vector<8x32xf32> to vector<8xf32>
    %169 = vector.shape_cast %168 : vector<8xf32> to vector<8x1xf32>
    %cst_82 = arith.constant 3.200000e+01 : f32
    %170 = vector.broadcast %cst_82 : f32 to vector<8x1xf32>
    %171 = arith.divf %169, %170 : vector<8x1xf32>
    %172 = vector.broadcast %164 : vector<8x1xf32> to vector<8x32xf32>
    %173 = arith.subf %155, %172 : vector<8x32xf32>
    %cst_83 = arith.constant 9.99999974E-6 : f32
    %174 = vector.broadcast %cst_83 : f32 to vector<8x1xf32>
    %175 = arith.addf %171, %174 : vector<8x1xf32>
    %176 = math.rsqrt %175 : vector<8x1xf32>
    %177 = vector.broadcast %176 : vector<8x1xf32> to vector<8x32xf32>
    %178 = arith.mulf %173, %177 : vector<8x32xf32>
    %179 = vector.broadcast %159 : vector<1x32xf32> to vector<8x32xf32>
    %180 = arith.mulf %178, %179 : vector<8x32xf32>
    %181 = vector.broadcast %160 : vector<1x32xf32> to vector<8x32xf32>
    %182 = arith.addf %180, %181 : vector<8x32xf32>
    %183 = arith.select %158, %182, %155 : vector<8x32xf32>
    %c0_84 = arith.constant 0 : index
    %c0_85 = arith.constant 0 : index
    %184 = vector.load %arg23[%c0_84, %c0_85] : memref<8x32xf32, #tpu.memory_space<vmem>>, vector<8x32xf32>
    tpu.vector_store %arg23[%c0_84, %c0_85], %183 {strides = array<i32>} : memref<8x32xf32, #tpu.memory_space<vmem>>, vector<8x32xf32>,
    %c1_i32 = arith.constant 1 : i32
    %185 = arith.cmpi eq, %arg1, %c1_i32 : i32
    %186 = arith.extui %185 : i1 to i32
    %c0_i32_86 = arith.constant 0 : i32
    %187 = arith.cmpi ne, %186, %c0_i32_86 : i32
    scf.if %187 {
      %c0_87 = arith.constant 0 : index
      %c0_88 = arith.constant 0 : index
      %188 = vector.load %arg25[%c0_87, %c0_88] : memref<16x32xf32, #tpu.memory_space<vmem>>, vector<16x32xf32>
      %c0_89 = arith.constant 0 : index
      %c0_90 = arith.constant 0 : index
      %189 = vector.load %arg24[%c0_89, %c0_90] : memref<16x32xf32, #tpu.memory_space<vmem>>, vector<16x32xf32>
      tpu.vector_store %arg24[%c0_89, %c0_90], %188 {strides = array<i32>} : memref<16x32xf32, #tpu.memory_space<vmem>>, vector<16x32xf32>,
    } else {
    }
    return
  }
  func.func @transform_0(%arg0: i32, %arg1: i32) -> (i32, i32) {
    %c0_i32 = arith.constant 0 : i32
    %c0_i32_0 = arith.constant 0 : i32
    %c0_i32_1 = arith.constant 0 : i32
    return %c0_i32, %c0_i32_0 : i32, i32
  }
  func.func @transform_1(%arg0: i32, %arg1: i32) -> (i32, i32, i32) {
    %c0_i32 = arith.constant 0 : i32
    %c0_i32_0 = arith.constant 0 : i32
    %c0_i32_1 = arith.constant 0 : i32
    return %arg1, %c0_i32, %c0_i32_0 : i32, i32, i32
  }
  func.func @transform_2(%arg0: i32, %arg1: i32) -> (i32, i32) {
    %c0_i32 = arith.constant 0 : i32
    %c0_i32_0 = arith.constant 0 : i32
    return %arg1, %c0_i32 : i32, i32
  }
  func.func @transform_3(%arg0: i32, %arg1: i32) -> (i32, i32, i32) {
    %c0_i32 = arith.constant 0 : i32
    %c0_i32_0 = arith.constant 0 : i32
    %c0_i32_1 = arith.constant 0 : i32
    return %arg0, %c0_i32, %c0_i32_0 : i32, i32, i32
  }
  func.func @transform_4(%arg0: i32, %arg1: i32) -> (i32, i32, i32) {
    %c0_i32 = arith.constant 0 : i32
    %c0_i32_0 = arith.constant 0 : i32
    %c0_i32_1 = arith.constant 0 : i32
    return %arg0, %c0_i32, %c0_i32_0 : i32, i32, i32
  }
  func.func @transform_5(%arg0: i32, %arg1: i32) -> (i32, i32, i32) {
    %c0_i32 = arith.constant 0 : i32
    %c0_i32_0 = arith.constant 0 : i32
    %c0_i32_1 = arith.constant 0 : i32
    return %arg0, %c0_i32, %c0_i32_0 : i32, i32, i32
  }
  func.func @transform_6(%arg0: i32, %arg1: i32) -> (i32, i32, i32) {
    %c0_i32 = arith.constant 0 : i32
    %c0_i32_0 = arith.constant 0 : i32
    %c0_i32_1 = arith.constant 0 : i32
    return %arg0, %c0_i32, %c0_i32_0 : i32, i32, i32
  }
  func.func @transform_7(%arg0: i32, %arg1: i32) -> (i32, i32, i32) {
    %c0_i32 = arith.constant 0 : i32
    %c0_i32_0 = arith.constant 0 : i32
    %c0_i32_1 = arith.constant 0 : i32
    return %arg0, %c0_i32, %c0_i32_0 : i32, i32, i32
  }
  func.func @transform_8(%arg0: i32, %arg1: i32) -> (i32, i32, i32) {
    %c0_i32 = arith.constant 0 : i32
    %c0_i32_0 = arith.constant 0 : i32
    %c0_i32_1 = arith.constant 0 : i32
    return %arg0, %c0_i32, %c0_i32_0 : i32, i32, i32
  }
  func.func @transform_9(%arg0: i32, %arg1: i32) -> (i32, i32, i32) {
    %c0_i32 = arith.constant 0 : i32
    %c0_i32_0 = arith.constant 0 : i32
    %c0_i32_1 = arith.constant 0 : i32
    return %arg0, %c0_i32, %c0_i32_0 : i32, i32, i32
  }
  func.func @transform_10(%arg0: i32, %arg1: i32) -> (i32, i32, i32) {
    %c0_i32 = arith.constant 0 : i32
    %c0_i32_0 = arith.constant 0 : i32
    %c0_i32_1 = arith.constant 0 : i32
    return %arg0, %c0_i32, %c0_i32_0 : i32, i32, i32
  }
  func.func @transform_11(%arg0: i32, %arg1: i32) -> (i32, i32, i32) {
    %c0_i32 = arith.constant 0 : i32
    %c0_i32_0 = arith.constant 0 : i32
    %c0_i32_1 = arith.constant 0 : i32
    return %arg0, %c0_i32, %c0_i32_0 : i32, i32, i32
  }
  func.func @transform_12(%arg0: i32, %arg1: i32) -> (i32, i32, i32) {
    %c0_i32 = arith.constant 0 : i32
    %c0_i32_0 = arith.constant 0 : i32
    %c0_i32_1 = arith.constant 0 : i32
    return %arg0, %c0_i32, %c0_i32_0 : i32, i32, i32
  }
  func.func @transform_13(%arg0: i32, %arg1: i32) -> (i32, i32, i32) {
    %c0_i32 = arith.constant 0 : i32
    %c0_i32_0 = arith.constant 0 : i32
    %c0_i32_1 = arith.constant 0 : i32
    return %arg0, %c0_i32, %c0_i32_0 : i32, i32, i32
  }
  func.func @transform_14(%arg0: i32, %arg1: i32) -> (i32, i32, i32) {
    %c0_i32 = arith.constant 0 : i32
    %c0_i32_0 = arith.constant 0 : i32
    %c0_i32_1 = arith.constant 0 : i32
    return %arg0, %c0_i32, %c0_i32_0 : i32, i32, i32
  }
  func.func @transform_15(%arg0: i32, %arg1: i32) -> (i32, i32, i32) {
    %c0_i32 = arith.constant 0 : i32
    %c0_i32_0 = arith.constant 0 : i32
    %c0_i32_1 = arith.constant 0 : i32
    return %arg0, %c0_i32, %c0_i32_0 : i32, i32, i32
  }
  func.func @transform_16(%arg0: i32, %arg1: i32) -> (i32, i32, i32) {
    %c0_i32 = arith.constant 0 : i32
    %c0_i32_0 = arith.constant 0 : i32
    %c0_i32_1 = arith.constant 0 : i32
    return %arg0, %c0_i32, %c0_i32_0 : i32, i32, i32
  }
  func.func @transform_17(%arg0: i32, %arg1: i32) -> (i32, i32, i32) {
    %c0_i32 = arith.constant 0 : i32
    %c0_i32_0 = arith.constant 0 : i32
    %c0_i32_1 = arith.constant 0 : i32
    return %arg0, %c0_i32, %c0_i32_0 : i32, i32, i32
  }
  func.func @transform_18(%arg0: i32, %arg1: i32) -> (i32, i32, i32) {
    %c0_i32 = arith.constant 0 : i32
    %c0_i32_0 = arith.constant 0 : i32
    %c0_i32_1 = arith.constant 0 : i32
    return %arg0, %c0_i32, %c0_i32_0 : i32, i32, i32
  }
  func.func @transform_19(%arg0: i32, %arg1: i32) -> (i32, i32) {
    %c0_i32 = arith.constant 0 : i32
    %c0_i32_0 = arith.constant 0 : i32
    %c0_i32_1 = arith.constant 0 : i32
    return %c0_i32, %c0_i32_0 : i32, i32
  }
  func.func @transform_20(%arg0: i32, %arg1: i32) -> (i32, i32) {
    %c0_i32 = arith.constant 0 : i32
    %c0_i32_0 = arith.constant 0 : i32
    %c0_i32_1 = arith.constant 0 : i32
    return %c0_i32, %c0_i32_0 : i32, i32
  }
  func.func @transform_21(%arg0: i32, %arg1: i32) -> (i32, i32) {
    %c0_i32 = arith.constant 0 : i32
    %c0_i32_0 = arith.constant 0 : i32
    return %arg1, %c0_i32 : i32, i32
  }
}

</mosaic_0001>

<bundles_post_ra>
// kernel: global_interactor_forward.2
= control target key start
LH: loop header
LB: loop body
LE: loop exit
PB: predicated region body
PF: predicated region fallthrough
CT: control target
= control target key end

     0   :  { %s3222_s29 = smov 0   ;;  %s4457_s0 = inlined_call_operand.vmem [shape: f32[16,9], index: 0, kind: input, shape index: {}]   ;;  %s4458_s1 = inlined_call_operand.vmem [shape: f32[5,16], index: 1, kind: input, shape index: {}]   ;;  %s4459_s2 = inlined_call_operand.vmem [shape: f32[4,32], index: 2, kind: input, shape index: {}]   ;;  %s4460_s3 = inlined_call_operand.vmem [shape: f32[2,32], index: 3, kind: input, shape index: {}]   ;;  %s4461_s4 = inlined_call_operand.vmem [shape: f32[2,32], index: 4, kind: input, shape index: {}]   ;;  %s4462_s5 = inlined_call_operand.vmem [shape: f32[2,32], index: 5, kind: input, shape index: {}]   ;;  %s4463_s6 = inlined_call_operand.vmem [shape: bf16[32,32], index: 6, kind: input, shape index: {}]   ;;  %s4464_s7 = inlined_call_operand.vmem [shape: bf16[32,32], index: 7, kind: input, shape index: {}]   ;;  %s4465_s8 = inlined_call_operand.vmem [shape: f32[1,32], index: 8, kind: input, shape index: {}]   ;;  %s4466_s9 = inlined_call_operand.vmem [shape: f32[2,32], index: 9, kind: input, shape index: {}]   ;;  %s4467_s10 = inlined_call_operand.vmem [shape: f32[2,32], index: 10, kind: input, shape index: {}]   ;;  %s4468_s11 = inlined_call_operand.vmem [shape: bf16[32,32], index: 11, kind: input, shape index: {}]   ;;  %s4469_s12 = inlined_call_operand.vmem [shape: f32[1,32], index: 12, kind: input, shape index: {}]   ;;  %s4470_s13 = inlined_call_operand.vmem [shape: bf16[16,16,32], index: 13, kind: output, shape index: {0}]   ;;  %s4471_s14 = inlined_call_operand.vmem [shape: f32[16,16], index: 14, kind: output, shape index: {1}]  }
   0x1 LB: > { %s3228_s30 = sadd.s32 4294967295, %s3135_s29   ;;  %p2766_p0 = scmp.ge.s32.totalorder %s3135_s29, 1  ;;  %s3135_s29 = sphi %s3222_s29, %s25_s29  }
   0x2   : > { %p414_p1 = scmp.lt.s32.totalorder %s3135_s29, 3 }
   0x4   : > { %p415_p2 = pnand %p2766_p0, %p414_p1 }
   0x5   : > { %p464_p3 = scmp.lt.s32.totalorder (!%p415_p2), %s3228_s30, 1  ;;  %v3137_v0 = vmov (!%p415_p2), 6   ;;  %v3138_v1 = vmov (!%p415_p2), 0   ;;  %v3139_v3 = vmov (!%p415_p2), 7   ;;  %v3140_v4 = vmov (!%p415_p2), 1   ;;  %s4343_s17 = sshll.u32 (!%p415_p2), %s3228_s30, 3 }
   0x6   : > { %418 = sbr.rel (%p415_p2) target bundleno = 1799 (0x707), region = 72  ;;  %2983 = vset.pattern.permute.xlu0 (!%p415_p2), %v3137_v0  ;;  %2985 = vset.pattern.permute.xlu1 (!%p415_p2), %v3138_v1  ;;  %v3141_v5 = vmov (!%p415_p2), 2   ;;  %v3142_v6 = vmov (!%p415_p2), 4   ;;  %v3143_v7 = vmov (!%p415_p2), 3   ;;  %v3144_v8 = vmov (!%p415_p2), 5   ;;  %p469_p4 = scmp.lt.s32.totalorder (!%p415_p2), %s4343_s17, 15 }
   0x7   : > { %v482_v9 = vlaneseq (!%p415_p2)  ;;  %v3254_v12 = vld [vmem:[%s4458_s1] sm:$0x1f] (!%p415_p2)  ;;  %vm824_vm0 = vcmask (!%p415_p2), 261120   ;;  %vm2656_vm1 = vcmask (!%p415_p2), 257024   ;;  %vm565_vm3 = vcmask (!%p415_p2), 130048  }
   0x9   : > { %v3246_v10 = vshrl.u32 (!%p415_p2), %v482_v9, 7 }
   0xb   : > { %v3249_v11 = vsub.s32 (!%p415_p2), 2, %v3246_v10  ;;  %v3257_v13 = vsub.s32 (!%p415_p2), 3, %v3246_v10  ;;  %v3264_v21 = vsub.s32 (!%p415_p2), 0, %v3246_v10  ;;  %v3271_v26 = vsub.s32 (!%p415_p2), 7, %v3246_v10 }
   0xc   : > { %v3275_v28 = vsub.s32 (!%p415_p2), 1, %v3246_v10  ;;  %v3290_v36 = vsub.s32 (!%p415_p2), 4, %v3246_v10  ;;  %v3296_v41 = vsub.s32 (!%p415_p2), 5, %v3246_v10  ;;  %v635_v47 = vsub.s32 (!%p415_p2), 6, %v3246_v10 }
   0xd   : > { %s3234_s15 = scalar_select %p464_p3, %s3228_s30, 1  ;;  %v526_v15 = vrot.slane %v3254_v12, %v3249_v11  ;;  %v535_v16 = vrot.slane %v3254_v12, %v3257_v13  ;;  %v485_v44 = vrot.slane %v3254_v12, %v3264_v21 }
   0xe   : > { %v495_v45 = vrot.slane %v3254_v12, %v3275_v28 }
   0xf   : > { %s2767_s16 = sshll.u32 %s3234_s15, 3 }
  0x10   : > { %s3242_s19 = scalar_lea.vmem %s4457_s0, %s2767_s16 }
  0x11   : > { %v480_v2 = vld [vmem:[%s3242_s19] sm:$0xff] }
  0x12   : > { %528 = vperm.xlu0 %2983, %v480_v2   ;;  %488 = vperm.xlu1 %2985, %v480_v2  }
  0x16   : > { %2984 = vset.pattern.permute.xlu0 %v3139_v3  ;;  %2986 = vset.pattern.permute.xlu1 %v3140_v4 }
  0x17   : > { %537 = vperm.xlu0 %2984, %v480_v2   ;;  %497 = vperm.xlu1 %2986, %v480_v2  }
  0x1b   : > { %2987 = vset.pattern.permute.xlu1 %v3141_v5  ;;  %2988 = vset.pattern.permute.xlu0 %v3142_v6 }
  0x1c   : > { %502 = vperm.xlu1 %2987, %v480_v2   ;;  %507 = vperm.xlu0 %2988, %v480_v2  }
  0x20   : > { %2989 = vset.pattern.permute.xlu1 %v3143_v7 }
  0x21   : > { %513 = vperm.xlu1 %2989, %v480_v2  }
  0x25   : > { %2990 = vset.pattern.permute.xlu1 %v3144_v8 }
  0x26   : > { %518 = vperm.xlu1 %2990, %v480_v2  }
  0x91   : > { %v529_v14 = vpop.permute.xlu0 %528  ;;  %v489_v37 = vpop.permute.xlu1 %488 }
  0x92   : > { %v531_v18 = vmul.f32 %v529_v14, %v526_v15  ;;  %v542_v22 = vmul.f32 %v535_v16, %v529_v14  ;;  %v491_v49 = vsub.f32 %v485_v44, %v489_v37 }
  0x96   : > { %v538_v17 = vpop.permute.xlu0 %537  ;;  %v498_v39 = vpop.permute.xlu1 %497 }
  0x97   : > { %v540_v19 = vmul.f32 %v538_v17, %v535_v16  ;;  %v543_v20 = vmul.f32 %v538_v17, %v526_v15  ;;  %v500_v50 = vsub.f32 %v495_v45, %v498_v39 }
  0x99   : > { %v3266_v23 = vadd.f32 %v540_v19, %v531_v18  ;;  %v544_v24 = vsub.f32 %v542_v22, %v543_v20 }
  0x9b   : > { %v1101_v25 = vrot.slane %v3266_v23, %v3264_v21  ;;  %v1210_v27 = vrot.slane %v544_v24, %v3264_v21  ;;  %v3278_v29 = vrot.slane %v544_v24, %v3271_v26  ;;  %v1112_v30 = vrot.slane %v3266_v23, %v3275_v28  ;;  %v503_v43 = vpop.permute.xlu1 %502  ;;  %v508_v52 = vpop.permute.xlu0 %507 }
  0x9c   : > { %v1221_v31 = vrot.slane %v544_v24, %v3275_v28  ;;  %v1123_v32 = vrot.slane %v3266_v23, %v3249_v11  ;;  %v1232_v33 = vrot.slane %v544_v24, %v3249_v11  ;;  %v1134_v34 = vrot.slane %v3266_v23, %v3257_v13 }
  0x9d   : > { %1107 = vbcast.lane.b32.xlu1 %v1101_v25, 264  ;;  %1103 = vbcast.lane.b32.xlu0 %v1101_v25, 256  ;;  %v1243_v35 = vrot.slane %v544_v24, %v3257_v13  ;;  %v1145_v38 = vrot.slane %v3266_v23, %v3290_v36  ;;  %v1254_v40 = vrot.slane %v544_v24, %v3290_v36 }
  0x9e   : > { %v1156_v42 = vrot.slane %v3266_v23, %v3296_v41  ;;  %v1265_v46 = vrot.slane %v544_v24, %v3296_v41  ;;  %v1167_v51 = vrot.slane %v3266_v23, %v635_v47  ;;  %v505_v53 = vmul.f32 %v503_v43, %v491_v49  ;;  %v3343_v43 = vld [vmem:[%s4460_s3 + $0x1] ss:$0 sm:$0xff] }
  0x9f   : > { %v510_v54 = vmul.f32 %v508_v52, %v500_v50  ;;  %v1276_v55 = vrot.slane %v544_v24, %v635_v47  ;;  %v1178_v60 = vrot.slane %v3266_v23, %v3271_v26 }
  0xa0   : > { %v514_v48 = vpop.permute.xlu1 %513 }
  0xa1   : > { %1216 = vbcast.lane.b32.xlu1 %v1210_v27, 264  ;;  %1212 = vbcast.lane.b32.xlu0 %v1210_v27, 256  ;;  %v516_v57 = vmul.f32 %v514_v48, %v491_v49  ;;  %v511_v59 = vadd.f32 %v510_v54, %v505_v53 }
  0xa3   : > { %v570_v62 = vrot.slane %v511_v59, %v3264_v21  ;;  %v581_v0 = vrot.slane %v511_v59, %v3275_v28  ;;  %v592_v2 = vrot.slane %v511_v59, %v3249_v11  ;;  %v603_v4 = vrot.slane %v511_v59, %v3257_v13 }
  0xa4   : > { %v614_v6 = vrot.slane %v511_v59, %v3290_v36  ;;  %v625_v8 = vrot.slane %v511_v59, %v3296_v41  ;;  %v636_v12 = vrot.slane %v511_v59, %v635_v47  ;;  %v647_v16 = vrot.slane %v511_v59, %v3271_v26 }
  0xa5   : > { %1118 = vbcast.lane.b32.xlu1 %v1112_v30, 264  ;;  %1114 = vbcast.lane.b32.xlu0 %v1112_v30, 256  ;;  %v519_v56 = vpop.permute.xlu1 %518 }
  0xa6   : > { %v521_v58 = vmul.f32 %v519_v56, %v500_v50 }
  0xa8   : > { %v522_v61 = vadd.f32 %v521_v58, %v516_v57 }
  0xa9   : > { %1227 = vbcast.lane.b32.xlu1 %v1221_v31, 264  ;;  %1223 = vbcast.lane.b32.xlu0 %v1221_v31, 256 }
  0xaa   : > { %v679_v63 = vrot.slane %v522_v61, %v3264_v21  ;;  %v690_v1 = vrot.slane %v522_v61, %v3275_v28  ;;  %v701_v3 = vrot.slane %v522_v61, %v3249_v11  ;;  %v712_v5 = vrot.slane %v522_v61, %v3257_v13 }
  0xab   : > { %v723_v7 = vrot.slane %v522_v61, %v3290_v36  ;;  %v734_v11 = vrot.slane %v522_v61, %v3296_v41  ;;  %v745_v13 = vrot.slane %v522_v61, %v635_v47  ;;  %v756_v19 = vrot.slane %v522_v61, %v3271_v26  ;;  %v3328_v26 = vld [vmem:[%s4459_s2 + $0x3] ss:$0 sm:$0xff] }
  0xad   : > { %1129 = vbcast.lane.b32.xlu1 %v1123_v32, 264  ;;  %1125 = vbcast.lane.b32.xlu0 %v1123_v32, 256  ;;  %v3333_v32 = vld [vmem:[%s4459_s2 + $0x2] ss:$0 sm:$0xff] }
  0xb1   : > { %1238 = vbcast.lane.b32.xlu1 %v1232_v33, 264  ;;  %1234 = vbcast.lane.b32.xlu0 %v1232_v33, 256 }
  0xb5   : > { %1140 = vbcast.lane.b32.xlu1 %v1134_v34, 264  ;;  %1136 = vbcast.lane.b32.xlu0 %v1134_v34, 256 }
  0xb9   : > { %1249 = vbcast.lane.b32.xlu1 %v1243_v35, 264  ;;  %1245 = vbcast.lane.b32.xlu0 %v1243_v35, 256 }
  0xbd   : > { %1151 = vbcast.lane.b32.xlu1 %v1145_v38, 264  ;;  %1147 = vbcast.lane.b32.xlu0 %v1145_v38, 256 }
  0xc1   : > { %1260 = vbcast.lane.b32.xlu1 %v1254_v40, 264  ;;  %1256 = vbcast.lane.b32.xlu0 %v1254_v40, 256 }
  0xc5   : > { %1162 = vbcast.lane.b32.xlu1 %v1156_v42, 264  ;;  %1158 = vbcast.lane.b32.xlu0 %v1156_v42, 256 }
  0xc9   : > { %1271 = vbcast.lane.b32.xlu1 %v1265_v46, 264  ;;  %1267 = vbcast.lane.b32.xlu0 %v1265_v46, 256 }
  0xcd   : > { %1173 = vbcast.lane.b32.xlu1 %v1167_v51, 264  ;;  %1169 = vbcast.lane.b32.xlu0 %v1167_v51, 256 }
  0xd1   : > { %1282 = vbcast.lane.b32.xlu1 %v1276_v55, 264  ;;  %1278 = vbcast.lane.b32.xlu0 %v1276_v55, 256 }
  0xd5   : > { %1184 = vbcast.lane.b32.xlu1 %v1178_v60, 264  ;;  %1180 = vbcast.lane.b32.xlu0 %v1178_v60, 256 }
  0xd9   : > { %576 = vbcast.lane.b32.xlu1 %v570_v62, 264  ;;  %572 = vbcast.lane.b32.xlu0 %v570_v62, 256 }
  0xdd   : > { %685 = vbcast.lane.b32.xlu1 %v679_v63, 264  ;;  %681 = vbcast.lane.b32.xlu0 %v679_v63, 256 }
  0xe1   : > { %587 = vbcast.lane.b32.xlu1 %v581_v0, 264  ;;  %583 = vbcast.lane.b32.xlu0 %v581_v0, 256 }
  0xe5   : > { %696 = vbcast.lane.b32.xlu1 %v690_v1, 264  ;;  %692 = vbcast.lane.b32.xlu0 %v690_v1, 256 }
  0xe9   : > { %598 = vbcast.lane.b32.xlu1 %v592_v2, 264  ;;  %594 = vbcast.lane.b32.xlu0 %v592_v2, 256 }
  0xed   : > { %707 = vbcast.lane.b32.xlu1 %v701_v3, 264  ;;  %703 = vbcast.lane.b32.xlu0 %v701_v3, 256 }
  0xf1   : > { %609 = vbcast.lane.b32.xlu1 %v603_v4, 264  ;;  %605 = vbcast.lane.b32.xlu0 %v603_v4, 256 }
  0xf5   : > { %718 = vbcast.lane.b32.xlu1 %v712_v5, 264  ;;  %714 = vbcast.lane.b32.xlu0 %v712_v5, 256 }
  0xf9   : > { %620 = vbcast.lane.b32.xlu1 %v614_v6, 264  ;;  %616 = vbcast.lane.b32.xlu0 %v614_v6, 256 }
  0xfd   : > { %729 = vbcast.lane.b32.xlu1 %v723_v7, 264  ;;  %725 = vbcast.lane.b32.xlu0 %v723_v7, 256 }
 0x101   : > { %631 = vbcast.lane.b32.xlu1 %v625_v8, 264  ;;  %627 = vbcast.lane.b32.xlu0 %v625_v8, 256 }
 0x105   : > { %740 = vbcast.lane.b32.xlu1 %v734_v11, 264  ;;  %736 = vbcast.lane.b32.xlu0 %v734_v11, 256 }
 0x109   : > { %642 = vbcast.lane.b32.xlu1 %v636_v12, 264  ;;  %638 = vbcast.lane.b32.xlu0 %v636_v12, 256 }
 0x10d   : > { %751 = vbcast.lane.b32.xlu1 %v745_v13, 264  ;;  %747 = vbcast.lane.b32.xlu0 %v745_v13, 256 }
 0x10f   : > { %v1108_v14 = vpop.permute.xlu1 %1107  ;;  %v1104_v15 = vpop.permute.xlu0 %1103 }
 0x110   : > { %v1191_v35 = vmul.f32 %v3333_v32, %v1104_v15  ;;  %v1192_v42 = vmul.f32 %v3333_v32, %v1108_v14 }
 0x111   : > { %653 = vbcast.lane.b32.xlu1 %v647_v16, 264  ;;  %649 = vbcast.lane.b32.xlu0 %v647_v16, 256 }
 0x113   : > { %v1217_v17 = vpop.permute.xlu1 %1216  ;;  %v1213_v18 = vpop.permute.xlu0 %1212 }
 0x114   : > { %v1301_v37 = vmul.f32 %v3328_v26, %v1217_v17 }
 0x115   : > { %762 = vbcast.lane.b32.xlu1 %v756_v19, 264  ;;  %758 = vbcast.lane.b32.xlu0 %v756_v19, 256 }
 0x116   : > { %v1317_v45 = vadd.f32 %v1301_v37, %v1192_v42 }
 0x117   : > { %v1119_v20 = vpop.permute.xlu1 %1118  ;;  %v1115_v21 = vpop.permute.xlu0 %1114 }
 0x118   : > { %v1193_v44 = vmul.f32 %v3333_v32, %v1115_v21  ;;  %v1194_v52 = vmul.f32 %v3333_v32, %v1119_v20  ;;  %v3354_v54 = vadd.f32 %v3343_v43, %v1317_v45 }
 0x119   : > { %1293 = vbcast.lane.b32.xlu1 %v3278_v29, 264  ;;  %1289 = vbcast.lane.b32.xlu0 %v3278_v29, 256  ;;  %v1300_v29 = vmul.f32 %v3328_v26, %v1213_v18 }
 0x11a   : > { %v1358_v6 = vsel %vm824_vm0, %v3354_v54, 0.0 }
 0x11b   : > { %v1228_v22 = vpop.permute.xlu1 %1227  ;;  %v1224_v23 = vpop.permute.xlu0 %1223  ;;  %v1316_v38 = vadd.f32 %v1300_v29, %v1191_v35 }
 0x11c   : > { %v1302_v39 = vmul.f32 %v3328_v26, %v1224_v23  ;;  %v1303_v46 = vmul.f32 %v3328_v26, %v1228_v22 }
 0x11d   : > { %v3348_v50 = vadd.f32 %v3343_v43, %v1316_v38 }
 0x11e   : > { %v1318_v47 = vadd.f32 %v1302_v39, %v1193_v44  ;;  %v1319_v55 = vadd.f32 %v1303_v46, %v1194_v52 }
 0x11f   : > { %v1130_v24 = vpop.permute.xlu1 %1129  ;;  %v1126_v25 = vpop.permute.xlu0 %1125  ;;  %v1355_v59 = vsel %vm824_vm0, %v3348_v50, 0.0 }
 0x120   : > { %v1195_v53 = vmul.f32 %v3333_v32, %v1126_v25  ;;  %v3360_v60 = vadd.f32 %v3343_v43, %v1318_v47  ;;  %v1196_v63 = vmul.f32 %v3333_v32, %v1130_v24  ;;  %v3371_v7 = vadd.f32 %v3343_v43, %v1319_v55 }
 0x122   : > { %v1361_v5 = vsel %vm824_vm0, %v3360_v60, 0.0  ;;  %v1364_v19 = vsel %vm824_vm0, %v3371_v7, 0.0 }
 0x123   : > { %v1239_v27 = vpop.permute.xlu1 %1238  ;;  %v1235_v28 = vpop.permute.xlu0 %1234 }
 0x124   : > { %v1304_v51 = vmul.f32 %v3328_v26, %v1235_v28  ;;  %v1305_v56 = vmul.f32 %v3328_v26, %v1239_v27 }
 0x126   : > { %v1320_v61 = vadd.f32 %v1304_v51, %v1195_v53  ;;  %v1321_v2 = vadd.f32 %v1305_v56, %v1196_v63  ;;  %v3436_v63 = vld [vmem:[%s4459_s2] ss:$0 sm:$0xff] }
 0x127   : > { %v1141_v30 = vpop.permute.xlu1 %1140  ;;  %v1137_v31 = vpop.permute.xlu0 %1136 }
 0x128   : > { %v1197_v0 = vmul.f32 %v3333_v32, %v1137_v31  ;;  %v1198_v8 = vmul.f32 %v3333_v32, %v1141_v30  ;;  %v3376_v13 = vadd.f32 %v3343_v43, %v1320_v61  ;;  %v3383_v20 = vadd.f32 %v3343_v43, %v1321_v2 }
 0x12a   : > { %v1367_v23 = vsel %vm824_vm0, %v3376_v13, 0.0 }
 0x12b   : > { %v1250_v33 = vpop.permute.xlu1 %1249  ;;  %v1246_v34 = vpop.permute.xlu0 %1245 }
 0x12c   : > { %v1306_v62 = vmul.f32 %v3328_v26, %v1246_v34  ;;  %v1307_v1 = vmul.f32 %v3328_v26, %v1250_v33  ;;  %v1370_v34 = vsel %vm824_vm0, %v3383_v20, 0.0 }
 0x12e   : > { %v1322_v11 = vadd.f32 %v1306_v62, %v1197_v0  ;;  %v1323_v14 = vadd.f32 %v1307_v1, %v1198_v8  ;;  %v3441_v0 = vld [vmem:[%s4459_s2 + $0x1] ss:$0 sm:$0xff] }
 0x12f   : > { %v1152_v40 = vpop.permute.xlu1 %1151  ;;  %v1148_v41 = vpop.permute.xlu0 %1147 }
 0x130   : > { %v1199_v15 = vmul.f32 %v3333_v32, %v1148_v41  ;;  %v3389_v24 = vadd.f32 %v3343_v43, %v1322_v11  ;;  %v1200_v25 = vmul.f32 %v3333_v32, %v1152_v40  ;;  %v3394_v28 = vadd.f32 %v3343_v43, %v1323_v14  ;;  %v3457_v14 = vld [vmem:[%s4460_s3] ss:$0 sm:$0xff] }
 0x132   : > { %v1373_v38 = vsel %vm824_vm0, %v3389_v24, 0.0  ;;  %v1376_v42 = vsel %vm824_vm0, %v3394_v28, 0.0 }
 0x133   : > { %v1261_v48 = vpop.permute.xlu1 %1260  ;;  %v1257_v49 = vpop.permute.xlu0 %1256 }
 0x134   : > { %v1308_v12 = vmul.f32 %v3328_v26, %v1257_v49  ;;  %v1309_v16 = vmul.f32 %v3328_v26, %v1261_v48 }
 0x136   : > { %v1324_v21 = vadd.f32 %v1308_v12, %v1199_v15  ;;  %v1325_v30 = vadd.f32 %v1309_v16, %v1200_v25 }
 0x137   : > { %v1163_v57 = vpop.permute.xlu1 %1162  ;;  %v1159_v58 = vpop.permute.xlu0 %1158 }
 0x138   : > { %1356 = vadd.xlane.f32.xlu0 %v1355_v59  ;;  %v1201_v27 = vmul.f32 %v3333_v32, %v1159_v58  ;;  %v3403_v39 = vadd.f32 %v3343_v43, %v1324_v21  ;;  %v1202_v40 = vmul.f32 %v3333_v32, %v1163_v57  ;;  %v3415_v49 = vadd.f32 %v3343_v43, %v1325_v30 }
 0x13a   : > { %v1379_v51 = vsel %vm824_vm0, %v3403_v39, 0.0  ;;  %v1382_v58 = vsel %vm824_vm0, %v3415_v49, 0.0 }
 0x13b   : > { %v1272_v3 = vpop.permute.xlu1 %1271  ;;  %v1268_v4 = vpop.permute.xlu0 %1267 }
 0x13c   : > { %1362 = vadd.xlane.f32.xlu0 %v1361_v5  ;;  %v1310_v22 = vmul.f32 %v3328_v26, %v1268_v4  ;;  %v1311_v31 = vmul.f32 %v3328_v26, %v1272_v3 }
 0x13d   : > { %1359 = vadd.xlane.f32.xlu1 %v1358_v6 }
 0x13e   : > { %v1326_v35 = vadd.f32 %v1310_v22, %v1201_v27  ;;  %v1327_v44 = vadd.f32 %v1311_v31, %v1202_v40 }
 0x13f   : > { %v1174_v17 = vpop.permute.xlu1 %1173  ;;  %v1170_v18 = vpop.permute.xlu0 %1169 }
 0x140   : > { %1365 = vadd.xlane.f32.xlu0 %v1364_v19  ;;  %v1203_v41 = vmul.f32 %v3333_v32, %v1170_v18  ;;  %v3420_v52 = vadd.f32 %v3343_v43, %v1326_v35  ;;  %v1204_v53 = vmul.f32 %v3333_v32, %v1174_v17  ;;  %v3426_v59 = vadd.f32 %v3343_v43, %v1327_v44 }
 0x141   : > { %1368 = vadd.xlane.f32.xlu1 %v1367_v23 }
 0x142   : > { %v1385_v62 = vsel %vm824_vm0, %v3420_v52, 0.0  ;;  %v1388_v3 = vsel %vm824_vm0, %v3426_v59, 0.0 }
 0x143   : > { %v1283_v29 = vpop.permute.xlu1 %1282  ;;  %v1279_v33 = vpop.permute.xlu0 %1278 }
 0x144   : > { %v1312_v37 = vmul.f32 %v3328_v26, %v1279_v33  ;;  %1371 = vadd.xlane.f32.xlu0 %v1370_v34  ;;  %v1313_v45 = vmul.f32 %v3328_v26, %v1283_v29 }
 0x145   : > { %1374 = vadd.xlane.f32.xlu1 %v1373_v38 }
 0x146   : > { %v1328_v46 = vadd.f32 %v1312_v37, %v1203_v41  ;;  %v1329_v55 = vadd.f32 %v1313_v45, %v1204_v53 }
 0x147   : > { %v3410_v47 = vpop.permute.xlu1 %1184  ;;  %v3412_v48 = vpop.permute.xlu0 %1180 }
 0x148   : > { %1377 = vadd.xlane.f32.xlu0 %v1376_v42  ;;  %v3429_v61 = vadd.f32 %v3343_v43, %v1328_v46  ;;  %v3448_v5 = vadd.f32 %v3343_v43, %v1329_v55 }
 0x149   : > { %1380 = vadd.xlane.f32.xlu1 %v1379_v51 }
 0x14a   : > { %v1391_v4 = vsel %vm824_vm0, %v3429_v61, 0.0  ;;  %v1394_v19 = vsel %vm824_vm0, %v3448_v5, 0.0 }
 0x14b   : > { %v577_v56 = vpop.permute.xlu1 %576  ;;  %v573_v57 = vpop.permute.xlu0 %572 }
 0x14c   : > { %1383 = vadd.xlane.f32.xlu0 %v1382_v58  ;;  %v661_v6 = vmul.f32 %v3436_v63, %v577_v56  ;;  %v660_v8 = vmul.f32 %v3436_v63, %v573_v57 }
 0x14d   : > { %1386 = vadd.xlane.f32.xlu1 %v1385_v62 }
 0x14f   : > { %v686_v1 = vpop.permute.xlu1 %685  ;;  %v682_v2 = vpop.permute.xlu0 %681 }
 0x150   : > { %v770_v11 = vmul.f32 %v3441_v0, %v686_v1  ;;  %v769_v12 = vmul.f32 %v3441_v0, %v682_v2  ;;  %1389 = vadd.xlane.f32.xlu0 %v1388_v3 }
 0x151   : > { %1392 = vadd.xlane.f32.xlu1 %v1391_v4 }
 0x152   : > { %v786_v15 = vadd.f32 %v770_v11, %v661_v6  ;;  %v785_v16 = vadd.f32 %v769_v12, %v660_v8 }
 0x153   : > { %v588_v17 = vpop.permute.xlu1 %587  ;;  %v584_v18 = vpop.permute.xlu0 %583 }
 0x154   : > { %1395 = vadd.xlane.f32.xlu0 %v1394_v19  ;;  %v3462_v21 = vadd.f32 %v3457_v14, %v785_v16  ;;  %v3465_v22 = vadd.f32 %v3457_v14, %v786_v15  ;;  %v663_v31 = vmul.f32 %v3436_v63, %v588_v17  ;;  %v662_v29 = vmul.f32 %v3436_v63, %v584_v18 }
 0x156   : > { %v825_v23 = vsel %vm824_vm0, %v3462_v21, 0.0  ;;  %v828_v25 = vsel %vm824_vm0, %v3465_v22, 0.0 }
 0x157   : > { %v697_v27 = vpop.permute.xlu1 %696  ;;  %826 = vadd.xlane.f32.xlu1 %v825_v23  ;;  %v693_v30 = vpop.permute.xlu0 %692 }
 0x158   : > { %v772_v33 = vmul.f32 %v3441_v0, %v697_v27  ;;  %v771_v34 = vmul.f32 %v3441_v0, %v693_v30  ;;  %829 = vadd.xlane.f32.xlu0 %v828_v25 }
 0x15a   : > { %v788_v35 = vadd.f32 %v772_v33, %v663_v31  ;;  %v787_v37 = vadd.f32 %v771_v34, %v662_v29 }
 0x15b   : > { %v599_v38 = vpop.permute.xlu1 %598  ;;  %v595_v40 = vpop.permute.xlu0 %594 }
 0x15c   : > { %v3476_v41 = vadd.f32 %v3457_v14, %v788_v35  ;;  %v3479_v42 = vadd.f32 %v3457_v14, %v787_v37  ;;  %v665_v53 = vmul.f32 %v3436_v63, %v599_v38  ;;  %v664_v55 = vmul.f32 %v3436_v63, %v595_v40 }
 0x15e   : > { %v834_v44 = vsel %vm824_vm0, %v3476_v41, 0.0  ;;  %v831_v45 = vsel %vm824_vm0, %v3479_v42, 0.0 }
 0x15f   : > { %v708_v46 = vpop.permute.xlu1 %707  ;;  %835 = vadd.xlane.f32.xlu0 %v834_v44  ;;  %832 = vadd.xlane.f32.xlu1 %v831_v45  ;;  %v704_v51 = vpop.permute.xlu0 %703 }
 0x160   : > { %v774_v56 = vmul.f32 %v3441_v0, %v708_v46  ;;  %v773_v57 = vmul.f32 %v3441_v0, %v704_v51 }
 0x162   : > { %v790_v58 = vadd.f32 %v774_v56, %v665_v53  ;;  %v789_v62 = vadd.f32 %v773_v57, %v664_v55 }
 0x163   : > { %v610_v1 = vpop.permute.xlu1 %609  ;;  %v606_v2 = vpop.permute.xlu0 %605 }
 0x164   : > { %v3490_v3 = vadd.f32 %v3457_v14, %v790_v58  ;;  %v3493_v4 = vadd.f32 %v3457_v14, %v789_v62  ;;  %v667_v15 = vmul.f32 %v3436_v63, %v610_v1  ;;  %v666_v16 = vmul.f32 %v3436_v63, %v606_v2 }
 0x166   : > { %v840_v6 = vsel %vm824_vm0, %v3490_v3, 0.0  ;;  %v837_v8 = vsel %vm824_vm0, %v3493_v4, 0.0 }
 0x167   : > { %v719_v11 = vpop.permute.xlu1 %718  ;;  %841 = vadd.xlane.f32.xlu0 %v840_v6  ;;  %838 = vadd.xlane.f32.xlu1 %v837_v8  ;;  %v715_v12 = vpop.permute.xlu0 %714 }
 0x168   : > { %v776_v17 = vmul.f32 %v3441_v0, %v719_v11  ;;  %v775_v18 = vmul.f32 %v3441_v0, %v715_v12 }
 0x16a   : > { %v792_v19 = vadd.f32 %v776_v17, %v667_v15  ;;  %v791_v23 = vadd.f32 %v775_v18, %v666_v16 }
 0x16b   : > { %v621_v25 = vpop.permute.xlu1 %620  ;;  %v617_v27 = vpop.permute.xlu0 %616 }
 0x16c   : > { %v3504_v30 = vadd.f32 %v3457_v14, %v792_v19  ;;  %v3507_v31 = vadd.f32 %v3457_v14, %v791_v23  ;;  %v669_v37 = vmul.f32 %v3436_v63, %v621_v25  ;;  %v668_v38 = vmul.f32 %v3436_v63, %v617_v27 }
 0x16e   : > { %v846_v29 = vsel %vm824_vm0, %v3504_v30, 0.0  ;;  %v843_v33 = vsel %vm824_vm0, %v3507_v31, 0.0 }
 0x16f   : > { %v730_v34 = vpop.permute.xlu1 %729  ;;  %847 = vadd.xlane.f32.xlu0 %v846_v29  ;;  %844 = vadd.xlane.f32.xlu1 %v843_v33  ;;  %v726_v35 = vpop.permute.xlu0 %725 }
 0x170   : > { %v778_v40 = vmul.f32 %v3441_v0, %v730_v34  ;;  %v777_v44 = vmul.f32 %v3441_v0, %v726_v35 }
 0x172   : > { %v794_v45 = vadd.f32 %v778_v40, %v669_v37  ;;  %v793_v46 = vadd.f32 %v777_v44, %v668_v38 }
 0x173   : > { %v632_v51 = vpop.permute.xlu1 %631  ;;  %v628_v53 = vpop.permute.xlu0 %627 }
 0x174   : > { %v3518_v55 = vadd.f32 %v3457_v14, %v794_v45  ;;  %v3521_v56 = vadd.f32 %v3457_v14, %v793_v46  ;;  %v671_v2 = vmul.f32 %v3436_v63, %v632_v51  ;;  %v670_v6 = vmul.f32 %v3436_v63, %v628_v53 }
 0x176   : > { %v852_v57 = vsel %vm824_vm0, %v3518_v55, 0.0  ;;  %v849_v58 = vsel %vm824_vm0, %v3521_v56, 0.0 }
 0x177   : > { %v741_v62 = vpop.permute.xlu1 %740  ;;  %853 = vadd.xlane.f32.xlu0 %v852_v57  ;;  %850 = vadd.xlane.f32.xlu1 %v849_v58  ;;  %v737_v1 = vpop.permute.xlu0 %736 }
 0x178   : > { %v780_v8 = vmul.f32 %v3441_v0, %v741_v62  ;;  %v779_v11 = vmul.f32 %v3441_v0, %v737_v1 }
 0x17a   : > { %v796_v12 = vadd.f32 %v780_v8, %v671_v2  ;;  %v795_v15 = vadd.f32 %v779_v11, %v670_v6 }
 0x17b   : > { %v643_v16 = vpop.permute.xlu1 %642  ;;  %v639_v17 = vpop.permute.xlu0 %638 }
 0x17c   : > { %v3532_v18 = vadd.f32 %v3457_v14, %v796_v12  ;;  %v3535_v19 = vadd.f32 %v3457_v14, %v795_v15  ;;  %v673_v33 = vmul.f32 %v3436_v63, %v643_v16  ;;  %v672_v34 = vmul.f32 %v3436_v63, %v639_v17 }
 0x17d   : > { %v1206_v15 = vmul.f32 %v3333_v32, %v3410_v47  ;;  %v1205_v16 = vmul.f32 %v3333_v32, %v3412_v48 }
 0x17e   : > { %v858_v23 = vsel %vm824_vm0, %v3532_v18, 0.0  ;;  %v855_v25 = vsel %vm824_vm0, %v3535_v19, 0.0 }
 0x17f   : > { %v752_v27 = vpop.permute.xlu1 %751  ;;  %859 = vadd.xlane.f32.xlu0 %v858_v23  ;;  %856 = vadd.xlane.f32.xlu1 %v855_v25  ;;  %v748_v29 = vpop.permute.xlu0 %747 }
 0x180   : > { %v782_v35 = vmul.f32 %v3441_v0, %v752_v27  ;;  %v781_v37 = vmul.f32 %v3441_v0, %v748_v29 }
 0x182   : > { %v798_v38 = vadd.f32 %v782_v35, %v673_v33  ;;  %v797_v40 = vadd.f32 %v781_v37, %v672_v34 }
 0x183   : > { %v654_v44 = vpop.permute.xlu1 %653  ;;  %v650_v45 = vpop.permute.xlu0 %649 }
 0x184   : > { %v3546_v46 = vadd.f32 %v3457_v14, %v798_v38  ;;  %v3549_v51 = vadd.f32 %v3457_v14, %v797_v40  ;;  %v675_v1 = vmul.f32 %v3436_v63, %v654_v44  ;;  %v674_v2 = vmul.f32 %v3436_v63, %v650_v45 }
 0x186   : > { %v864_v53 = vsel %vm824_vm0, %v3546_v46, 0.0  ;;  %v861_v57 = vsel %vm824_vm0, %v3549_v51, 0.0 }
 0x187   : > { %v763_v58 = vpop.permute.xlu1 %762  ;;  %865 = vadd.xlane.f32.xlu0 %v864_v53  ;;  %862 = vadd.xlane.f32.xlu1 %v861_v57  ;;  %v759_v62 = vpop.permute.xlu0 %758 }
 0x188   : > { %v784_v6 = vmul.f32 %v3441_v0, %v763_v58  ;;  %v783_v8 = vmul.f32 %v3441_v0, %v759_v62 }
 0x18a   : > { %v800_v11 = vadd.f32 %v784_v6, %v675_v1  ;;  %v799_v12 = vadd.f32 %v783_v8, %v674_v2 }
 0x18b   : > { %v1294_v17 = vpop.permute.xlu1 %1293  ;;  %v1290_v23 = vpop.permute.xlu0 %1289 }
 0x18c   : > { %v1315_v25 = vmul.f32 %v3328_v26, %v1294_v17  ;;  %v1314_v27 = vmul.f32 %v3328_v26, %v1290_v23  ;;  %v3566_v63 = vadd.f32 %v3457_v14, %v800_v11  ;;  %v3569_v29 = vadd.f32 %v3457_v14, %v799_v12 }
 0x18e   : > { %v1331_v0 = vadd.f32 %v1315_v25, %v1206_v15  ;;  %v1330_v33 = vadd.f32 %v1314_v27, %v1205_v16  ;;  %v870_v47 = vsel %vm824_vm0, %v3566_v63, 0.0  ;;  %v867_v32 = vsel %vm824_vm0, %v3569_v29, 0.0 }
 0x18f   : > { %871 = vadd.xlane.f32.xlu0 %v870_v47  ;;  %868 = vadd.xlane.f32.xlu1 %v867_v32 }
 0x190   : > { %v3576_v48 = vadd.f32 %v3343_v43, %v1331_v0  ;;  %v3579_v26 = vadd.f32 %v3343_v43, %v1330_v33 }
 0x192   : > { %v1400_v14 = vsel %vm824_vm0, %v3576_v48, 0.0  ;;  %v1397_v34 = vsel %vm824_vm0, %v3579_v26, 0.0 }
 0x193   : > { %1401 = vadd.xlane.f32.xlu0 %v1400_v14  ;;  %1398 = vadd.xlane.f32.xlu1 %v1397_v34 }
 0x1c5   : > { %v1357_v35 = vpop.xlane.xlu0 %1356 }
 0x1c6   : > { %v1403_v37 = vmul.f32 0.03125, %v1357_v35 }
 0x1c8   : > { %v3586_v38 = vsub.f32 %v3348_v50, %v1403_v37 }
 0x1c9   : > { %v1363_v40 = vpop.xlane.xlu0 %1362 }
 0x1ca   : > { %v1405_v44 = vmul.f32 0.03125, %v1363_v40  ;;  %v1360_v45 = vpop.xlane.xlu1 %1359  ;;  %v1435_v43 = vmul.f32 %v3586_v38, %v3586_v38 }
 0x1cb   : > { %v1404_v53 = vmul.f32 0.03125, %v1360_v45 }
 0x1cc   : > { %v3591_v57 = vsub.f32 %v3360_v60, %v1405_v44  ;;  %v1451_v58 = vsel %vm824_vm0, %v1435_v43, 0.0 }
 0x1cd   : > { %v3595_v62 = vsub.f32 %v3354_v54, %v1404_v53  ;;  %1452 = vadd.xlane.f32.xlu1 %v1451_v58  ;;  %v1366_v1 = vpop.xlane.xlu0 %1365 }
 0x1ce   : > { %v1406_v2 = vmul.f32 0.03125, %v1366_v1  ;;  %v1369_v50 = vpop.xlane.xlu1 %1368  ;;  %v1437_v6 = vmul.f32 %v3591_v57, %v3591_v57 }
 0x1cf   : > { %v1407_v8 = vmul.f32 0.03125, %v1369_v50  ;;  %v1436_v11 = vmul.f32 %v3595_v62, %v3595_v62 }
 0x1d0   : > { %v3602_v12 = vsub.f32 %v3371_v7, %v1406_v2  ;;  %v1457_v60 = vsel %vm824_vm0, %v1437_v6, 0.0 }
 0x1d1   : > { %v3606_v15 = vsub.f32 %v3376_v13, %v1407_v8  ;;  %1458 = vadd.xlane.f32.xlu1 %v1457_v60  ;;  %v1372_v54 = vpop.xlane.xlu0 %1371  ;;  %v1454_v16 = vsel %vm824_vm0, %v1436_v11, 0.0 }
 0x1d2   : > { %v1408_v17 = vmul.f32 0.03125, %v1372_v54  ;;  %1455 = vadd.xlane.f32.xlu0 %v1454_v16  ;;  %v1375_v23 = vpop.xlane.xlu1 %1374  ;;  %v1438_v25 = vmul.f32 %v3602_v12, %v3602_v12 }
 0x1d3   : > { %v1409_v27 = vmul.f32 0.03125, %v1375_v23  ;;  %v1439_v7 = vmul.f32 %v3606_v15, %v3606_v15 }
 0x1d4   : > { %v3614_v0 = vsub.f32 %v3383_v20, %v1408_v17  ;;  %v1460_v13 = vsel %vm824_vm0, %v1438_v25, 0.0 }
 0x1d5   : > { %v3618_v33 = vsub.f32 %v3389_v24, %v1409_v27  ;;  %v1378_v47 = vpop.xlane.xlu0 %1377  ;;  %v1463_v32 = vsel %vm824_vm0, %v1439_v7, 0.0 }
 0x1d6   : > { %v1410_v14 = vmul.f32 0.03125, %v1378_v47  ;;  %v1381_v34 = vpop.xlane.xlu1 %1380  ;;  %1464 = vadd.xlane.f32.xlu1 %v1463_v32  ;;  %1461 = vadd.xlane.f32.xlu0 %v1460_v13  ;;  %v1440_v35 = vmul.f32 %v3614_v0, %v3614_v0 }
 0x1d7   : > { %v1411_v37 = vmul.f32 0.03125, %v1381_v34  ;;  %v1441_v20 = vmul.f32 %v3618_v33, %v3618_v33 }
 0x1d8   : > { %v3626_v40 = vsub.f32 %v3394_v28, %v1410_v14  ;;  %v1466_v24 = vsel %vm824_vm0, %v1440_v35, 0.0 }
 0x1d9   : > { %v3630_v44 = vsub.f32 %v3403_v39, %v1411_v37  ;;  %v1384_v45 = vpop.xlane.xlu0 %1383  ;;  %v1469_v43 = vsel %vm824_vm0, %v1441_v20, 0.0 }
 0x1da   : > { %v1412_v53 = vmul.f32 0.03125, %v1384_v45  ;;  %v1387_v58 = vpop.xlane.xlu1 %1386  ;;  %1470 = vadd.xlane.f32.xlu1 %v1469_v43  ;;  %1467 = vadd.xlane.f32.xlu0 %v1466_v24  ;;  %v1442_v1 = vmul.f32 %v3626_v40, %v3626_v40 }
 0x1db   : > { %v1413_v2 = vmul.f32 0.03125, %v1387_v58  ;;  %v1443_v28 = vmul.f32 %v3630_v44, %v3630_v44 }
 0x1dc   : > { %v3638_v50 = vsub.f32 %v3415_v49, %v1412_v53  ;;  %v1472_v39 = vsel %vm824_vm0, %v1442_v1, 0.0 }
 0x1dd   : > { %v3642_v6 = vsub.f32 %v3420_v52, %v1413_v2  ;;  %v1390_v8 = vpop.xlane.xlu0 %1389  ;;  %v1475_v11 = vsel %vm824_vm0, %v1443_v28, 0.0 }
 0x1de   : > { %v1414_v60 = vmul.f32 0.03125, %v1390_v8  ;;  %v1393_v54 = vpop.xlane.xlu1 %1392  ;;  %1476 = vadd.xlane.f32.xlu1 %v1475_v11  ;;  %1473 = vadd.xlane.f32.xlu0 %v1472_v39  ;;  %v1444_v16 = vmul.f32 %v3638_v50, %v3638_v50 }
 0x1df   : > { %v1415_v17 = vmul.f32 0.03125, %v1393_v54  ;;  %v1445_v49 = vmul.f32 %v3642_v6, %v3642_v6 }
 0x1e0   : > { %v3650_v23 = vsub.f32 %v3426_v59, %v1414_v60  ;;  %v1478_v52 = vsel %vm824_vm0, %v1444_v16, 0.0 }
 0x1e1   : > { %v3654_v25 = vsub.f32 %v3429_v61, %v1415_v17  ;;  %v1396_v27 = vpop.xlane.xlu0 %1395  ;;  %v1481_v7 = vsel %vm824_vm0, %v1445_v49, 0.0 }
 0x1e2   : > { %v1416_v13 = vmul.f32 0.03125, %v1396_v27  ;;  %1482 = vadd.xlane.f32.xlu1 %v1481_v7  ;;  %1479 = vadd.xlane.f32.xlu0 %v1478_v52  ;;  %v1446_v47 = vmul.f32 %v3650_v23, %v3650_v23 }
 0x1e3   : > { %v1447_v32 = vmul.f32 %v3654_v25, %v3654_v25 }
 0x1e4   : > { %v3662_v59 = vsub.f32 %v3448_v5, %v1416_v13  ;;  %v827_v14 = vpop.xlane.xlu1 %826  ;;  %v1484_v34 = vsel %vm824_vm0, %v1446_v47, 0.0  ;;  %v2993_v13 = vld [vmem:[%s4464_s7] sm:$0xff]  }
 0x1e5   : > { %v874_v61 = vmul.f32 0.03125, %v827_v14  ;;  %v830_v35 = vpop.xlane.xlu0 %829  ;;  %v1487_v37 = vsel %vm824_vm0, %v1447_v32, 0.0  ;;  %2885 = vmatprep.subr.bf16.mxu0 %v2993_v13  ;;  %2945 = vmatprep.subr.bf16.mxu1 %v2993_v13 }
 0x1e6   : > { %v875_v20 = vmul.f32 0.03125, %v830_v35  ;;  %1488 = vadd.xlane.f32.xlu1 %v1487_v37  ;;  %1485 = vadd.xlane.f32.xlu0 %v1484_v34  ;;  %v1448_v24 = vmul.f32 %v3662_v59, %v3662_v59 }
 0x1e7   : > { %v3669_v45 = vsub.f32 %v3462_v21, %v874_v61  ;;  %2886 = vmatpush3.bf16.msra.mxu0 %v2993_v13  ;;  %2947 = vmatpush3.bf16.msra.mxu1 %v2993_v13 }
 0x1e8   : > { %v3672_v43 = vsub.f32 %v3465_v22, %v875_v20  ;;  %v1490_v5 = vsel %vm824_vm0, %v1448_v24, 0.0 }
 0x1e9   : > { %v906_v53 = vmul.f32 %v3669_v45, %v3669_v45 }
 0x1ea   : > { %1491 = vadd.xlane.f32.xlu0 %v1490_v5  ;;  %v907_v58 = vmul.f32 %v3672_v43, %v3672_v43 }
 0x1eb   : > { %v922_v1 = vsel %vm824_vm0, %v906_v53, 0.0 }
 0x1ec   : > { %v833_v2 = vpop.xlane.xlu1 %832  ;;  %923 = vadd.xlane.f32.xlu1 %v922_v1  ;;  %v836_v28 = vpop.xlane.xlu0 %835  ;;  %v925_v21 = vsel %vm824_vm0, %v907_v58, 0.0 }
 0x1ed   : > { %v876_v39 = vmul.f32 0.03125, %v833_v2  ;;  %v877_v8 = vmul.f32 0.03125, %v836_v28 }
 0x1ee   : > { %926 = vadd.xlane.f32.xlu0 %v925_v21 }
 0x1ef   : > { %v3682_v22 = vsub.f32 %v3479_v42, %v876_v39  ;;  %v3685_v11 = vsub.f32 %v3476_v41, %v877_v8 }
 0x1f1   : > { %v908_v60 = vmul.f32 %v3682_v22, %v3682_v22  ;;  %v909_v54 = vmul.f32 %v3685_v11, %v3685_v11 }
 0x1f3   : > { %v928_v16 = vsel %vm824_vm0, %v908_v60, 0.0  ;;  %v931_v17 = vsel %vm824_vm0, %v909_v54, 0.0 }
 0x1f4   : > { %v839_v49 = vpop.xlane.xlu1 %838  ;;  %929 = vadd.xlane.f32.xlu1 %v928_v16  ;;  %932 = vadd.xlane.f32.xlu0 %v931_v17  ;;  %v842_v52 = vpop.xlane.xlu0 %841 }
 0x1f5   : > { %v878_v27 = vmul.f32 0.03125, %v839_v49  ;;  %v879_v42 = vmul.f32 0.03125, %v842_v52 }
 0x1f7   : > { %v3694_v7 = vsub.f32 %v3493_v4, %v878_v27  ;;  %v3697_v41 = vsub.f32 %v3490_v3, %v879_v42  ;;  %v2994_v3 = vld [vmem:[%s4464_s7 + $0x8] sm:$0xff]  }
 0x1f8   : > { %2887 = vmatprep.subr.bf16.mxu0 %v2994_v3  ;;  %2946 = vmatprep.subr.bf16.mxu1 %v2994_v3 }
 0x1f9   : > { %v910_v47 = vmul.f32 %v3694_v7, %v3694_v7  ;;  %v911_v32 = vmul.f32 %v3697_v41, %v3697_v41  ;;  %2888 = vmatpush3.bf16.msra.mxu0 %v2994_v3  ;;  %2948 = vmatpush3.bf16.msra.mxu1 %v2994_v3 }
 0x1fb   : > { %v934_v4 = vsel %vm824_vm0, %v910_v47, 0.0  ;;  %v937_v14 = vsel %vm824_vm0, %v911_v32, 0.0 }
 0x1fc   : > { %v845_v34 = vpop.xlane.xlu1 %844  ;;  %935 = vadd.xlane.f32.xlu1 %v934_v4  ;;  %938 = vadd.xlane.f32.xlu0 %v937_v14  ;;  %v848_v61 = vpop.xlane.xlu0 %847 }
 0x1fd   : > { %v880_v35 = vmul.f32 0.03125, %v845_v34  ;;  %v881_v37 = vmul.f32 0.03125, %v848_v61 }
 0x1ff   : > { %v3712_v20 = vsub.f32 %v3507_v31, %v880_v35  ;;  %v3715_v24 = vsub.f32 %v3504_v30, %v881_v37 }
 0x201   : > { %v912_v5 = vmul.f32 %v3712_v20, %v3712_v20  ;;  %v913_v53 = vmul.f32 %v3715_v24, %v3715_v24 }
 0x203   : > { %v940_v58 = vsel %vm824_vm0, %v912_v5, 0.0  ;;  %v943_v1 = vsel %vm824_vm0, %v913_v53, 0.0 }
 0x204   : > { %v851_v2 = vpop.xlane.xlu1 %850  ;;  %941 = vadd.xlane.f32.xlu1 %v940_v58  ;;  %944 = vadd.xlane.f32.xlu0 %v943_v1  ;;  %v854_v28 = vpop.xlane.xlu0 %853 }
 0x205   : > { %v882_v21 = vmul.f32 0.03125, %v851_v2  ;;  %v883_v31 = vmul.f32 0.03125, %v854_v28 }
 0x207   : > { %v3724_v39 = vsub.f32 %v3521_v56, %v882_v21  ;;  %v3727_v30 = vsub.f32 %v3518_v55, %v883_v31 }
 0x209   : > { %v914_v8 = vmul.f32 %v3724_v39, %v3724_v39  ;;  %v915_v60 = vmul.f32 %v3727_v30, %v3727_v30 }
 0x20b   : > { %v946_v54 = vsel %vm824_vm0, %v914_v8, 0.0  ;;  %v949_v16 = vsel %vm824_vm0, %v915_v60, 0.0 }
 0x20c   : > { %v857_v17 = vpop.xlane.xlu1 %856  ;;  %947 = vadd.xlane.f32.xlu1 %v946_v54  ;;  %950 = vadd.xlane.f32.xlu0 %v949_v16  ;;  %v860_v49 = vpop.xlane.xlu0 %859 }
 0x20d   : > { %v884_v52 = vmul.f32 0.03125, %v857_v17  ;;  %v885_v56 = vmul.f32 0.03125, %v860_v49 }
 0x20f   : > { %v3736_v27 = vsub.f32 %v3535_v19, %v884_v52  ;;  %v3739_v55 = vsub.f32 %v3532_v18, %v885_v56  ;;  %v3750_v18 = vld [vmem:[%s4463_s6] sm:$0xff]  }
 0x210   : > { %2905 = vmatprep.subr.bf16.mxu0 %v3750_v18 }
 0x211   : > { %v916_v42 = vmul.f32 %v3736_v27, %v3736_v27  ;;  %v917_v13 = vmul.f32 %v3739_v55, %v3739_v55 }
 0x213   : > { %v952_v47 = vsel %vm824_vm0, %v916_v42, 0.0  ;;  %v955_v32 = vsel %vm824_vm0, %v917_v13, 0.0 }
 0x214   : > { %v863_v4 = vpop.xlane.xlu1 %862  ;;  %953 = vadd.xlane.f32.xlu1 %v952_v47  ;;  %956 = vadd.xlane.f32.xlu0 %v955_v32  ;;  %v866_v14 = vpop.xlane.xlu0 %865 }
 0x215   : > { %v886_v3 = vmul.f32 0.03125, %v863_v4  ;;  %v887_v19 = vmul.f32 0.03125, %v866_v14 }
 0x217   : > { %v3753_v34 = vsub.f32 %v3549_v51, %v886_v3  ;;  %v3756_v61 = vsub.f32 %v3546_v46, %v887_v19 }
 0x219   : > { %v918_v35 = vmul.f32 %v3753_v34, %v3753_v34  ;;  %v919_v37 = vmul.f32 %v3756_v61, %v3756_v61 }
 0x21b   : > { %v958_v5 = vsel %vm824_vm0, %v918_v35, 0.0  ;;  %v961_v53 = vsel %vm824_vm0, %v919_v37, 0.0 }
 0x21c   : > { %v869_v58 = vpop.xlane.xlu1 %868  ;;  %959 = vadd.xlane.f32.xlu1 %v958_v5  ;;  %962 = vadd.xlane.f32.xlu0 %v961_v53  ;;  %v872_v51 = vpop.xlane.xlu0 %871 }
 0x21d   : > { %v888_v1 = vmul.f32 0.03125, %v869_v58  ;;  %v889_v2 = vmul.f32 0.03125, %v872_v51 }
 0x21f   : > { %v3766_v46 = vsub.f32 %v3569_v29, %v888_v1  ;;  %v3769_v28 = vsub.f32 %v3566_v63, %v889_v2 }
 0x220   : > { %v1399_v21 = vpop.xlane.xlu1 %1398  ;;  %v1402_v31 = vpop.xlane.xlu0 %1401 }
 0x221   : > { %v1417_v8 = vmul.f32 0.03125, %v1399_v21  ;;  %v1418_v60 = vmul.f32 0.03125, %v1402_v31  ;;  %v920_v54 = vmul.f32 %v3766_v46, %v3766_v46  ;;  %v921_v16 = vmul.f32 %v3769_v28, %v3769_v28 }
 0x223   : > { %v3776_v17 = vsub.f32 %v3579_v26, %v1417_v8  ;;  %v3779_v49 = vsub.f32 %v3576_v48, %v1418_v60  ;;  %v964_v29 = vsel %vm824_vm0, %v920_v54, 0.0  ;;  %v967_v63 = vsel %vm824_vm0, %v921_v16, 0.0 }
 0x224   : > { %965 = vadd.xlane.f32.xlu1 %v964_v29  ;;  %968 = vadd.xlane.f32.xlu0 %v967_v63  ;;  %v3792_v29 = vld [vmem:[%s4461_s4 + $0x1] ss:$0 sm:$0xff] }
 0x225   : > { %v1449_v52 = vmul.f32 %v3776_v17, %v3776_v17  ;;  %v1450_v56 = vmul.f32 %v3779_v49, %v3779_v49 }
 0x227   : > { %v1493_v42 = vsel %vm824_vm0, %v1449_v52, 0.0  ;;  %v1496_v26 = vsel %vm824_vm0, %v1450_v56, 0.0 }
 0x228   : > { %1494 = vadd.xlane.f32.xlu1 %v1493_v42  ;;  %1497 = vadd.xlane.f32.xlu0 %v1496_v26 }
 0x25a   : > { %v1453_v48 = vpop.xlane.xlu1 %1452 }
 0x25b   : > { %v1499_v13 = vmul.f32 0.03125, %v1453_v48 }
 0x25d   : > { %v1515_v47 = vadd.f32 1e-05, %v1499_v13 }
 0x25e   : > { %v1459_v32 = vpop.xlane.xlu1 %1458 }
 0x25f   : > { %2999 = vrsqrt.f32 %v1515_v47  ;;  %v1501_v4 = vmul.f32 0.03125, %v1459_v32  ;;  %v1456_v14 = vpop.xlane.xlu0 %1455 }
 0x260   : > { %v1500_v3 = vmul.f32 0.03125, %v1456_v14  ;;  %v3799_v14 = vld [vmem:[%s4462_s5 + $0x1] ss:$0 sm:$0xff] }
 0x261   : > { %v1517_v19 = vadd.f32 1e-05, %v1501_v4 }
 0x262   : > { %v1516_v35 = vadd.f32 1e-05, %v1500_v3 }
 0x263   : > { %3001 = vrsqrt.f32 %v1517_v19  ;;  %v1465_v37 = vpop.xlane.xlu1 %1464  ;;  %v1462_v5 = vpop.xlane.xlu0 %1461 }
 0x264   : > { %3003 = vrsqrt.f32 %v1516_v35  ;;  %v1503_v53 = vmul.f32 0.03125, %v1465_v37  ;;  %v1502_v58 = vmul.f32 0.03125, %v1462_v5 }
 0x266   : > { %v1519_v51 = vadd.f32 1e-05, %v1503_v53  ;;  %v1518_v1 = vadd.f32 1e-05, %v1502_v58 }
 0x267   : > { %v1471_v2 = vpop.xlane.xlu1 %1470  ;;  %v1468_v21 = vpop.xlane.xlu0 %1467 }
 0x268   : > { %3005 = vrsqrt.f32 %v1519_v51  ;;  %v1505_v31 = vmul.f32 0.03125, %v1471_v2  ;;  %v1504_v8 = vmul.f32 0.03125, %v1468_v21 }
 0x269   : > { %v3000_v60 = vpop.eup %2999  ;;  %3007 = vrsqrt.f32 %v1518_v1 }
 0x26a   : > { %v1521_v54 = vadd.f32 1e-05, %v1505_v31  ;;  %v1520_v16 = vadd.f32 1e-05, %v1504_v8  ;;  %v1547_v63 = vmul.f32 %v3000_v60, %v3586_v38 }
 0x26b   : > { %v1477_v52 = vpop.xlane.xlu1 %1476  ;;  %v1474_v56 = vpop.xlane.xlu0 %1473 }
 0x26c   : > { %3009 = vrsqrt.f32 %v1521_v54  ;;  %v1507_v42 = vmul.f32 0.03125, %v1477_v52  ;;  %v1506_v26 = vmul.f32 0.03125, %v1474_v56  ;;  %v1567_v13 = vmul.f32 %v3792_v29, %v1547_v63 }
 0x26d   : > { %v3002_v48 = vpop.eup %3001  ;;  %3011 = vrsqrt.f32 %v1520_v16 }
 0x26e   : > { %v3004_v47 = vpop.eup %3003  ;;  %v1523_v32 = vadd.f32 1e-05, %v1507_v42  ;;  %v1522_v4 = vadd.f32 1e-05, %v1506_v26  ;;  %v1549_v3 = vmul.f32 %v3002_v48, %v3591_v57  ;;  %v1587_v58 = vadd.f32 %v3799_v14, %v1567_v13 }
 0x26f   : > { %v1483_v38 = vpop.xlane.xlu1 %1482  ;;  %v1480_v19 = vpop.xlane.xlu0 %1479  ;;  %v1548_v35 = vmul.f32 %v3004_v47, %v3595_v62 }
 0x270   : > { %3013 = vrsqrt.f32 %v1523_v32  ;;  %v1509_v37 = vmul.f32 0.03125, %v1483_v38  ;;  %v1508_v5 = vmul.f32 0.03125, %v1480_v19  ;;  %v1569_v62 = vmul.f32 %v3792_v29, %v1549_v3 }
 0x271   : > { %3015 = vrsqrt.f32 %v1522_v4  ;;  %v1568_v53 = vmul.f32 %v3792_v29, %v1548_v35  ;;  %v1603_v52 = vmax.f32 %v1587_v58, 0.0 }
 0x272   : > { %v3006_v51 = vpop.eup %3005  ;;  %v1525_v1 = vadd.f32 1e-05, %v1509_v37  ;;  %v1524_v2 = vadd.f32 1e-05, %v1508_v5  ;;  %v1589_v3 = vadd.f32 %v3799_v14, %v1569_v62 }
 0x273   : > { %v3008_v21 = vpop.eup %3007  ;;  %v1551_v31 = vmul.f32 %v3006_v51, %v3606_v15  ;;  %v1489_v8 = vpop.xlane.xlu1 %1488  ;;  %v1588_v60 = vadd.f32 %v3799_v14, %v1568_v53 }
 0x274   : > { %v1486_v57 = vpop.xlane.xlu0 %1485  ;;  %v1550_v54 = vmul.f32 %v3008_v21, %v3602_v12  ;;  %3017 = vrsqrt.f32 %v1525_v1  ;;  %v1511_v16 = vmul.f32 0.03125, %v1489_v8 }
 0x275   : > { %v1510_v63 = vmul.f32 0.03125, %v1486_v57  ;;  %3019 = vrsqrt.f32 %v1524_v2  ;;  %v1604_v56 = vmax.f32 %v1588_v60, 0.0  ;;  %v1571_v12 = vmul.f32 %v3792_v29, %v1551_v31 }
 0x276   : > { %v3010_v42 = vpop.eup %3009  ;;  %v1527_v26 = vadd.f32 1e-05, %v1511_v16  ;;  %v1570_v13 = vmul.f32 %v3792_v29, %v1550_v54  ;;  %v1605_v31 = vmax.f32 %v1589_v3, 0.0 }
 0x277   : > { %v1526_v48 = vadd.f32 1e-05, %v1510_v63  ;;  %v3012_v15 = vpop.eup %3011  ;;  %v1553_v47 = vmul.f32 %v3010_v42, %v3618_v33  ;;  %v1619_v4 = vpack.c.bf16 %v1604_v56, %v1603_v52  ;;  %v2996_v52 = vld [vmem:[%s4463_s6 + $0x8] sm:$0xff]  }
 0x278   : > { %v1492_v32 = vpop.xlane.xlu0 %1491  ;;  %v1552_v38 = vmul.f32 %v3012_v15, %v3614_v0  ;;  %3021 = vrsqrt.f32 %v1527_v26  ;;  %v1590_v35 = vadd.f32 %v3799_v14, %v1570_v13  ;;  %v1591_v0 = vadd.f32 %v3799_v14, %v1571_v12 }
 0x279   : > { %v1512_v19 = vmul.f32 0.03125, %v1492_v32  ;;  %3023 = vrsqrt.f32 %v1526_v48  ;;  %v924_v37 = vpop.xlane.xlu1 %923  ;;  %2889 = vmatprep.mubr.msk.bf16.mxu0 %vm824_vm0, %v1619_v4  ;;  %v1573_v5 = vmul.f32 %v3792_v29, %v1553_v47 }
 0x27a   : > { %v3014_v53 = vpop.eup %3013  ;;  %v970_v58 = vmul.f32 0.03125, %v924_v37  ;;  %v1606_v51 = vmax.f32 %v1590_v35, 0.0  ;;  %v1572_v1 = vmul.f32 %v3792_v29, %v1552_v38  ;;  %v1607_v48 = vmax.f32 %v1591_v0, 0.0 }
 0x27b   : > { %v1528_v33 = vadd.f32 1e-05, %v1512_v19  ;;  %v3016_v2 = vpop.eup %3015  ;;  %v1555_v8 = vmul.f32 %v3014_v53, %v3630_v44  ;;  %v1593_v63 = vadd.f32 %v3799_v14, %v1573_v5 }
 0x27c   : > { %v927_v21 = vpop.xlane.xlu0 %926  ;;  %v1554_v57 = vmul.f32 %v3016_v2, %v3626_v40  ;;  %v986_v60 = vadd.f32 1e-05, %v970_v58  ;;  %v1620_v54 = vpack.c.bf16 %v1606_v51, %v1605_v31  ;;  %v1592_v16 = vadd.f32 %v3799_v14, %v1572_v1 }
 0x27d   : > { %3025 = vrsqrt.f32 %v1528_v33  ;;  %v971_v62 = vmul.f32 0.03125, %v927_v21  ;;  %v1575_v15 = vmul.f32 %v3792_v29, %v1555_v8  ;;  %v1609_v38 = vmax.f32 %v1593_v63, 0.0 }
 0x27e   : > { %v3018_v56 = vpop.eup %3017  ;;  %3027 = vrsqrt.f32 %v986_v60  ;;  %v1574_v26 = vmul.f32 %v3792_v29, %v1554_v57  ;;  %2890 = vmatmul.mubr.msk.bf16.vlgmr.msra.gmra.mrb[0].mxu0 %vm824_vm0, %v1620_v54  ;;  %v1608_v13 = vmax.f32 %v1592_v16, 0.0  ;;  %v3848_v54 = vld [vmem:[%s4461_s4] ss:$0 sm:$0xff] }
 0x27f   : > { %v987_v42 = vadd.f32 1e-05, %v971_v62  ;;  %v3020_v44 = vpop.eup %3019  ;;  %v1557_v40 = vmul.f32 %v3018_v56, %v3642_v6  ;;  %2906 = vmatpush3.bf16.msra.mxu0 %v3750_v18 }
 0x280   : > { %v1594_v47 = vadd.f32 %v3799_v14, %v1574_v26  ;;  %v1556_v32 = vmul.f32 %v3020_v44, %v3638_v50  ;;  %v1621_v3 = vpack.c.bf16 %v1608_v13, %v1607_v48  ;;  %2907 = vmatprep.subr.bf16.mxu0 %v2996_v52  ;;  %v1595_v50 = vadd.f32 %v3799_v14, %v1575_v15 }
 0x281   : > { %3029 = vrsqrt.f32 %v987_v42  ;;  %v930_v4 = vpop.xlane.xlu1 %929  ;;  %v933_v12 = vpop.xlane.xlu0 %932  ;;  %v1577_v19 = vmul.f32 %v3792_v29, %v1557_v40  ;;  %v3857_v40 = vld [vmem:[%s4462_s5] ss:$0 sm:$0xff] }
 0x282   : > { %v3022_v6 = vpop.eup %3021  ;;  %v972_v35 = vmul.f32 0.03125, %v930_v4  ;;  %v973_v37 = vmul.f32 0.03125, %v933_v12  ;;  %v1610_v5 = vmax.f32 %v1594_v47, 0.0  ;;  %v1576_v53 = vmul.f32 %v3792_v29, %v1556_v32  ;;  %2893 = vmatprep.mubr.msk.bf16.mxu0 %vm824_vm0, %v1621_v3 }
 0x283   : > { %v3024_v33 = vpop.eup %3023  ;;  %v1559_v58 = vmul.f32 %v3022_v6, %v3654_v25  ;;  %2908 = vmatpush3.bf16.msra.mxu0 %v2996_v52  ;;  %v1597_v25 = vadd.f32 %v3799_v14, %v1577_v19 }
 0x284   : > { %v1558_v18 = vmul.f32 %v3024_v33, %v3650_v23  ;;  %v988_v51 = vadd.f32 1e-05, %v972_v35  ;;  %v989_v1 = vadd.f32 1e-05, %v973_v37  ;;  %v1622_v2 = vpack.c.bf16 %v1610_v5, %v1609_v38 }
 0x285   : > { %v1596_v21 = vadd.f32 %v3799_v14, %v1576_v53  ;;  %v1579_v31 = vmul.f32 %v3792_v29, %v1559_v58  ;;  %v1611_v23 = vmax.f32 %v1595_v50, 0.0  ;;  %v1613_v15 = vmax.f32 %v1597_v25, 0.0 }
 0x286   : > { %3031 = vrsqrt.f32 %v988_v51  ;;  %v1578_v8 = vmul.f32 %v3792_v29, %v1558_v18  ;;  %2894 = vmatmul.mubr.msk.bf16.gmra.mrb[4].mxu0 %vm824_vm0, %v1622_v2 }
 0x287   : > { %v3026_v0 = vpop.eup %3025  ;;  %3033 = vrsqrt.f32 %v989_v1  ;;  %v1612_v60 = vmax.f32 %v1596_v21, 0.0  ;;  %v1599_v26 = vadd.f32 %v3799_v14, %v1579_v31 }
 0x288   : > { %v1560_v57 = vmul.f32 %v3026_v0, %v3662_v59  ;;  %v3028_v62 = vpop.eup %3027  ;;  %v1598_v16 = vadd.f32 %v3799_v14, %v1578_v8 }
 0x289   : > { %v1018_v63 = vmul.f32 %v3028_v62, %v3669_v45  ;;  %v936_v52 = vpop.xlane.xlu1 %935  ;;  %v1623_v56 = vpack.c.bf16 %v1612_v60, %v1611_v23  ;;  %v939_v42 = vpop.xlane.xlu0 %938  ;;  %v1615_v19 = vmax.f32 %v1599_v26, 0.0 }
 0x28a   : > { %v1580_v59 = vmul.f32 %v3792_v29, %v1560_v57  ;;  %v974_v48 = vmul.f32 0.03125, %v936_v52  ;;  %v975_v13 = vmul.f32 0.03125, %v939_v42  ;;  %v1614_v47 = vmax.f32 %v1598_v16, 0.0 }
 0x28b   : > { %v3030_v44 = vpop.eup %3029  ;;  %2897 = vmatprep.mubr.msk.bf16.mxu1 %vm824_vm0, %v1623_v56  ;;  %v1038_v4 = vmul.f32 %v3848_v54, %v1018_v63 }
 0x28c   : > { %v1019_v32 = vmul.f32 %v3030_v44, %v3672_v43  ;;  %v1600_v45 = vadd.f32 %v3799_v14, %v1580_v59  ;;  %v990_v3 = vadd.f32 1e-05, %v974_v48  ;;  %v991_v12 = vadd.f32 1e-05, %v975_v13 }
 0x28d   : > { %v1624_v38 = vpack.c.bf16 %v1614_v47, %v1613_v15  ;;  %v1058_v37 = vadd.f32 %v3857_v40, %v1038_v4 }
 0x28e   : > { %v1616_v6 = vmax.f32 %v1600_v45, 0.0  ;;  %v1039_v35 = vmul.f32 %v3848_v54, %v1019_v32  ;;  %3035 = vrsqrt.f32 %v990_v3 }
 0x28f   : > { %2898 = vmatmul.mubr.msk.bf16.vlgmr.msra.gmra.mrb[0].mxu1 %vm824_vm0, %v1624_v38  ;;  %3037 = vrsqrt.f32 %v991_v12  ;;  %v1074_v51 = vmax.f32 %v1058_v37, 0.0 }
 0x290   : > { %v1625_v43 = vpack.c.bf16 %v1616_v6, %v1615_v19  ;;  %v1059_v5 = vadd.f32 %v3857_v40, %v1039_v35  ;;  %v3032_v53 = vpop.eup %3031 }
 0x291   : > { %v3034_v33 = vpop.eup %3033  ;;  %v1020_v58 = vmul.f32 %v3032_v53, %v3682_v22  ;;  %v942_v50 = vpop.xlane.xlu1 %941 }
 0x292   : > { %2901 = vmatprep.mubr.msk.bf16.mxu1 %vm824_vm0, %v1625_v43  ;;  %v945_v18 = vpop.xlane.xlu0 %944  ;;  %v1075_v1 = vmax.f32 %v1059_v5, 0.0  ;;  %v1021_v2 = vmul.f32 %v3034_v33, %v3685_v11  ;;  %v976_v21 = vmul.f32 0.03125, %v942_v50 }
 0x293   : > { %v977_v31 = vmul.f32 0.03125, %v945_v18  ;;  %v1040_v0 = vmul.f32 %v3848_v54, %v1020_v58 }
 0x294   : > { %v1090_v8 = vpack.c.bf16 %v1075_v1, %v1074_v51  ;;  %v1041_v25 = vmul.f32 %v3848_v54, %v1021_v2  ;;  %v992_v57 = vadd.f32 1e-05, %v976_v21 }
 0x295   : > { %v993_v23 = vadd.f32 1e-05, %v977_v31  ;;  %v1060_v60 = vadd.f32 %v3857_v40, %v1040_v0 }
 0x296   : > { %2909 = vmatprep.mubr.msk.bf16.mxu0 %vm824_vm0, %v1090_v8  ;;  %v1061_v22 = vadd.f32 %v3857_v40, %v1041_v25  ;;  %3039 = vrsqrt.f32 %v992_v57 }
 0x297   : > { %v1076_v62 = vmax.f32 %v1060_v60, 0.0  ;;  %3041 = vrsqrt.f32 %v993_v23 }
 0x298   : > { %v3036_v16 = vpop.eup %3035  ;;  %v1077_v11 = vmax.f32 %v1061_v22, 0.0 }
 0x299   : > { %v3038_v63 = vpop.eup %3037  ;;  %v1022_v52 = vmul.f32 %v3036_v16, %v3694_v7  ;;  %v948_v56 = vpop.xlane.xlu1 %947 }
 0x29a   : > { %v951_v42 = vpop.xlane.xlu0 %950  ;;  %v1023_v59 = vmul.f32 %v3038_v63, %v3697_v41  ;;  %v978_v26 = vmul.f32 0.03125, %v948_v56  ;;  %v1091_v48 = vpack.c.bf16 %v1077_v11, %v1076_v62 }
 0x29b   : > { %v979_v44 = vmul.f32 0.03125, %v951_v42  ;;  %v1042_v13 = vmul.f32 %v3848_v54, %v1022_v52 }
 0x29c   : > { %v994_v15 = vadd.f32 1e-05, %v978_v26  ;;  %2910 = vmatmul.mubr.msk.bf16.vlgmr.msra.gmra.mrb[0].mxu0 %vm824_vm0, %v1091_v48  ;;  %v1043_v32 = vmul.f32 %v3848_v54, %v1023_v59 }
 0x29d   : > { %v995_v47 = vadd.f32 1e-05, %v979_v44  ;;  %v1062_v45 = vadd.f32 %v3857_v40, %v1042_v13 }
 0x29e   : > { %3043 = vrsqrt.f32 %v994_v15  ;;  %v1063_v7 = vadd.f32 %v3857_v40, %v1043_v32 }
 0x29f   : > { %3045 = vrsqrt.f32 %v995_v47  ;;  %v1078_v4 = vmax.f32 %v1062_v45, 0.0 }
 0x2a0   : > { %v3040_v3 = vpop.eup %3039  ;;  %v1079_v41 = vmax.f32 %v1063_v7, 0.0 }
 0x2a1   : > { %v3042_v12 = vpop.eup %3041  ;;  %v1024_v38 = vmul.f32 %v3040_v3, %v3712_v20  ;;  %v954_v19 = vpop.xlane.xlu1 %953 }
 0x2a2   : > { %v957_v6 = vpop.xlane.xlu0 %956  ;;  %v1025_v35 = vmul.f32 %v3042_v12, %v3715_v24  ;;  %v980_v37 = vmul.f32 0.03125, %v954_v19  ;;  %v1092_v5 = vpack.c.bf16 %v1079_v41, %v1078_v4 }
 0x2a3   : > { %v981_v43 = vmul.f32 0.03125, %v957_v6  ;;  %v1044_v53 = vmul.f32 %v3848_v54, %v1024_v38 }
 0x2a4   : > { %v996_v33 = vadd.f32 1e-05, %v980_v37  ;;  %2913 = vmatprep.mubr.msk.bf16.mxu0 %vm824_vm0, %v1092_v5  ;;  %v1045_v50 = vmul.f32 %v3848_v54, %v1025_v35 }
 0x2a5   : > { %v997_v58 = vadd.f32 1e-05, %v981_v43  ;;  %v1064_v18 = vadd.f32 %v3857_v40, %v1044_v53 }
 0x2a6   : > { %3047 = vrsqrt.f32 %v996_v33  ;;  %v1065_v20 = vadd.f32 %v3857_v40, %v1045_v50 }
 0x2a7   : > { %3049 = vrsqrt.f32 %v997_v58  ;;  %v1080_v51 = vmax.f32 %v1064_v18, 0.0 }
 0x2a8   : > { %v3044_v1 = vpop.eup %3043  ;;  %v1081_v24 = vmax.f32 %v1065_v20, 0.0 }
 0x2a9   : > { %v3046_v2 = vpop.eup %3045  ;;  %v1026_v21 = vmul.f32 %v3044_v1, %v3724_v39  ;;  %v960_v31 = vpop.xlane.xlu1 %959 }
 0x2aa   : > { %v963_v0 = vpop.xlane.xlu0 %962  ;;  %v1027_v8 = vmul.f32 %v3046_v2, %v3727_v30  ;;  %v982_v25 = vmul.f32 0.03125, %v960_v31  ;;  %v1093_v23 = vpack.c.bf16 %v1081_v24, %v1080_v51 }
 0x2ab   : > { %v983_v57 = vmul.f32 0.03125, %v963_v0  ;;  %v1046_v60 = vmul.f32 %v3848_v54, %v1026_v21 }
 0x2ac   : > { %v998_v22 = vadd.f32 1e-05, %v982_v25  ;;  %2914 = vmatmul.mubr.msk.bf16.gmra.mrb[4].mxu0 %vm824_vm0, %v1093_v23  ;;  %v1047_v16 = vmul.f32 %v3848_v54, %v1027_v8 }
 0x2ad   : > { %v999_v62 = vadd.f32 1e-05, %v983_v57  ;;  %v1066_v11 = vadd.f32 %v3857_v40, %v1046_v60 }
 0x2ae   : > { %3051 = vrsqrt.f32 %v998_v22  ;;  %v1067_v39 = vadd.f32 %v3857_v40, %v1047_v16 }
 0x2af   : > { %3053 = vrsqrt.f32 %v999_v62  ;;  %v1082_v63 = vmax.f32 %v1066_v11, 0.0 }
 0x2b0   : > { %v3048_v52 = vpop.eup %3047  ;;  %v1083_v30 = vmax.f32 %v1067_v39, 0.0 }
 0x2b1   : > { %v3050_v56 = vpop.eup %3049  ;;  %v1028_v42 = vmul.f32 %v3048_v52, %v3736_v27  ;;  %v966_v59 = vpop.xlane.xlu1 %965 }
 0x2b2   : > { %v969_v26 = vpop.xlane.xlu0 %968  ;;  %v1029_v44 = vmul.f32 %v3050_v56, %v3739_v55  ;;  %v984_v48 = vmul.f32 0.03125, %v966_v59  ;;  %v1094_v15 = vpack.c.bf16 %v1083_v30, %v1082_v63 }
 0x2b3   : > { %v985_v13 = vmul.f32 0.03125, %v969_v26  ;;  %v1048_v47 = vmul.f32 %v3848_v54, %v1028_v42 }
 0x2b4   : > { %v1000_v32 = vadd.f32 1e-05, %v984_v48  ;;  %2917 = vmatprep.mubr.msk.bf16.mxu0 %vm824_vm0, %v1094_v15  ;;  %v1049_v7 = vmul.f32 %v3848_v54, %v1029_v44 }
 0x2b5   : > { %v1001_v45 = vadd.f32 1e-05, %v985_v13  ;;  %v1495_v4 = vpop.xlane.xlu1 %1494  ;;  %v1068_v41 = vadd.f32 %v3857_v40, %v1048_v47 }
 0x2b6   : > { %v1498_v3 = vpop.xlane.xlu0 %1497  ;;  %3055 = vrsqrt.f32 %v1000_v32  ;;  %v1513_v27 = vmul.f32 0.03125, %v1495_v4  ;;  %v1069_v55 = vadd.f32 %v3857_v40, %v1049_v7 }
 0x2b7   : > { %v1514_v12 = vmul.f32 0.03125, %v1498_v3  ;;  %3057 = vrsqrt.f32 %v1001_v45  ;;  %v1084_v38 = vmax.f32 %v1068_v41, 0.0 }
 0x2b8   : > { %v3052_v19 = vpop.eup %3051  ;;  %v1529_v6 = vadd.f32 1e-05, %v1513_v27  ;;  %v1085_v37 = vmax.f32 %v1069_v55, 0.0 }
 0x2b9   : > { %v1530_v35 = vadd.f32 1e-05, %v1514_v12  ;;  %v3054_v43 = vpop.eup %3053  ;;  %v1030_v5 = vmul.f32 %v3052_v19, %v3753_v34 }
 0x2ba   : > { %v1031_v53 = vmul.f32 %v3054_v43, %v3756_v61  ;;  %3059 = vrsqrt.f32 %v1529_v6  ;;  %v1095_v33 = vpack.c.bf16 %v1085_v37, %v1084_v38 }
 0x2bb   : > { %3061 = vrsqrt.f32 %v1530_v35  ;;  %v1050_v58 = vmul.f32 %v3848_v54, %v1030_v5 }
 0x2bc   : > { %2918 = vmatmul.mubr.msk.bf16.gmra.mrb[8].mxu0 %vm824_vm0, %v1095_v33  ;;  %v1051_v50 = vmul.f32 %v3848_v54, %v1031_v53 }
 0x2bd   : > { %v1070_v18 = vadd.f32 %v3857_v40, %v1050_v58 }
 0x2be   : > { %v1071_v20 = vadd.f32 %v3857_v40, %v1051_v50 }
 0x2bf   : > { %v1086_v51 = vmax.f32 %v1070_v18, 0.0 }
 0x2c0   : > { %v3056_v1 = vpop.eup %3055  ;;  %v1087_v24 = vmax.f32 %v1071_v20, 0.0 }
 0x2c1   : > { %v3058_v2 = vpop.eup %3057  ;;  %v1032_v34 = vmul.f32 %v3056_v1, %v3766_v46 }
 0x2c2   : > { %v1033_v61 = vmul.f32 %v3058_v2, %v3769_v28  ;;  %v1096_v21 = vpack.c.bf16 %v1087_v24, %v1086_v51 }
 0x2c3   : > { %v1052_v31 = vmul.f32 %v3848_v54, %v1032_v34 }
 0x2c4   : > { %v3060_v0 = vpop.eup %3059  ;;  %2921 = vmatprep.mubr.msk.bf16.mxu0 %vm824_vm0, %v1096_v21  ;;  %v1053_v8 = vmul.f32 %v3848_v54, %v1033_v61 }
 0x2c5   : > { %v3062_v25 = vpop.eup %3061  ;;  %v1561_v57 = vmul.f32 %v3060_v0, %v3776_v17  ;;  %v1072_v23 = vadd.f32 %v3857_v40, %v1052_v31 }
 0x2c6   : > { %v1562_v60 = vmul.f32 %v3062_v25, %v3779_v49  ;;  %v1073_v22 = vadd.f32 %v3857_v40, %v1053_v8 }
 0x2c7   : > { %v1088_v46 = vmax.f32 %v1072_v23, 0.0  ;;  %v1581_v28 = vmul.f32 %v3792_v29, %v1561_v57 }
 0x2c8   : > { %v1089_v62 = vmax.f32 %v1073_v22, 0.0  ;;  %v1582_v16 = vmul.f32 %v3792_v29, %v1562_v60  ;;  %v3928_v29 = vld [vmem:[%s4465_s8] ss:$0 sm:$0xff] }
 0x2c9   : > { %v1601_v11 = vadd.f32 %v3799_v14, %v1581_v28 }
 0x2ca   : > { %v1097_v39 = vpack.c.bf16 %v1089_v62, %v1088_v46  ;;  %v1602_v54 = vadd.f32 %v3799_v14, %v1582_v16 }
 0x2cb   : > { %v1617_v63 = vmax.f32 %v1601_v11, 0.0 }
 0x2cc   : > { %2922 = vmatmul.mubr.msk.bf16.gmra.mrb[12].mxu0 %vm824_vm0, %v1097_v39  ;;  %v1618_v17 = vmax.f32 %v1602_v54, 0.0 }
 0x2ce   : > { %v1626_v52 = vpack.c.bf16 %v1618_v17, %v1617_v63 }
 0x2d0   : > { %2902 = vmatmul.mubr.msk.bf16.gmra.mrb[4].mxu1 %vm824_vm0, %v1626_v52 }
 0x362   : > { %v2899_v49 = vpop.f32.mrb[0].mxu1 }
 0x363   : > { %v1737_v40 = vpop.f32.mrb[1].mxu1 }
 0x364   : > { %v2900_v30 = vpop.f32.mrb[2].mxu1 }
 0x365   : > { %v1740_v56 = vpop.f32.mrb[3].mxu1 }
 0x36f   : > { %v2911_v42 = vpop.f32.mrb[0].mxu0 }
 0x370   : > { %v1838_v59 = vpop.f32.mrb[1].mxu0  ;;  %v3934_v48 = vadd.f32 %v2911_v42, %v3928_v29 }
 0x371   : > { %v3931_v14 = vadd.f32 %v3928_v29, %v1838_v59  ;;  %v2912_v26 = vpop.f32.mrb[2].mxu0 }
 0x372   : > { %v1841_v44 = vpop.f32.mrb[3].mxu0  ;;  %v3942_v47 = vadd.f32 %v2912_v26, %v3928_v29  ;;  %v1932_v45 = vsel %vm824_vm0, %v3934_v48, 0.0 }
 0x373   : > { %v3937_v13 = vadd.f32 %v3928_v29, %v1841_v44  ;;  %v1926_v15 = vsel %vm824_vm0, %v3931_v14, 0.0 }
 0x374   : > { %1927 = vadd.xlane.f32.xlu1 %v1926_v15  ;;  %v1935_v7 = vsel %vm824_vm0, %v3942_v47, 0.0 }
 0x375   : > { %v1929_v32 = vsel %vm824_vm0, %v3937_v13, 0.0 }
 0x376   : > { %1930 = vadd.xlane.f32.xlu0 %v1929_v32 }
 0x378   : > { %1933 = vadd.xlane.f32.xlu1 %v1932_v45 }
 0x37a   : > { %1936 = vadd.xlane.f32.xlu0 %v1935_v7 }
 0x37f   : > { %v2915_v4 = vpop.f32.mrb[4].mxu0 }
 0x380   : > { %v1854_v3 = vpop.f32.mrb[5].mxu0  ;;  %v3954_v55 = vadd.f32 %v2915_v4, %v3928_v29 }
 0x381   : > { %v3951_v41 = vadd.f32 %v3928_v29, %v1854_v3  ;;  %v2916_v27 = vpop.f32.mrb[6].mxu0 }
 0x382   : > { %v1857_v12 = vpop.f32.mrb[7].mxu0  ;;  %v3962_v6 = vadd.f32 %v2916_v27, %v3928_v29  ;;  %v1944_v37 = vsel %vm824_vm0, %v3954_v55, 0.0 }
 0x383   : > { %v3957_v38 = vadd.f32 %v3928_v29, %v1857_v12  ;;  %v1938_v19 = vsel %vm824_vm0, %v3951_v41, 0.0 }
 0x384   : > { %1939 = vadd.xlane.f32.xlu1 %v1938_v19  ;;  %v1947_v43 = vsel %vm824_vm0, %v3962_v6, 0.0 }
 0x385   : > { %v1941_v35 = vsel %vm824_vm0, %v3957_v38, 0.0 }
 0x386   : > { %1942 = vadd.xlane.f32.xlu0 %v1941_v35 }
 0x388   : > { %1945 = vadd.xlane.f32.xlu1 %v1944_v37 }
 0x38a   : > { %1948 = vadd.xlane.f32.xlu0 %v1947_v43 }
 0x38f   : > { %v2919_v5 = vpop.f32.mrb[8].mxu0 }
 0x390   : > { %v1879_v53 = vadd.f32 %v2919_v5, %v2899_v49  ;;  %v1870_v33 = vpop.f32.mrb[9].mxu0 }
 0x391   : > { %v1871_v58 = vadd.f32 %v1870_v33, %v1737_v40  ;;  %v2920_v50 = vpop.f32.mrb[10].mxu0 }
 0x392   : > { %v1882_v18 = vadd.f32 %v2920_v50, %v2900_v30  ;;  %v1873_v20 = vpop.f32.mrb[11].mxu0  ;;  %v3974_v24 = vadd.f32 %v3928_v29, %v1879_v53 }
 0x393   : > { %v3971_v51 = vadd.f32 %v3928_v29, %v1871_v58  ;;  %v1874_v1 = vadd.f32 %v1873_v20, %v1740_v56 }
 0x394   : > { %v3982_v61 = vadd.f32 %v3928_v29, %v1882_v18  ;;  %v1956_v31 = vsel %vm824_vm0, %v3974_v24, 0.0 }
 0x395   : > { %v3977_v2 = vadd.f32 %v3928_v29, %v1874_v1  ;;  %v1950_v34 = vsel %vm824_vm0, %v3971_v51, 0.0 }
 0x396   : > { %1951 = vadd.xlane.f32.xlu1 %v1950_v34  ;;  %v1959_v0 = vsel %vm824_vm0, %v3982_v61, 0.0 }
 0x397   : > { %v1953_v21 = vsel %vm824_vm0, %v3977_v2, 0.0 }
 0x398   : > { %1954 = vadd.xlane.f32.xlu0 %v1953_v21 }
 0x39a   : > { %1957 = vadd.xlane.f32.xlu1 %v1956_v31 }
 0x39c   : > { %1960 = vadd.xlane.f32.xlu0 %v1959_v0 }
 0x39f   : > { %v2923_v8 = vpop.f32.mrb[12].mxu0 }
 0x3a0   : > { %v1886_v25 = vpop.f32.mrb[13].mxu0 }
 0x3a1   : > { %v2924_v57 = vpop.f32.mrb[14].mxu0 }
 0x3a2   : > { %v1889_v23 = vpop.f32.mrb[15].mxu0 }
 0x3a3   : > { %v2903_v60 = vpop.f32.mrb[4].mxu1 }
 0x3a4   : > { %v1895_v22 = vadd.f32 %v2923_v8, %v2903_v60  ;;  %v1753_v46 = vpop.f32.mrb[5].mxu1 }
 0x3a5   : > { %v1887_v28 = vadd.f32 %v1886_v25, %v1753_v46  ;;  %v2904_v62 = vpop.f32.mrb[6].mxu1 }
 0x3a6   : > { %v1898_v16 = vadd.f32 %v2924_v57, %v2904_v62  ;;  %v1756_v11 = vpop.f32.mrb[7].mxu1  ;;  %v3994_v63 = vadd.f32 %v3928_v29, %v1895_v22 }
 0x3a7   : > { %v3991_v39 = vadd.f32 %v3928_v29, %v1887_v28  ;;  %v1890_v54 = vadd.f32 %v1889_v23, %v1756_v11 }
 0x3a8   : > { %v4002_v49 = vadd.f32 %v3928_v29, %v1898_v16  ;;  %v1968_v30 = vsel %vm824_vm0, %v3994_v63, 0.0 }
 0x3a9   : > { %v3997_v17 = vadd.f32 %v3928_v29, %v1890_v54  ;;  %v1962_v52 = vsel %vm824_vm0, %v3991_v39, 0.0 }
 0x3aa   : > { %1963 = vadd.xlane.f32.xlu1 %v1962_v52  ;;  %v1971_v56 = vsel %vm824_vm0, %v4002_v49, 0.0 }
 0x3ab   : > { %v1965_v40 = vsel %vm824_vm0, %v3997_v17, 0.0 }
 0x3ac   : > { %1966 = vadd.xlane.f32.xlu0 %v1965_v40 }
 0x3ae   : > { %1969 = vadd.xlane.f32.xlu1 %v1968_v30 }
 0x3b0   : > { %1972 = vadd.xlane.f32.xlu0 %v1971_v56 }
 0x401   : > { %v1928_v42 = vpop.xlane.xlu1 %1927 }
 0x402   : > { %v1974_v59 = vmul.f32 0.03125, %v1928_v42 }
 0x403   : > { %v1931_v26 = vpop.xlane.xlu0 %1930 }
 0x404   : > { %v4011_v44 = vsub.f32 %v3931_v14, %v1974_v59  ;;  %v1975_v29 = vmul.f32 0.03125, %v1931_v26 }
 0x405   : > { %v1934_v15 = vpop.xlane.xlu1 %1933 }
 0x406   : > { %v4014_v32 = vsub.f32 %v3937_v13, %v1975_v29  ;;  %v1976_v45 = vmul.f32 0.03125, %v1934_v15  ;;  %v2006_v7 = vmul.f32 %v4011_v44, %v4011_v44  ;;  %v2997_v29 = vld [vmem:[%s4468_s11] sm:$0xff]  }
 0x407   : > { %v1937_v4 = vpop.xlane.xlu0 %1936  ;;  %2925 = vmatprep.subr.bf16.mxu1 %v2997_v29 }
 0x408   : > { %v4019_v3 = vsub.f32 %v3934_v48, %v1976_v45  ;;  %v1977_v27 = vmul.f32 0.03125, %v1937_v4  ;;  %v2022_v12 = vsel %vm824_vm0, %v2006_v7, 0.0  ;;  %v2007_v14 = vmul.f32 %v4014_v32, %v4014_v32  ;;  %2926 = vmatpush3.bf16.msra.mxu1 %v2997_v29 }
 0x409   : > { %2023 = vadd.xlane.f32.xlu1 %v2022_v12 }
 0x40a   : > { %v4025_v19 = vsub.f32 %v3942_v47, %v1977_v27  ;;  %v2025_v13 = vsel %vm824_vm0, %v2007_v14, 0.0  ;;  %v2008_v35 = vmul.f32 %v4019_v3, %v4019_v3 }
 0x40b   : > { %2026 = vadd.xlane.f32.xlu0 %v2025_v13 }
 0x40c   : > { %v2028_v37 = vsel %vm824_vm0, %v2008_v35, 0.0  ;;  %v2009_v48 = vmul.f32 %v4025_v19, %v4025_v19 }
 0x40d   : > { %2029 = vadd.xlane.f32.xlu1 %v2028_v37 }
 0x40e   : > { %v2031_v43 = vsel %vm824_vm0, %v2009_v48, 0.0 }
 0x40f   : > { %2032 = vadd.xlane.f32.xlu0 %v2031_v43 }
 0x411   : > { %v1940_v5 = vpop.xlane.xlu1 %1939 }
 0x412   : > { %v1978_v53 = vmul.f32 0.03125, %v1940_v5 }
 0x413   : > { %v1943_v33 = vpop.xlane.xlu0 %1942 }
 0x414   : > { %v4035_v47 = vsub.f32 %v3951_v41, %v1978_v53  ;;  %v1979_v58 = vmul.f32 0.03125, %v1943_v33 }
 0x415   : > { %v1946_v50 = vpop.xlane.xlu1 %1945 }
 0x416   : > { %v4038_v18 = vsub.f32 %v3957_v38, %v1979_v58  ;;  %v1980_v20 = vmul.f32 0.03125, %v1946_v50  ;;  %v2010_v1 = vmul.f32 %v4035_v47, %v4035_v47 }
 0x417   : > { %v1949_v34 = vpop.xlane.xlu0 %1948 }
 0x418   : > { %v4043_v21 = vsub.f32 %v3954_v55, %v1980_v20  ;;  %v1981_v31 = vmul.f32 0.03125, %v1949_v34  ;;  %v2034_v0 = vsel %vm824_vm0, %v2010_v1, 0.0  ;;  %v2011_v41 = vmul.f32 %v4038_v18, %v4038_v18 }
 0x419   : > { %2035 = vadd.xlane.f32.xlu1 %v2034_v0 }
 0x41a   : > { %v4049_v8 = vsub.f32 %v3962_v6, %v1981_v31  ;;  %v2037_v38 = vsel %vm824_vm0, %v2011_v41, 0.0  ;;  %v2012_v25 = vmul.f32 %v4043_v21, %v4043_v21 }
 0x41b   : > { %2038 = vadd.xlane.f32.xlu0 %v2037_v38 }
 0x41c   : > { %v2040_v57 = vsel %vm824_vm0, %v2012_v25, 0.0  ;;  %v2013_v55 = vmul.f32 %v4049_v8, %v4049_v8 }
 0x41d   : > { %2041 = vadd.xlane.f32.xlu1 %v2040_v57 }
 0x41e   : > { %v2043_v23 = vsel %vm824_vm0, %v2013_v55, 0.0 }
 0x41f   : > { %2044 = vadd.xlane.f32.xlu0 %v2043_v23 }
 0x423   : > { %v1952_v60 = vpop.xlane.xlu1 %1951 }
 0x424   : > { %v1982_v22 = vmul.f32 0.03125, %v1952_v60 }
 0x425   : > { %v1955_v46 = vpop.xlane.xlu0 %1954 }
 0x426   : > { %v4059_v6 = vsub.f32 %v3971_v51, %v1982_v22  ;;  %v1983_v28 = vmul.f32 0.03125, %v1955_v46  ;;  %v4115_v46 = vld [vmem:[%s4466_s9] ss:$0 sm:$0xff] }
 0x427   : > { %v1958_v62 = vpop.xlane.xlu1 %1957 }
 0x428   : > { %v4062_v16 = vsub.f32 %v3977_v2, %v1983_v28  ;;  %v1984_v11 = vmul.f32 0.03125, %v1958_v62  ;;  %v2014_v54 = vmul.f32 %v4059_v6, %v4059_v6 }
 0x429   : > { %v1961_v52 = vpop.xlane.xlu0 %1960 }
 0x42a   : > { %v4067_v40 = vsub.f32 %v3974_v24, %v1984_v11  ;;  %v1985_v30 = vmul.f32 0.03125, %v1961_v52  ;;  %v2046_v56 = vsel %vm824_vm0, %v2014_v54, 0.0  ;;  %v2015_v51 = vmul.f32 %v4062_v16, %v4062_v16  ;;  %v4121_v54 = vld [vmem:[%s4467_s10] ss:$0 sm:$0xff] }
 0x42b   : > { %2047 = vadd.xlane.f32.xlu1 %v2046_v56 }
 0x42c   : > { %v4073_v42 = vsub.f32 %v3982_v61, %v1985_v30  ;;  %v2049_v2 = vsel %vm824_vm0, %v2015_v51, 0.0  ;;  %v2016_v59 = vmul.f32 %v4067_v40, %v4067_v40  ;;  %v2998_v61 = vld [vmem:[%s4468_s11 + $0x8] sm:$0xff]  }
 0x42d   : > { %2050 = vadd.xlane.f32.xlu0 %v2049_v2  ;;  %2927 = vmatprep.subr.bf16.mxu1 %v2998_v61 }
 0x42e   : > { %v2052_v26 = vsel %vm824_vm0, %v2016_v59, 0.0  ;;  %v2017_v24 = vmul.f32 %v4073_v42, %v4073_v42  ;;  %2928 = vmatpush3.bf16.msra.mxu1 %v2998_v61 }
 0x42f   : > { %2053 = vadd.xlane.f32.xlu1 %v2052_v26 }
 0x430   : > { %v2055_v15 = vsel %vm824_vm0, %v2017_v24, 0.0 }
 0x431   : > { %2056 = vadd.xlane.f32.xlu0 %v2055_v15 }
 0x437   : > { %v1964_v45 = vpop.xlane.xlu1 %1963 }
 0x438   : > { %v1986_v7 = vmul.f32 0.03125, %v1964_v45 }
 0x439   : > { %v1967_v4 = vpop.xlane.xlu0 %1966 }
 0x43a   : > { %v4089_v27 = vsub.f32 %v3991_v39, %v1986_v7  ;;  %v1987_v12 = vmul.f32 0.03125, %v1967_v4 }
 0x43b   : > { %v1970_v14 = vpop.xlane.xlu1 %1969 }
 0x43c   : > { %v4092_v13 = vsub.f32 %v3997_v17, %v1987_v12  ;;  %v1988_v35 = vmul.f32 0.03125, %v1970_v14  ;;  %v2018_v37 = vmul.f32 %v4089_v27, %v4089_v27 }
 0x43d   : > { %v1973_v48 = vpop.xlane.xlu0 %1972 }
 0x43e   : > { %v4097_v43 = vsub.f32 %v3994_v63, %v1988_v35  ;;  %v1989_v5 = vmul.f32 0.03125, %v1973_v48  ;;  %v2058_v53 = vsel %vm824_vm0, %v2018_v37, 0.0  ;;  %v2019_v39 = vmul.f32 %v4092_v13, %v4092_v13 }
 0x43f   : > { %2059 = vadd.xlane.f32.xlu1 %v2058_v53 }
 0x440   : > { %v4103_v33 = vsub.f32 %v4002_v49, %v1989_v5  ;;  %v2061_v17 = vsel %vm824_vm0, %v2019_v39, 0.0  ;;  %v2020_v58 = vmul.f32 %v4097_v43, %v4097_v43 }
 0x441   : > { %2062 = vadd.xlane.f32.xlu0 %v2061_v17 }
 0x442   : > { %v2064_v50 = vsel %vm824_vm0, %v2020_v58, 0.0  ;;  %v2021_v63 = vmul.f32 %v4103_v33, %v4103_v33 }
 0x443   : > { %2065 = vadd.xlane.f32.xlu1 %v2064_v50 }
 0x444   : > { %v2067_v20 = vsel %vm824_vm0, %v2021_v63, 0.0 }
 0x445   : > { %2068 = vadd.xlane.f32.xlu0 %v2067_v20 }
 0x496   : > { %v2024_v1 = vpop.xlane.xlu1 %2023 }
 0x497   : > { %v2070_v34 = vmul.f32 0.03125, %v2024_v1 }
 0x498   : > { %v2027_v31 = vpop.xlane.xlu0 %2026 }
 0x499   : > { %v2086_v49 = vadd.f32 1e-05, %v2070_v34  ;;  %v2071_v0 = vmul.f32 0.03125, %v2027_v31 }
 0x49a   : > { %v2030_v41 = vpop.xlane.xlu1 %2029 }
 0x49b   : > { %3063 = vrsqrt.f32 %v2086_v49  ;;  %v2087_v38 = vadd.f32 1e-05, %v2071_v0  ;;  %v2072_v25 = vmul.f32 0.03125, %v2030_v41 }
 0x49c   : > { %v2033_v57 = vpop.xlane.xlu0 %2032 }
 0x49d   : > { %3065 = vrsqrt.f32 %v2087_v38  ;;  %v2088_v55 = vadd.f32 1e-05, %v2072_v25  ;;  %v2073_v23 = vmul.f32 0.03125, %v2033_v57 }
 0x49f   : > { %3067 = vrsqrt.f32 %v2088_v55  ;;  %v2089_v60 = vadd.f32 1e-05, %v2073_v23 }
 0x4a1   : > { %3069 = vrsqrt.f32 %v2089_v60 }
 0x4a5   : > { %v3064_v22 = vpop.eup %3063 }
 0x4a6   : > { %v2118_v28 = vmul.f32 %v3064_v22, %v4011_v44  ;;  %v2036_v62 = vpop.xlane.xlu1 %2035 }
 0x4a7   : > { %v3066_v11 = vpop.eup %3065  ;;  %v2074_v52 = vmul.f32 0.03125, %v2036_v62 }
 0x4a8   : > { %v2119_v30 = vmul.f32 %v3066_v11, %v4014_v32  ;;  %v2039_v56 = vpop.xlane.xlu0 %2038  ;;  %v2138_v51 = vmul.f32 %v4115_v46, %v2118_v28 }
 0x4a9   : > { %v3068_v2 = vpop.eup %3067  ;;  %v2090_v59 = vadd.f32 1e-05, %v2074_v52  ;;  %v2075_v26 = vmul.f32 0.03125, %v2039_v56 }
 0x4aa   : > { %v2120_v24 = vmul.f32 %v3068_v2, %v4019_v3  ;;  %v2042_v29 = vpop.xlane.xlu1 %2041  ;;  %v2139_v44 = vmul.f32 %v4115_v46, %v2119_v30  ;;  %v2158_v15 = vadd.f32 %v4121_v54, %v2138_v51 }
 0x4ab   : > { %v3070_v61 = vpop.eup %3069  ;;  %3071 = vrsqrt.f32 %v2090_v59  ;;  %v2091_v45 = vadd.f32 1e-05, %v2075_v26  ;;  %v2076_v7 = vmul.f32 0.03125, %v2042_v29 }
 0x4ac   : > { %v2140_v4 = vmul.f32 %v4115_v46, %v2120_v24  ;;  %v2121_v32 = vmul.f32 %v3070_v61, %v4025_v19  ;;  %v2045_v12 = vpop.xlane.xlu0 %2044  ;;  %v2159_v14 = vadd.f32 %v4121_v54, %v2139_v44  ;;  %v2174_v5 = vmax.f32 %v2158_v15, 0.0 }
 0x4ad   : > { %3073 = vrsqrt.f32 %v2091_v45  ;;  %v2092_v35 = vadd.f32 1e-05, %v2076_v7  ;;  %v2077_v37 = vmul.f32 0.03125, %v2045_v12 }
 0x4ae   : > { %v2160_v3 = vadd.f32 %v4121_v54, %v2140_v4  ;;  %v2141_v48 = vmul.f32 %v4115_v46, %v2121_v32  ;;  %v2175_v53 = vmax.f32 %v2159_v14, 0.0 }
 0x4af   : > { %3075 = vrsqrt.f32 %v2092_v35  ;;  %v2093_v39 = vadd.f32 1e-05, %v2077_v37 }
 0x4b0   : > { %v2161_v17 = vadd.f32 %v4121_v54, %v2141_v48  ;;  %v2190_v58 = vpack.c.bf16 %v2175_v53, %v2174_v5  ;;  %v2176_v50 = vmax.f32 %v2160_v3, 0.0 }
 0x4b1   : > { %3077 = vrsqrt.f32 %v2093_v39 }
 0x4b2   : > { %v2177_v19 = vmax.f32 %v2161_v17, 0.0  ;;  %2929 = vmatprep.mubr.msk.bf16.mxu1 %vm824_vm0, %v2190_v58 }
 0x4b4   : > { %v2191_v63 = vpack.c.bf16 %v2177_v19, %v2176_v50 }
 0x4b5   : > { %v3072_v20 = vpop.eup %3071 }
 0x4b6   : > { %v2122_v1 = vmul.f32 %v3072_v20, %v4035_v47  ;;  %2930 = vmatmul.mubr.msk.bf16.vlgmr.msra.gmra.mrb[8].mxu1 %vm824_vm0, %v2191_v63 }
 0x4b7   : > { %v3074_v34 = vpop.eup %3073 }
 0x4b8   : > { %v2123_v31 = vmul.f32 %v3074_v34, %v4038_v18  ;;  %v2048_v49 = vpop.xlane.xlu1 %2047  ;;  %v2142_v0 = vmul.f32 %v4115_v46, %v2122_v1 }
 0x4b9   : > { %v3076_v41 = vpop.eup %3075  ;;  %v2078_v38 = vmul.f32 0.03125, %v2048_v49 }
 0x4ba   : > { %v2124_v25 = vmul.f32 %v3076_v41, %v4043_v21  ;;  %v2051_v57 = vpop.xlane.xlu0 %2050  ;;  %v2143_v55 = vmul.f32 %v4115_v46, %v2123_v31  ;;  %v2162_v23 = vadd.f32 %v4121_v54, %v2142_v0 }
 0x4bb   : > { %v3078_v60 = vpop.eup %3077  ;;  %v2094_v22 = vadd.f32 1e-05, %v2078_v38  ;;  %v2079_v47 = vmul.f32 0.03125, %v2051_v57 }
 0x4bc   : > { %v2125_v28 = vmul.f32 %v3078_v60, %v4049_v8  ;;  %v2054_v62 = vpop.xlane.xlu1 %2053  ;;  %v2163_v18 = vadd.f32 %v4121_v54, %v2143_v55  ;;  %v2144_v11 = vmul.f32 %v4115_v46, %v2124_v25  ;;  %v2178_v21 = vmax.f32 %v2162_v23, 0.0 }
 0x4bd   : > { %3079 = vrsqrt.f32 %v2094_v22  ;;  %v2095_v52 = vadd.f32 1e-05, %v2079_v47  ;;  %v2080_v30 = vmul.f32 0.03125, %v2054_v62 }
 0x4be   : > { %v2057_v56 = vpop.xlane.xlu0 %2056  ;;  %v2179_v51 = vmax.f32 %v2163_v18, 0.0  ;;  %v2145_v2 = vmul.f32 %v4115_v46, %v2125_v28  ;;  %v2164_v59 = vadd.f32 %v4121_v54, %v2144_v11 }
 0x4bf   : > { %3081 = vrsqrt.f32 %v2095_v52  ;;  %v2096_v26 = vadd.f32 1e-05, %v2080_v30  ;;  %v2081_v24 = vmul.f32 0.03125, %v2057_v56 }
 0x4c0   : > { %v2192_v29 = vpack.c.bf16 %v2179_v51, %v2178_v21  ;;  %v2165_v8 = vadd.f32 %v4121_v54, %v2145_v2  ;;  %v2180_v15 = vmax.f32 %v2164_v59, 0.0 }
 0x4c1   : > { %3083 = vrsqrt.f32 %v2096_v26  ;;  %v2097_v44 = vadd.f32 1e-05, %v2081_v24 }
 0x4c2   : > { %2933 = vmatprep.mubr.msk.bf16.mxu1 %vm824_vm0, %v2192_v29  ;;  %v2181_v61 = vmax.f32 %v2165_v8, 0.0 }
 0x4c3   : > { %3085 = vrsqrt.f32 %v2097_v44 }
 0x4c4   : > { %v2193_v45 = vpack.c.bf16 %v2181_v61, %v2180_v15 }
 0x4c6   : > { %2934 = vmatmul.mubr.msk.bf16.gmra.mrb[12].mxu1 %vm824_vm0, %v2193_v45 }
 0x4c7   : > { %v3080_v7 = vpop.eup %3079 }
 0x4c8   : > { %v2126_v4 = vmul.f32 %v3080_v7, %v4059_v6 }
 0x4c9   : > { %v3082_v32 = vpop.eup %3081 }
 0x4ca   : > { %v2127_v12 = vmul.f32 %v3082_v32, %v4062_v16  ;;  %v2146_v14 = vmul.f32 %v4115_v46, %v2126_v4 }
 0x4cb   : > { %v3084_v35 = vpop.eup %3083 }
 0x4cc   : > { %v2128_v37 = vmul.f32 %v3084_v35, %v4067_v40  ;;  %v2060_v3 = vpop.xlane.xlu1 %2059  ;;  %v2147_v48 = vmul.f32 %v4115_v46, %v2127_v12  ;;  %v2166_v5 = vadd.f32 %v4121_v54, %v2146_v14 }
 0x4cd   : > { %v3086_v53 = vpop.eup %3085  ;;  %v2082_v39 = vmul.f32 0.03125, %v2060_v3 }
 0x4ce   : > { %v2129_v17 = vmul.f32 %v3086_v53, %v4073_v42  ;;  %v2063_v58 = vpop.xlane.xlu0 %2062  ;;  %v2167_v6 = vadd.f32 %v4121_v54, %v2147_v48  ;;  %v2148_v50 = vmul.f32 %v4115_v46, %v2128_v37  ;;  %v2182_v20 = vmax.f32 %v2166_v5, 0.0 }
 0x4cf   : > { %v2098_v16 = vadd.f32 1e-05, %v2082_v39  ;;  %v2083_v19 = vmul.f32 0.03125, %v2063_v58 }
 0x4d0   : > { %v2066_v63 = vpop.xlane.xlu1 %2065  ;;  %v2183_v1 = vmax.f32 %v2167_v6, 0.0  ;;  %v2149_v40 = vmul.f32 %v4115_v46, %v2129_v17  ;;  %v2168_v34 = vadd.f32 %v4121_v54, %v2148_v50 }
 0x4d1   : > { %3087 = vrsqrt.f32 %v2098_v16  ;;  %v2099_v31 = vadd.f32 1e-05, %v2083_v19  ;;  %v2084_v49 = vmul.f32 0.03125, %v2066_v63 }
 0x4d2   : > { %v2069_v0 = vpop.xlane.xlu0 %2068  ;;  %v2194_v41 = vpack.c.bf16 %v2183_v1, %v2182_v20  ;;  %v2169_v42 = vadd.f32 %v4121_v54, %v2149_v40  ;;  %v2184_v57 = vmax.f32 %v2168_v34, 0.0 }
 0x4d3   : > { %3089 = vrsqrt.f32 %v2099_v31  ;;  %v2100_v38 = vadd.f32 1e-05, %v2084_v49  ;;  %v2085_v25 = vmul.f32 0.03125, %v2069_v0 }
 0x4d4   : > { %2937 = vmatprep.mubr.msk.bf16.mxu1 %vm824_vm0, %v2194_v41  ;;  %v2185_v55 = vmax.f32 %v2169_v42, 0.0 }
 0x4d5   : > { %3091 = vrsqrt.f32 %v2100_v38  ;;  %v2101_v23 = vadd.f32 1e-05, %v2085_v25 }
 0x4d6   : > { %v2195_v60 = vpack.c.bf16 %v2185_v55, %v2184_v57 }
 0x4d7   : > { %3093 = vrsqrt.f32 %v2101_v23 }
 0x4d8   : > { %2938 = vmatmul.mubr.msk.bf16.gmra.mrb[16].mxu1 %vm824_vm0, %v2195_v60 }
 0x4db   : > { %v3088_v22 = vpop.eup %3087 }
 0x4dc   : > { %v2130_v47 = vmul.f32 %v3088_v22, %v4089_v27 }
 0x4dd   : > { %v3090_v28 = vpop.eup %3089 }
 0x4de   : > { %v2131_v62 = vmul.f32 %v3090_v28, %v4092_v13  ;;  %v2150_v18 = vmul.f32 %v4115_v46, %v2130_v47 }
 0x4df   : > { %v3092_v11 = vpop.eup %3091 }
 0x4e0   : > { %v2132_v52 = vmul.f32 %v3092_v11, %v4097_v43  ;;  %v2151_v30 = vmul.f32 %v4115_v46, %v2131_v62  ;;  %v2170_v56 = vadd.f32 %v4121_v54, %v2150_v18 }
 0x4e1   : > { %v3094_v21 = vpop.eup %3093 }
 0x4e2   : > { %v2133_v51 = vmul.f32 %v3094_v21, %v4103_v33  ;;  %v2171_v2 = vadd.f32 %v4121_v54, %v2151_v30  ;;  %v2152_v59 = vmul.f32 %v4115_v46, %v2132_v52  ;;  %v2186_v27 = vmax.f32 %v2170_v56, 0.0  ;;  %v2807_v33 = vld [vmem:[%s4469_s12] ss:$0 sm:$0xff] }
 0x4e4   : > { %v2187_v26 = vmax.f32 %v2171_v2, 0.0  ;;  %v2153_v13 = vmul.f32 %v4115_v46, %v2133_v51  ;;  %v2172_v24 = vadd.f32 %v4121_v54, %v2152_v59  ;;  %v3145_v51 = vmov 8  }
 0x4e5   : > { %2991 = vset.pattern.permute.xlu1 %v3145_v51  ;;  %2992 = vset.pattern.permute.xlu0 %v3145_v51 }
 0x4e6   : > { %v2196_v29 = vpack.c.bf16 %v2187_v26, %v2186_v27  ;;  %v2173_v43 = vadd.f32 %v4121_v54, %v2153_v13  ;;  %v2188_v8 = vmax.f32 %v2172_v24, 0.0 }
 0x4e8   : > { %2941 = vmatprep.mubr.msk.bf16.mxu1 %vm824_vm0, %v2196_v29  ;;  %v2189_v44 = vmax.f32 %v2173_v43, 0.0 }
 0x4ea   : > { %v2197_v15 = vpack.c.bf16 %v2189_v44, %v2188_v8 }
 0x4ec   : > { %2942 = vmatmul.mubr.msk.bf16.gmra.mrb[20].mxu1 %vm824_vm0, %v2197_v15 }
 0x589   : > { %v2931_v61 = vpop.f32.mrb[8].mxu1 }
 0x58a   : > { %v4181_v45 = vadd.f32 %v2931_v61, %v2807_v33  ;;  %v2279_v46 = vpop.f32.mrb[9].mxu1 }
 0x58b   : > { %v2932_v7 = vpop.f32.mrb[10].mxu1  ;;  %v4183_v4 = vadd.f32 %v2807_v33, %v2279_v46 }
 0x58c   : > { %v4185_v32 = vadd.f32 %v2932_v7, %v2807_v33  ;;  %v2282_v54 = vpop.f32.mrb[11].mxu1  ;;  %v2350_v12 = vsel %vm824_vm0, %v4181_v45, 0.0 }
 0x58d   : > { %2351 = vadd.xlane.f32.xlu1 %v2350_v12  ;;  %v4189_v14 = vadd.f32 %v2807_v33, %v2282_v54  ;;  %v2344_v37 = vsel %vm824_vm0, %v4183_v4, 0.0 }
 0x58e   : > { %v2353_v35 = vsel %vm824_vm0, %v4185_v32, 0.0 }
 0x58f   : > { %2354 = vadd.xlane.f32.xlu0 %v2353_v35  ;;  %v2347_v3 = vsel %vm824_vm0, %v4189_v14, 0.0 }
 0x591   : > { %2345 = vadd.xlane.f32.xlu1 %v2344_v37 }
 0x593   : > { %2348 = vadd.xlane.f32.xlu0 %v2347_v3 }
 0x599   : > { %v2935_v48 = vpop.f32.mrb[12].mxu1 }
 0x59a   : > { %v4197_v5 = vadd.f32 %v2935_v48, %v2807_v33  ;;  %v2295_v53 = vpop.f32.mrb[13].mxu1 }
 0x59b   : > { %v2936_v39 = vpop.f32.mrb[14].mxu1  ;;  %v4199_v17 = vadd.f32 %v2807_v33, %v2295_v53 }
 0x59c   : > { %v4201_v58 = vadd.f32 %v2936_v39, %v2807_v33  ;;  %v2298_v6 = vpop.f32.mrb[15].mxu1  ;;  %v2362_v50 = vsel %vm824_vm0, %v4197_v5, 0.0 }
 0x59d   : > { %2363 = vadd.xlane.f32.xlu1 %v2362_v50  ;;  %v4205_v16 = vadd.f32 %v2807_v33, %v2298_v6  ;;  %v2356_v63 = vsel %vm824_vm0, %v4199_v17, 0.0 }
 0x59e   : > { %v2365_v19 = vsel %vm824_vm0, %v4201_v58, 0.0 }
 0x59f   : > { %2366 = vadd.xlane.f32.xlu0 %v2365_v19  ;;  %v2359_v20 = vsel %vm824_vm0, %v4205_v16, 0.0 }
 0x5a1   : > { %2357 = vadd.xlane.f32.xlu1 %v2356_v63 }
 0x5a3   : > { %2360 = vadd.xlane.f32.xlu0 %v2359_v20 }
 0x5ab   : > { %v2939_v1 = vpop.f32.mrb[16].mxu1 }
 0x5ac   : > { %v4213_v40 = vadd.f32 %v2939_v1, %v2807_v33  ;;  %v2311_v34 = vpop.f32.mrb[17].mxu1 }
 0x5ad   : > { %v2940_v31 = vpop.f32.mrb[18].mxu1  ;;  %v4215_v49 = vadd.f32 %v2807_v33, %v2311_v34 }
 0x5ae   : > { %v4217_v0 = vadd.f32 %v2940_v31, %v2807_v33  ;;  %v2314_v41 = vpop.f32.mrb[19].mxu1  ;;  %v2374_v42 = vsel %vm824_vm0, %v4213_v40, 0.0 }
 0x5af   : > { %2375 = vadd.xlane.f32.xlu1 %v2374_v42  ;;  %v4221_v38 = vadd.f32 %v2807_v33, %v2314_v41  ;;  %v2368_v57 = vsel %vm824_vm0, %v4215_v49, 0.0 }
 0x5b0   : > { %v2377_v25 = vsel %vm824_vm0, %v4217_v0, 0.0 }
 0x5b1   : > { %2378 = vadd.xlane.f32.xlu0 %v2377_v25  ;;  %v2371_v55 = vsel %vm824_vm0, %v4221_v38, 0.0 }
 0x5b3   : > { %2369 = vadd.xlane.f32.xlu1 %v2368_v57 }
 0x5b5   : > { %2372 = vadd.xlane.f32.xlu0 %v2371_v55 }
 0x5bf   : > { %v2943_v23 = vpop.f32.mrb[20].mxu1 }
 0x5c0   : > { %v2327_v60 = vpop.f32.mrb[21].mxu1  ;;  %v4231_v62 = vadd.f32 %v2943_v23, %v2807_v33 }
 0x5c1   : > { %v4229_v22 = vadd.f32 %v2807_v33, %v2327_v60  ;;  %v2944_v47 = vpop.f32.mrb[22].mxu1 }
 0x5c2   : > { %v2330_v28 = vpop.f32.mrb[23].mxu1  ;;  %v4237_v52 = vadd.f32 %v2944_v47, %v2807_v33  ;;  %v2386_v56 = vsel %vm824_vm0, %v4231_v62, 0.0 }
 0x5c3   : > { %v4233_v18 = vadd.f32 %v2807_v33, %v2330_v28  ;;  %v2380_v11 = vsel %vm824_vm0, %v4229_v22, 0.0 }
 0x5c4   : > { %2381 = vadd.xlane.f32.xlu1 %v2380_v11  ;;  %v2389_v21 = vsel %vm824_vm0, %v4237_v52, 0.0 }
 0x5c5   : > { %v2383_v30 = vsel %vm824_vm0, %v4233_v18, 0.0 }
 0x5c6   : > { %2384 = vadd.xlane.f32.xlu0 %v2383_v30 }
 0x5c8   : > { %2387 = vadd.xlane.f32.xlu1 %v2386_v56 }
 0x5ca   : > { %2390 = vadd.xlane.f32.xlu0 %v2389_v21 }
 0x61a   : > { %v2352_v2 = vpop.xlane.xlu1 %2351 }
 0x61b   : > { %v2394_v59 = vmul.f32 0.03125, %v2352_v2 }
 0x61c   : > { %v2355_v27 = vpop.xlane.xlu0 %2354 }
 0x61d   : > { %v4246_v26 = vsub.f32 %v4181_v45, %v2394_v59  ;;  %v2395_v13 = vmul.f32 0.03125, %v2355_v27 }
 0x61e   : > { %v2346_v24 = vpop.xlane.xlu1 %2345 }
 0x61f   : > { %v4249_v29 = vsub.f32 %v4185_v32, %v2395_v13  ;;  %v2392_v43 = vmul.f32 0.03125, %v2346_v24  ;;  %v2426_v8 = vmul.f32 %v4246_v26, %v4246_v26 }
 0x620   : > { %v2349_v44 = vpop.xlane.xlu0 %2348 }
 0x621   : > { %v4254_v15 = vsub.f32 %v4183_v4, %v2392_v43  ;;  %v2393_v33 = vmul.f32 0.03125, %v2349_v44  ;;  %v2446_v61 = vsel %vm824_vm0, %v2426_v8, 0.0  ;;  %v2427_v45 = vmul.f32 %v4249_v29, %v4249_v29 }
 0x622   : > { %2447 = vadd.xlane.f32.xlu1 %v2446_v61 }
 0x623   : > { %v4260_v46 = vsub.f32 %v4189_v14, %v2393_v33  ;;  %v2449_v7 = vsel %vm824_vm0, %v2427_v45, 0.0  ;;  %v2424_v32 = vmul.f32 %v4254_v15, %v4254_v15 }
 0x624   : > { %2450 = vadd.xlane.f32.xlu0 %v2449_v7 }
 0x625   : > { %v2440_v54 = vsel %vm824_vm0, %v2424_v32, 0.0  ;;  %v2425_v4 = vmul.f32 %v4260_v46, %v4260_v46 }
 0x626   : > { %2441 = vadd.xlane.f32.xlu1 %v2440_v54 }
 0x627   : > { %v2443_v12 = vsel %vm824_vm0, %v2425_v4, 0.0 }
 0x628   : > { %2444 = vadd.xlane.f32.xlu0 %v2443_v12 }
 0x62a   : > { %v2364_v35 = vpop.xlane.xlu1 %2363 }
 0x62b   : > { %v2398_v37 = vmul.f32 0.03125, %v2364_v35 }
 0x62c   : > { %v2367_v3 = vpop.xlane.xlu0 %2366 }
 0x62d   : > { %v4270_v14 = vsub.f32 %v4197_v5, %v2398_v37  ;;  %v2399_v48 = vmul.f32 0.03125, %v2367_v3 }
 0x62e   : > { %v2358_v53 = vpop.xlane.xlu1 %2357 }
 0x62f   : > { %v4273_v39 = vsub.f32 %v4201_v58, %v2399_v48  ;;  %v2396_v6 = vmul.f32 0.03125, %v2358_v53  ;;  %v2430_v50 = vmul.f32 %v4270_v14, %v4270_v14  ;;  %v3127_v48 = vld [vmem:[%s3242_s19] sm:$0xff]  ;;  %s470_s19 = scalar_select %p469_p4, %s4343_s17, 15 }
 0x630   : > { %v2361_v19 = vpop.xlane.xlu0 %2360 }
 0x631   : > { %v4278_v63 = vsub.f32 %v4199_v17, %v2396_v6  ;;  %v2397_v20 = vmul.f32 0.03125, %v2361_v19  ;;  %v2458_v1 = vsel %vm824_vm0, %v2430_v50, 0.0  ;;  %v2431_v5 = vmul.f32 %v4273_v39, %v4273_v39  ;;  %s2838_s22 = sshll.u32 %s470_s19, 3  ;;  %s478_s19 = scalar_lea.vmem %s4471_s14, %s2767_s16 }
 0x632   : > { %2459 = vadd.xlane.f32.xlu1 %v2458_v1  ;;  %s4366_s25 = scalar_lea.vmem %s4470_s13, %s2838_s22 }
 0x633   : > { %v4284_v34 = vsub.f32 %v4205_v16, %v2397_v20  ;;  %v2461_v58 = vsel %vm824_vm0, %v2431_v5, 0.0  ;;  %v2428_v31 = vmul.f32 %v4278_v63, %v4278_v63 }
 0x634   : > { %2462 = vadd.xlane.f32.xlu0 %v2461_v58 }
 0x635   : > { %v2452_v41 = vsel %vm824_vm0, %v2428_v31, 0.0  ;;  %v2429_v17 = vmul.f32 %v4284_v34, %v4284_v34 }
 0x636   : > { %2453 = vadd.xlane.f32.xlu1 %v2452_v41 }
 0x637   : > { %v2455_v42 = vsel %vm824_vm0, %v2429_v17, 0.0 }
 0x638   : > { %2456 = vadd.xlane.f32.xlu0 %v2455_v42 }
 0x63c   : > { %v2376_v25 = vpop.xlane.xlu1 %2375 }
 0x63d   : > { %v2402_v57 = vmul.f32 0.03125, %v2376_v25 }
 0x63e   : > { %v2379_v55 = vpop.xlane.xlu0 %2378 }
 0x63f   : > { %v4294_v16 = vsub.f32 %v4213_v40, %v2402_v57  ;;  %v2403_v23 = vmul.f32 0.03125, %v2379_v55  ;;  %v4350_v57 = vld [vmem:[%s4466_s9 + $0x1] ss:$0 sm:$0xff] }
 0x640   : > { %v2370_v60 = vpop.xlane.xlu1 %2369 }
 0x641   : > { %v4297_v47 = vsub.f32 %v4217_v0, %v2403_v23  ;;  %v2400_v28 = vmul.f32 0.03125, %v2370_v60  ;;  %v2434_v11 = vmul.f32 %v4294_v16, %v4294_v16 }
 0x642   : > { %v2373_v30 = vpop.xlane.xlu0 %2372 }
 0x643   : > { %v4302_v56 = vsub.f32 %v4215_v49, %v2400_v28  ;;  %v2401_v21 = vmul.f32 0.03125, %v2373_v30  ;;  %v2470_v51 = vsel %vm824_vm0, %v2434_v11, 0.0  ;;  %v2435_v40 = vmul.f32 %v4297_v47, %v4297_v47  ;;  %v4356_v28 = vld [vmem:[%s4467_s10 + $0x1] ss:$0 sm:$0xff] }
 0x644   : > { %2471 = vadd.xlane.f32.xlu1 %v2470_v51 }
 0x645   : > { %v4308_v2 = vsub.f32 %v4221_v38, %v2401_v21  ;;  %v2473_v0 = vsel %vm824_vm0, %v2435_v40, 0.0  ;;  %v2432_v59 = vmul.f32 %v4302_v56, %v4302_v56 }
 0x646   : > { %2474 = vadd.xlane.f32.xlu0 %v2473_v0 }
 0x647   : > { %v2464_v27 = vsel %vm824_vm0, %v2432_v59, 0.0  ;;  %v2433_v49 = vmul.f32 %v4308_v2, %v4308_v2 }
 0x648   : > { %2465 = vadd.xlane.f32.xlu1 %v2464_v27 }
 0x649   : > { %v2467_v13 = vsel %vm824_vm0, %v2433_v49, 0.0 }
 0x64a   : > { %2468 = vadd.xlane.f32.xlu0 %v2467_v13 }
 0x651   : > { %v2382_v24 = vpop.xlane.xlu1 %2381 }
 0x652   : > { %v2404_v8 = vmul.f32 0.03125, %v2382_v24 }
 0x653   : > { %v2385_v43 = vpop.xlane.xlu0 %2384 }
 0x654   : > { %v2405_v38 = vmul.f32 0.03125, %v2385_v43  ;;  %v4321_v7 = vsub.f32 %v4229_v22, %v2404_v8 }
 0x655   : > { %v2388_v44 = vpop.xlane.xlu1 %2387 }
 0x656   : > { %v4318_v33 = vsub.f32 %v4233_v18, %v2405_v38  ;;  %v2406_v61 = vmul.f32 0.03125, %v2388_v44 }
 0x657   : > { %v2391_v45 = vpop.xlane.xlu0 %2390 }
 0x658   : > { %v4324_v32 = vsub.f32 %v4231_v62, %v2406_v61  ;;  %v2407_v54 = vmul.f32 0.03125, %v2391_v45  ;;  %v2437_v4 = vmul.f32 %v4318_v33, %v4318_v33  ;;  %v2436_v62 = vmul.f32 %v4321_v7, %v4321_v7 }
 0x65a   : > { %v4329_v12 = vsub.f32 %v4237_v52, %v2407_v54  ;;  %v2479_v35 = vsel %vm824_vm0, %v2437_v4, 0.0  ;;  %v2438_v18 = vmul.f32 %v4324_v32, %v4324_v32  ;;  %v2476_v52 = vsel %vm824_vm0, %v2436_v62, 0.0 }
 0x65b   : > { %2480 = vadd.xlane.f32.xlu0 %v2479_v35 }
 0x65c   : > { %v2482_v22 = vsel %vm824_vm0, %v2438_v18, 0.0  ;;  %v2439_v37 = vmul.f32 %v4329_v12, %v4329_v12 }
 0x65d   : > { %2483 = vadd.xlane.f32.xlu1 %v2482_v22 }
 0x65e   : > { %v2485_v3 = vsel %vm824_vm0, %v2439_v37, 0.0 }
 0x65f   : > { %2486 = vadd.xlane.f32.xlu0 %v2485_v3 }
 0x661   : > { %2477 = vadd.xlane.f32.xlu1 %v2476_v52 }
 0x672   : > { %553 = vperm.xlu1 %2991, %v3127_v48  }
 0x6af   : > { %v2448_v53 = vpop.xlane.xlu1 %2447 }
 0x6b0   : > { %v2490_v6 = vmul.f32 0.03125, %v2448_v53 }
 0x6b1   : > { %v2451_v50 = vpop.xlane.xlu0 %2450 }
 0x6b2   : > { %v2506_v19 = vadd.f32 1e-05, %v2490_v6  ;;  %v2491_v20 = vmul.f32 0.03125, %v2451_v50 }
 0x6b3   : > { %v2442_v1 = vpop.xlane.xlu1 %2441 }
 0x6b4   : > { %3095 = vrsqrt.f32 %v2506_v19  ;;  %v2507_v5 = vadd.f32 1e-05, %v2491_v20  ;;  %v2488_v58 = vmul.f32 0.03125, %v2442_v1 }
 0x6b5   : > { %v2445_v31 = vpop.xlane.xlu0 %2444 }
 0x6b6   : > { %3097 = vrsqrt.f32 %v2507_v5  ;;  %v2504_v41 = vadd.f32 1e-05, %v2488_v58  ;;  %v2489_v17 = vmul.f32 0.03125, %v2445_v31 }
 0x6b8   : > { %3099 = vrsqrt.f32 %v2504_v41  ;;  %v2505_v42 = vadd.f32 1e-05, %v2489_v17 }
 0x6ba   : > { %3101 = vrsqrt.f32 %v2505_v42 }
 0x6be   : > { %v3096_v25 = vpop.eup %3095 }
 0x6bf   : > { %v2538_v55 = vmul.f32 %v3096_v25, %v4246_v26  ;;  %v2460_v23 = vpop.xlane.xlu1 %2459 }
 0x6c0   : > { %v3098_v60 = vpop.eup %3097  ;;  %v2494_v11 = vmul.f32 0.03125, %v2460_v23 }
 0x6c1   : > { %v2558_v30 = vmul.f32 %v4350_v57, %v2538_v55  ;;  %v2539_v21 = vmul.f32 %v3098_v60, %v4249_v29  ;;  %v2463_v51 = vpop.xlane.xlu0 %2462 }
 0x6c2   : > { %v3100_v40 = vpop.eup %3099  ;;  %v2510_v0 = vadd.f32 1e-05, %v2494_v11  ;;  %v2495_v59 = vmul.f32 0.03125, %v2463_v51 }
 0x6c3   : > { %v2578_v27 = vadd.f32 %v4356_v28, %v2558_v30  ;;  %v2559_v26 = vmul.f32 %v4350_v57, %v2539_v21  ;;  %v2536_v49 = vmul.f32 %v3100_v40, %v4254_v15  ;;  %v2454_v13 = vpop.xlane.xlu1 %2453 }
 0x6c4   : > { %v3102_v24 = vpop.eup %3101  ;;  %3103 = vrsqrt.f32 %v2510_v0  ;;  %v2511_v43 = vadd.f32 1e-05, %v2495_v59  ;;  %v2492_v8 = vmul.f32 0.03125, %v2454_v13 }
 0x6c5   : > { %v2841_v29 = vpack.c.bf16 %v2578_v27, %v2578_v27  ;;  %v2579_v38 = vadd.f32 %v4356_v28, %v2559_v26  ;;  %v2556_v44 = vmul.f32 %v4350_v57, %v2536_v49  ;;  %v2537_v15 = vmul.f32 %v3102_v24, %v4260_v46  ;;  %v2457_v61 = vpop.xlane.xlu0 %2456 }
 0x6c6   : > { %3105 = vrsqrt.f32 %v2511_v43  ;;  %v2508_v45 = vadd.f32 1e-05, %v2492_v8  ;;  %v2493_v54 = vmul.f32 0.03125, %v2457_v61 }
 0x6c7   : > { %v2842_v4 = vpack.c.bf16 %v2579_v38, %v2579_v38  ;;  %v2576_v35 = vadd.f32 %v4356_v28, %v2556_v44  ;;  %v2557_v18 = vmul.f32 %v4350_v57, %v2537_v15  ;;  %2659 = vst.msk [vmem:[%s4366_s25 + $0x8] sm:$0xf] %vm2656_vm1, %v2841_v29 }
 0x6c8   : > { %3107 = vrsqrt.f32 %v2508_v45  ;;  %v2509_v22 = vadd.f32 1e-05, %v2493_v54  ;;  %v548_v45 = vstv %s4343_s17 }
 0x6c9   : > { %v2839_v37 = vpack.c.bf16 %v2576_v35, %v2576_v35  ;;  %v2577_v62 = vadd.f32 %v4356_v28, %v2557_v18  ;;  %2660 = vst.msk [vmem:[%s4366_s25 + $0xc] sm:$0xf] %vm2656_vm1, %v2842_v4 }
 0x6ca   : > { %3109 = vrsqrt.f32 %v2509_v22 }
 0x6cb   : > { %v2840_v46 = vpack.c.bf16 %v2577_v62, %v2577_v62  ;;  %2657 = vst.msk [vmem:[%s4366_s25] sm:$0xf] %vm2656_vm1, %v2839_v37 }
 0x6cd   : > { %2658 = vst.msk [vmem:[%s4366_s25 + $0x4] sm:$0xf] %vm2656_vm1, %v2840_v46  ;;  %v549_v46 = vadd.s32 %v548_v45, %v3246_v10 }
 0x6ce   : > { %v3104_v3 = vpop.eup %3103 }
 0x6cf   : > { %v2542_v52 = vmul.f32 %v3104_v3, %v4270_v14  ;;  %v551_v3 = vand.u32 127, %v482_v9  ;;  %v3128_v9 = vld [vmem:[%s4458_s1] sm:$0x1f] }
 0x6d0   : > { %v3106_v48 = vpop.eup %3105  ;;  %v559_v10 = vrot.slane %v3128_v9, %v3290_v36 }
 0x6d1   : > { %v2562_v53 = vmul.f32 %v4350_v57, %v2542_v52  ;;  %v2543_v6 = vmul.f32 %v3106_v48, %v4273_v39  ;;  %v2472_v50 = vpop.xlane.xlu1 %2471  ;;  %vm561_vm2 = vcmp.ne.s32.totalorder %v549_v46, %v551_v3 }
 0x6d2   : > { %v3108_v19 = vpop.eup %3107  ;;  %v2498_v20 = vmul.f32 0.03125, %v2472_v50 }
 0x6d3   : > { %v2582_v1 = vadd.f32 %v4356_v28, %v2562_v53  ;;  %v2563_v5 = vmul.f32 %v4350_v57, %v2543_v6  ;;  %v2540_v58 = vmul.f32 %v3108_v19, %v4278_v63  ;;  %v2475_v31 = vpop.xlane.xlu0 %2474 }
 0x6d4   : > { %v3110_v41 = vpop.eup %3109  ;;  %v2514_v17 = vadd.f32 1e-05, %v2498_v20  ;;  %v2499_v42 = vmul.f32 0.03125, %v2475_v31 }
 0x6d5   : > { %v2845_v14 = vpack.c.bf16 %v2582_v1, %v2582_v1  ;;  %v2583_v25 = vadd.f32 %v4356_v28, %v2563_v5  ;;  %v2560_v55 = vmul.f32 %v4350_v57, %v2540_v58  ;;  %v2541_v39 = vmul.f32 %v3110_v41, %v4284_v34  ;;  %v2466_v23 = vpop.xlane.xlu1 %2465 }
 0x6d6   : > { %3111 = vrsqrt.f32 %v2514_v17  ;;  %v2515_v60 = vadd.f32 1e-05, %v2499_v42  ;;  %v2496_v11 = vmul.f32 0.03125, %v2466_v23  ;;  %v3146_v41 = vmov 0.0  }
 0x6d7   : > { %v2846_v30 = vpack.c.bf16 %v2583_v25, %v2583_v25  ;;  %v2580_v63 = vadd.f32 %v4356_v28, %v2560_v55  ;;  %v2561_v21 = vmul.f32 %v4350_v57, %v2541_v39  ;;  %v2469_v51 = vpop.xlane.xlu0 %2468  ;;  %2663 = vst.msk [vmem:[%s4366_s25 + $0x18] sm:$0xf] %vm2656_vm1, %v2845_v14  ;;  %v2773_v17 = vsel %vm561_vm2, 1.0, %v3146_v41 }
 0x6d8   : > { %3113 = vrsqrt.f32 %v2515_v60  ;;  %v2512_v40 = vadd.f32 1e-05, %v2496_v11  ;;  %v2497_v0 = vmul.f32 0.03125, %v2469_v51 }
 0x6d9   : > { %v2843_v59 = vpack.c.bf16 %v2580_v63, %v2580_v63  ;;  %v2581_v34 = vadd.f32 %v4356_v28, %v2561_v21  ;;  %2664 = vst.msk [vmem:[%s4366_s25 + $0x1c] sm:$0xf] %vm2656_vm1, %v2846_v30 }
 0x6da   : > { %3115 = vrsqrt.f32 %v2512_v40  ;;  %v2513_v27 = vadd.f32 1e-05, %v2497_v0 }
 0x6db   : > { %v2844_v26 = vpack.c.bf16 %v2581_v34, %v2581_v34  ;;  %2661 = vst.msk [vmem:[%s4366_s25 + $0x10] sm:$0xf] %vm2656_vm1, %v2843_v59 }
 0x6dc   : > { %3117 = vrsqrt.f32 %v2513_v27 }
 0x6dd   : > { %2662 = vst.msk [vmem:[%s4366_s25 + $0x14] sm:$0xf] %vm2656_vm1, %v2844_v26 }
 0x6e0   : > { %v3112_v49 = vpop.eup %3111 }
 0x6e1   : > { %v2546_v13 = vmul.f32 %v3112_v49, %v4294_v16 }
 0x6e2   : > { %v3114_v24 = vpop.eup %3113 }
 0x6e3   : > { %v2566_v43 = vmul.f32 %v4350_v57, %v2546_v13  ;;  %v2547_v8 = vmul.f32 %v3114_v24, %v4297_v47 }
 0x6e4   : > { %v3116_v29 = vpop.eup %3115 }
 0x6e5   : > { %v2586_v38 = vadd.f32 %v4356_v28, %v2566_v43  ;;  %v2567_v44 = vmul.f32 %v4350_v57, %v2547_v8  ;;  %v2544_v15 = vmul.f32 %v3116_v29, %v4302_v56 }
 0x6e6   : > { %v3118_v61 = vpop.eup %3117 }
 0x6e7   : > { %v2849_v54 = vpack.c.bf16 %v2586_v38, %v2586_v38  ;;  %v2587_v4 = vadd.f32 %v4356_v28, %v2567_v44  ;;  %v2564_v16 = vmul.f32 %v4350_v57, %v2544_v15  ;;  %v2545_v35 = vmul.f32 %v3118_v61, %v4308_v2 }
 0x6e8   : > { %v2481_v18 = vpop.xlane.xlu0 %2480 }
 0x6e9   : > { %v2850_v47 = vpack.c.bf16 %v2587_v4, %v2587_v4  ;;  %v2584_v22 = vadd.f32 %v4356_v28, %v2564_v16  ;;  %v2565_v37 = vmul.f32 %v4350_v57, %v2545_v35  ;;  %v2501_v62 = vmul.f32 0.03125, %v2481_v18  ;;  %2667 = vst.msk [vmem:[%s4366_s25 + $0x28] sm:$0xf] %vm2656_vm1, %v2849_v54 }
 0x6ea   : > { %v2484_v56 = vpop.xlane.xlu1 %2483 }
 0x6eb   : > { %v2847_v52 = vpack.c.bf16 %v2584_v22, %v2584_v22  ;;  %v2585_v48 = vadd.f32 %v4356_v28, %v2565_v37  ;;  %v2517_v53 = vadd.f32 1e-05, %v2501_v62  ;;  %v2502_v2 = vmul.f32 0.03125, %v2484_v56  ;;  %2668 = vst.msk [vmem:[%s4366_s25 + $0x2c] sm:$0xf] %vm2656_vm1, %v2850_v47 }
 0x6ec   : > { %v2487_v6 = vpop.xlane.xlu0 %2486 }
 0x6ed   : > { %v2848_v50 = vpack.c.bf16 %v2585_v48, %v2585_v48  ;;  %3119 = vrsqrt.f32 %v2517_v53  ;;  %v2518_v19 = vadd.f32 1e-05, %v2502_v2  ;;  %v2503_v20 = vmul.f32 0.03125, %v2487_v6  ;;  %2665 = vst.msk [vmem:[%s4366_s25 + $0x20] sm:$0xf] %vm2656_vm1, %v2847_v52 }
 0x6ee   : > { %v2478_v1 = vpop.xlane.xlu1 %2477 }
 0x6ef   : > { %3121 = vrsqrt.f32 %v2518_v19  ;;  %v2519_v5 = vadd.f32 1e-05, %v2503_v20  ;;  %v2500_v58 = vmul.f32 0.03125, %v2478_v1  ;;  %2666 = vst.msk [vmem:[%s4366_s25 + $0x24] sm:$0xf] %vm2656_vm1, %v2848_v50 }
 0x6f1   : > { %3123 = vrsqrt.f32 %v2519_v5  ;;  %v2516_v31 = vadd.f32 1e-05, %v2500_v58 }
 0x6f2   : > { %v554_v42 = vpop.permute.xlu1 %553 }
 0x6f3   : > { %3125 = vrsqrt.f32 %v2516_v31  ;;  %v560_v14 = vmul.f32 %v559_v10, %v554_v42 }
 0x6f5   : > { %v564_v36 = vmul.f32 %v2773_v17, %v560_v14 }
 0x6f7   : > { %v3120_v25 = vpop.eup %3119  ;;  %566 = vst.msk [vmem:[%s478_s19] sm:$0xff] %vm565_vm3, %v564_v36 }
 0x6f8   : > { %v2549_v55 = vmul.f32 %v3120_v25, %v4318_v33 }
 0x6f9   : > { %v3122_v39 = vpop.eup %3121 }
 0x6fa   : > { %v2569_v23 = vmul.f32 %v4350_v57, %v2549_v55  ;;  %v2550_v60 = vmul.f32 %v3122_v39, %v4324_v32 }
 0x6fb   : > { %v3124_v11 = vpop.eup %3123 }
 0x6fc   : > { %v2589_v30 = vadd.f32 %v4356_v28, %v2569_v23  ;;  %v2570_v63 = vmul.f32 %v4350_v57, %v2550_v60  ;;  %v2551_v21 = vmul.f32 %v3124_v11, %v4329_v12 }
 0x6fd   : > { %v3126_v51 = vpop.eup %3125 }
 0x6fe   : > { %v2852_v40 = vpack.c.bf16 %v2589_v30, %v2589_v30  ;;  %v2590_v33 = vadd.f32 %v4356_v28, %v2570_v63  ;;  %v2571_v0 = vmul.f32 %v4350_v57, %v2551_v21  ;;  %v2548_v59 = vmul.f32 %v3126_v51, %v4321_v7 }
 0x700   : > { %v2853_v34 = vpack.c.bf16 %v2590_v33, %v2590_v33  ;;  %v2591_v32 = vadd.f32 %v4356_v28, %v2571_v0  ;;  %v2568_v27 = vmul.f32 %v4350_v57, %v2548_v59  ;;  %2670 = vst.msk [vmem:[%s4366_s25 + $0x34] sm:$0xf] %vm2656_vm1, %v2852_v40 }
 0x702   : > { %v2854_v26 = vpack.c.bf16 %v2591_v32, %v2591_v32  ;;  %v2588_v49 = vadd.f32 %v4356_v28, %v2568_v27  ;;  %2671 = vst.msk [vmem:[%s4366_s25 + $0x38] sm:$0xf] %vm2656_vm1, %v2853_v34 }
 0x704   : > { %v2851_v12 = vpack.c.bf16 %v2588_v49, %v2588_v49  ;;  %2672 = vst.msk [vmem:[%s4366_s25 + $0x3c] sm:$0xf] %vm2656_vm1, %v2854_v26 }
 0x706   : > { %2669 = vst.msk [vmem:[%s4366_s25 + $0x30] sm:$0xf] %vm2656_vm1, %v2851_v12 }
 0x707 PF: > { %s25_s29 = sadd.s32 1, %s3135_s29  }
 0x708   : > { %p22_p5 = scmp.ge.s32.totalorder %s25_s29, 4  }
 0x70a   :  { %24 = sbr.rel (!%p22_p5) target bundleno = 1 (0x1), region = 114 }

// kernel: global_interactor_forward.3
= control target key start
LH: loop header
LB: loop body
LE: loop exit
PB: predicated region body
PF: predicated region fallthrough
CT: control target
= control target key end

     0   :  { %s5246_s0 = inlined_call_operand.vmem [shape: f32[16,32], index: 0, kind: input, shape index: {}]   ;;  %s5247_s1 = inlined_call_operand.vmem [shape: bf16[16,16,32], index: 1, kind: input, shape index: {}]   ;;  %s5248_s2 = inlined_call_operand.vmem [shape: f32[16,16], index: 2, kind: input, shape index: {}]   ;;  %s5249_s3 = inlined_call_operand.vmem [shape: f32[3,32,96], index: 3, kind: input, shape index: {}]   ;;  %s5250_s4 = inlined_call_operand.vmem [shape: f32[3,1,96], index: 4, kind: input, shape index: {}]   ;;  %s5251_s5 = inlined_call_operand.vmem [shape: f32[3,32,64], index: 5, kind: input, shape index: {}]   ;;  %s5252_s6 = inlined_call_operand.vmem [shape: f32[3,1,64], index: 6, kind: input, shape index: {}]   ;;  %s5253_s7 = inlined_call_operand.vmem [shape: bf16[3,32,64], index: 7, kind: input, shape index: {}]   ;;  %s5254_s8 = inlined_call_operand.vmem [shape: f32[3,1,64], index: 8, kind: input, shape index: {}]   ;;  %s5255_s9 = inlined_call_operand.vmem [shape: f32[3,32,32], index: 9, kind: input, shape index: {}]   ;;  %s5256_s10 = inlined_call_operand.vmem [shape: f32[3,1,32], index: 10, kind: input, shape index: {}]   ;;  %s5257_s11 = inlined_call_operand.vmem [shape: f32[3,32,32], index: 11, kind: input, shape index: {}]   ;;  %s5258_s12 = inlined_call_operand.vmem [shape: f32[3,1,32], index: 12, kind: input, shape index: {}]   ;;  %s5259_s13 = inlined_call_operand.vmem [shape: f32[3,2,32], index: 13, kind: input, shape index: {}]   ;;  %s5260_s14 = inlined_call_operand.vmem [shape: f32[3,2,32], index: 14, kind: input, shape index: {}]   ;;  %s5261_s15 = inlined_call_operand.vmem [shape: f32[3,32,128], index: 15, kind: input, shape index: {}]   ;;  %s5262_s16 = inlined_call_operand.vmem [shape: f32[3,1,128], index: 16, kind: input, shape index: {}]   ;;  %s5263_s17 = inlined_call_operand.vmem [shape: f32[3,128,32], index: 17, kind: input, shape index: {}]   ;;  %s5264_s18 = inlined_call_operand.vmem [shape: f32[3,1,32], index: 18, kind: input, shape index: {}]   ;;  %s5265_s19 = inlined_call_operand.vmem [shape: f32[1,32], index: 19, kind: input, shape index: {}]   ;;  %s5266_s20 = inlined_call_operand.vmem [shape: f32[1,32], index: 20, kind: input, shape index: {}]   ;;  %s5267_s21 = inlined_call_operand.hbm [shape: f32[16,32], index: 21, kind: output, shape index: {}]  }
   0x1   :  { %5302 = sst [smem:[#allocation35_spill]] %s5246_s0 }
   0x2   :  { %5303 = sst [smem:[#allocation36_spill]] %s5247_s1 }
   0x3   :  { %5304 = sst [smem:[#allocation37_spill]] %s5248_s2 }
   0x4   :  { %5305 = sst [smem:[#allocation38_spill]] %s5249_s3 }
   0x5   :  { %5306 = sst [smem:[#allocation39_spill]] %s5250_s4 }
   0x6   :  { %5307 = sst [smem:[#allocation40_spill]] %s5251_s5 }
   0x7   :  { %5308 = sst [smem:[#allocation41_spill]] %s5253_s7 }
   0x8   :  { %5309 = sst [smem:[#allocation42_spill]] %s5255_s9 }
   0x9   :  { %5310 = sst [smem:[#allocation43_spill]] %s5256_s10 }
   0xa   :  { %5311 = sst [smem:[#allocation44_spill]] %s5257_s11 }
   0xb   :  { %5312 = sst [smem:[#allocation45_spill]] %s5259_s13 }
   0xc   :  { %5313 = sst [smem:[#allocation46_spill]] %s5260_s14 }
   0xd   :  { %5314 = sst [smem:[#allocation47_spill]] %s5262_s16 }
   0xe   :  { %5315 = sst [smem:[#allocation48_spill]] %s5263_s17 }
   0xf   :  { %5316 = sst [smem:[#allocation49_spill]] %s5264_s18 }
  0x10   :  { %5317 = sst [smem:[#allocation50_spill]] %s5265_s19 }
  0x11   :  { %5318 = sst [smem:[#allocation51_spill]] %s5266_s20 }
  0x12   :  { %5319 = sst [smem:[#allocation52_spill]] %s5267_s21 }
  0x13   :  { %26 = vsyncpa [#allocation7], 0 }
  0x14   :  { %28 = vsyncpa [#allocation7 + $0x1], 0  ;;  %s4001_s2 = smov 0   ;;  %s4003_s25 = smov 0  }
  0x15   :  { %s4005_s26 = smov 0   ;;  %s4007_s27 = smov 0  }
  0x16   :  { %s4009_s3 = smov 0   ;;  %s4011_s28 = smov 0  }
  0x17   :  { %s4013_s29 = smov 0   ;;  %s4015_s0 = smov 0  }
  0x18 LB: > { %5320 = sst [smem:[#allocation9_spill]] %s3847_s2  ;;  %s3317_s4 = sadd.s32 4294967295, %s3875_s0   ;;  %s3875_s0 = sphi %s4015_s0, %s34_s0   ;;  %s3871_s29 = sphi %s4013_s29, %s5404_s29   ;;  %s3867_s28 = sphi %s4011_s28, %s5403_s28   ;;  %s3863_s3 = sphi %s4009_s3, %s5402_s3   ;;  %s3859_s27 = sphi %s4007_s27, %s5401_s27   ;;  %s3855_s26 = sphi %s4005_s26, %s5400_s26   ;;  %s3851_s25 = sphi %s4003_s25, %s5399_s25   ;;  %s3847_s2 = sphi %s4001_s2, %s5398_s2  }
  0x19   : > { %5321 = sst [smem:[#allocation10_spill]] %s3851_s25  ;;  %s3318_s30 = sadd.s32 4294967294, %s3875_s0  }
  0x1a   : > { %5322 = sst [smem:[#allocation11_spill]] %s3855_s26  ;;  %s43_s5 = sadd.s32 1, %s3867_s28 }
  0x1b   : > { %5323 = sst [smem:[#allocation12_spill]] %s3867_s28  ;;  %s46_s22 = sadd.s32 1, %s3871_s29 }
  0x1c   : > { %5324 = sst [smem:[#allocation13_spill]] %s3871_s29  ;;  %p44_p0 = scmp.ge.s32.totalorder %s43_s5, 2 }
  0x1d   : > { %5325 = sst [smem:[#allocation14_spill]] %s3875_s0  ;;  %s584_s23 = sadd.s32 1, %s3855_s26 }
  0x1e   : > { %p594_p1 = scmp.ne.s32.totalorder %s3855_s26, %s3851_s25  ;;  %p595_p2 = scmp.eq.s32.totalorder %s3317_s4, 5 }
  0x1f   : > { %s5406_s5 = smov (%p44_p0, %s43_s5), 0  ;;  %s5408_s22 = smov (!%p44_p0, %s46_s22), %s3871_s29 }
  0x20   : > { %5326 = sst [smem:[#allocation15_spill]] %s5406_s5  ;;  %s581_s1 = ssub.s32 %s3867_s28, %s5406_s5 }
  0x21   : > { %p4053_p3 = por %p595_p2, %p594_p1  ;;  %p48_p4 = scmp.ge.s32.totalorder %s5408_s22, 3 }
  0x22   : > { %p582_p5 = scmp.eq.s32.totalorder %s581_s1, 0  ;;  %p600_p6 = scmp.ne.s32.totalorder %s3851_s25, %s3847_s2 }
  0x23   : > { %s5327_s24 = scalar_select %p4053_p3, 1, 0 }
  0x24   : > { %p601_p7 = scmp.eq.s32.totalorder %s3318_s30, 5  ;;  %s5410_s22 = smov (%p48_p4, %s5408_s22), 0 }
  0x25   : > { %5328 = sst [smem:[#allocation16_spill]] %s5327_s24  ;;  %p3321_p9 = scmp.ge.s32.totalorder %s3875_s0, 1 }
  0x26   : > { %5329 = sst [smem:[#allocation17_spill]] %s5410_s22  ;;  %p4064_p8 = por %p601_p7, %p600_p6 }
  0x27   : > { %s4062_s21 = scalar_select %p582_p5, %s3855_s26, %s584_s23  }
  0x28   : > { %s5331_s20 = scalar_select %p4064_p8, 1, 0 }
  0x29   : > { %5330 = sst [smem:[#allocation18_spill]] %s4062_s21  ;;  %p757_p10 = scmp.lt.s32.totalorder %s3875_s0, 7 }
  0x2a   : > { %5332 = sst [smem:[#allocation19_spill]] %s5331_s20 }
  0x2b   : > { %p758_p11 = pnand %p3321_p9, %p757_p10 }
  0x2d   : > { %761 = sbr.rel (%p758_p11) target bundleno = 3314 (0xcf2), region = 104 }
  0x34   : > { %s5281_s4 = sand.u32 1, %s3851_s25   ;;  %s4072_s30 = sshll.u32 %s3859_s27, 3 }
  0x35   : > { %5333 = sst [smem:[#allocation20_spill]] %s4072_s30  ;;  %s4076_s23 = sshll.u32 %s5281_s4, 3 }
  0x36   : > { %p887_p12 = scmp.lt.s32.totalorder %s4072_s30, 15  ;;  %p893_p13 = scmp.lt.s32.totalorder %s3859_s27, 1 }
  0x37   : > { %p897_p0 = scmp.lt.s32.totalorder %s3863_s3, 2  ;;  %s5334_s21 = sld [smem:[#allocation36_spill]] }
  0x38   : > { %s888_s1 = scalar_select %p887_p12, %s4072_s30, 15 }
  0x39   : > { %s894_s22 = scalar_select %p893_p13, %s3859_s27, 1 }
  0x3a   : > { %s3400_s5 = sshll.u32 %s888_s1, 3  ;;  %s5336_s24 = sld [smem:[#allocation37_spill]] }
  0x3b   : > { %s3326_s20 = sshll.u32 %s894_s22, 3  ;;  %p964_p1 = scmp.eq.s32.totalorder %s3863_s3, 0 }
  0x3c   : > { %s4094_s19 = scalar_select %p897_p0, %s3863_s3, 2 }
  0x3d   : > { %s4086_s26 = scalar_lea.vmem %s5334_s21, %s3400_s5  ;;  %p965_p2 = scmp.eq.s32.totalorder %s3859_s27, 0 }
  0x3e   : > { %5335 = sst [smem:[#allocation21_spill]] %s4086_s26  ;;  %s3401_s21 = sshll.u32 %s4094_s19, 5 }
  0x3f   : > { %s5339_s22 = sld [smem:[#allocation38_spill]]  ;;  %s3403_s16 = sshll.u32 %s4094_s19, 4 }
  0x40   : > { %s4091_s25 = scalar_lea.vmem %s5336_s24, %s3326_s20  ;;  %s5341_s7 = sld [smem:[#allocation41_spill]] }
  0x41   : > { %5337 = sst [smem:[#allocation22_spill]] %s4091_s25  ;;  %s5340_s25 = sld [smem:[#allocation40_spill]] }
  0x42   : > { %s5342_s9 = sld [smem:[#allocation42_spill]]  ;;  %s5345_s11 = sld [smem:[#allocation44_spill]] }
  0x43   : > { %s3337_s0 = sshll.u32 %s4094_s19, 1  ;;  %s4149_s4 = scalar_lea.vmem %s5261_s15, %s3401_s21 }
  0x44   : > { %s5347_s13 = sld [smem:[#allocation45_spill]]  ;;  %s5348_s10 = sld [smem:[#allocation46_spill]] }
  0x45   : > { %s4106_s24 = scalar_lea.vmem %s5339_s22, %s3401_s21  ;;  %s3407_s2 = sshll.u32 %s4094_s19, 7 }
  0x46   : > { %s4121_s29 = scalar_lea.vmem %s5341_s7, %s3403_s16  ;;  %s5353_s20 = sld [smem:[#allocation49_spill]] }
  0x47   : > { %s4111_s30 = scalar_lea.vmem %s5340_s25, %s3401_s21  ;;  %p966_p4 = pnand %p965_p2, %p964_p1 }
  0x48   : > { %s4130_s22 = scalar_lea.vmem %s5342_s9, %s3401_s21  ;;  %s4139_s16 = scalar_lea.vmem %s5345_s11, %s3401_s21  ;;  %vm972_vm0 = vcmask (!%p966_p4), 261120  }
  0x49   : > { %5343 = sst [smem:[#allocation23_spill]] %s4130_s22  ;;  %s5352_s21 = sld [smem:[#allocation48_spill]] }
  0x4a   : > { %5346 = sst [smem:[#allocation24_spill]] %s4139_s16  ;;  %s940_s18 = scalar_lea.vmem %s5347_s13, %s3337_s0 }
  0x4b   : > { %s944_s14 = scalar_lea.vmem %s5348_s10, %s3337_s0  ;;  %s5349_s16 = sld [smem:[#allocation47_spill]]  ;;  %v4162_v0 = vld [vmem:[%s940_s18] sm:$0x3] }
  0x4c   : > { %5350 = vst [vmem:[#allocation25_spill] sm:$0xff] %v4162_v0  ;;  %v4164_v1 = vld [vmem:[%s944_s14] sm:$0x3]  ;;  %s960_s13 = scalar_lea.vmem %s5353_s20, %s4094_s19  ;;  %s885_s10 = scalar_lea.vmem [#allocation6], %s4076_s23 }
  0x4d   : > { %5351 = vst [vmem:[#allocation26_spill] sm:$0xff] %v4164_v1  ;;  %969 = sbr.rel (%p966_p4) target bundleno = 85 (0x55), region = 108  ;;  %s5354_s1 = sld [smem:[#allocation35_spill]] (!%p966_p4) }
  0x4f   : > { %s4169_s5 = scalar_lea.vmem %s5352_s21, %s3407_s2 }
  0x51   : > { %s952_s22 = scalar_lea.vmem %s5349_s16, %s4094_s19 }
  0x53   : > { %v970_v2 = vld [vmem:[%s5354_s1] sm:$0xff] (!%p966_p4)  ;;  %v971_v3 = vld [vmem:[%s5354_s1 + $0x8] sm:$0xff] (!%p966_p4) }
  0x54   : > { %973 = vst.msk [vmem:[#allocation2] sm:$0xff] %vm972_vm0, %v970_v2  ;;  %974 = vst.msk [vmem:[#allocation2 + $0x8] sm:$0xff] %vm972_vm0, %v971_v3 }
  0x55 PF: > { %p3343_p5 = scmp.ne.s32.totalorder %s3859_s27, 0 }
  0x56   : > { %vm980_vm1 = vcmask (!%p3343_p5), 261120   ;;  %v1022_v18 = vld [vmem:[%s4111_s30] sm:$0xff] (!%p3343_p5)  ;;  %v1023_v19 = vld [vmem:[%s4111_s30 + $0x8] sm:$0xff] (!%p3343_p5)  ;;  %v1024_v20 = vld [vmem:[%s4111_s30 + $0x10] sm:$0xff] (!%p3343_p5)  ;;  %v1008_v26 = vlaneseq (!%p3343_p5)  ;;  %s5355_s26 = scalar_lea.vmem (!%p3343_p5), %s5252_s6, %s4094_s19  ;;  %vm1114_vm2 = vcmask (!%p3343_p5), 523264  }
  0x57   : > { %977 = sbr.rel (%p3343_p5) target bundleno = 625 (0x271), region = 112  ;;  %v3571_v21 = vpack.c.bf16 (!%p3343_p5), %v1023_v19, %v1022_v18  ;;  %v1025_v22 = vld [vmem:[%s4111_s30 + $0x18] sm:$0xff] (!%p3343_p5)  ;;  %v3344_v43 = vld [vmem:[%s5355_s26] ss:$0 sm:$0xff] (!%p3343_p5) }
  0x58   : > { %v3575_v23 = vpack.c.bf16 (!%p3343_p5), %v1025_v22, %v1024_v20  ;;  %v1009_v30 = vshrl.u32 (!%p3343_p5), %v1008_v26, 7 }
  0x59   : > { %3572 = vmatprep.subr.bf16.mxu0 (!%p3343_p5), %v3571_v21 }
  0x5a   : > { %3574 = vmatpush3.bf16.msra.mxu0 (!%p3343_p5), %v3571_v21  ;;  %v1010_v32 = vsub.s32 (!%p3343_p5), 0, %v1009_v30 }
  0x5b   : > { %v978_v4 = vld [vmem:[#allocation2] sm:$0xff] (!%p3343_p5)  ;;  %v979_v5 = vld [vmem:[#allocation2 + $0x8] sm:$0xff] (!%p3343_p5)  ;;  %3576 = vmatprep.subr.bf16.mxu0 (!%p3343_p5), %v3575_v23 }
  0x5c   : > { %v981_v6 = vsel (!%p3343_p5), %vm980_vm1, %v978_v4, 0.0  ;;  %v984_v7 = vsel (!%p3343_p5), %vm980_vm1, %v979_v5, 0.0  ;;  %v1011_v33 = vrot.slane (!%p3343_p5), %v4162_v0, %v1010_v32  ;;  %v1017_v36 = vrot.slane (!%p3343_p5), %v4164_v1, %v1010_v32 }
  0x5d   : > { %982 = vadd.xlane.f32.xlu0 (!%p3343_p5), %v981_v6 }
  0x5e   : > { %3578 = vmatpush3.bf16.msra.mxu0 %v3575_v23 }
  0x61   : > { %985 = vadd.xlane.f32.xlu0 %v984_v7 }
  0xea   : > { %v983_v8 = vpop.xlane.xlu0 %982 }
  0xeb   : > { %v988_v9 = vmul.f32 0.03125, %v983_v8 }
  0xed   : > { %v990_v10 = vsub.f32 %v978_v4, %v988_v9 }
  0xee   : > { %v986_v11 = vpop.xlane.xlu0 %985 }
  0xef   : > { %v989_v12 = vmul.f32 0.03125, %v986_v11  ;;  %v992_v13 = vmul.f32 %v990_v10, %v990_v10 }
  0xf1   : > { %v991_v14 = vsub.f32 %v979_v5, %v989_v12  ;;  %v994_v15 = vsel %vm980_vm1, %v992_v13, 0.0 }
  0xf2   : > { %995 = vadd.xlane.f32.xlu1 %v994_v15 }
  0xf3   : > { %v993_v16 = vmul.f32 %v991_v14, %v991_v14 }
  0xf5   : > { %v997_v17 = vsel %vm980_vm1, %v993_v16, 0.0 }
  0xf6   : > { %998 = vadd.xlane.f32.xlu1 %v997_v17 }
 0x17f   : > { %v996_v24 = vpop.xlane.xlu1 %995 }
 0x180   : > { %v1000_v25 = vmul.f32 0.03125, %v996_v24 }
 0x182   : > { %v1002_v27 = vadd.f32 1e-05, %v1000_v25 }
 0x183   : > { %v999_v28 = vpop.xlane.xlu1 %998 }
 0x184   : > { %3711 = vrsqrt.f32 %v1002_v27  ;;  %v1001_v29 = vmul.f32 0.03125, %v999_v28 }
 0x186   : > { %v1003_v31 = vadd.f32 1e-05, %v1001_v29 }
 0x188   : > { %3713 = vrsqrt.f32 %v1003_v31 }
 0x18e   : > { %v3712_v34 = vpop.eup %3711 }
 0x18f   : > { %v1006_v35 = vmul.f32 %v3712_v34, %v990_v10 }
 0x191   : > { %v1012_v37 = vmul.f32 %v1011_v33, %v1006_v35 }
 0x192   : > { %v3714_v38 = vpop.eup %3713 }
 0x193   : > { %v1007_v39 = vmul.f32 %v3714_v38, %v991_v14  ;;  %v1018_v40 = vadd.f32 %v1017_v36, %v1012_v37 }
 0x195   : > { %v1013_v41 = vmul.f32 %v1011_v33, %v1007_v39  ;;  %1020 = vst.msk [vmem:[#allocation4] sm:$0xff] %vm980_vm1, %v1018_v40  ;;  %3469 = vmatprep.mubr.msk.f32.mxu0 %vm980_vm1, %v1018_v40 }
 0x197   : > { %v1019_v42 = vadd.f32 %v1017_v36, %v1013_v41 }
 0x199   : > { %1021 = vst.msk [vmem:[#allocation4 + $0x8] sm:$0xff] %vm980_vm1, %v1019_v42  ;;  %3470 = vmatmul.mubr.msk.f32.vlgmr.msra.gmra.mrb[0].mxu0 %vm980_vm1, %v1019_v42 }
 0x26c   : > { %v3471_v44 = vpop.f32.mrb[0].mxu0 }
 0x26d   : > { %v1111_v45 = vadd.f32 %v3471_v44, %v3344_v43  ;;  %v1105_v46 = vpop.f32.mrb[1].mxu0 }
 0x26e   : > { %v1106_v47 = vadd.f32 %v3344_v43, %v1105_v46 }
 0x26f   : > { %1116 = vst.msk [vmem:[#allocation5 + $0x8] sm:$0xff] %vm1114_vm2, %v1111_v45 }
 0x270   : > { %1115 = vst.msk [vmem:[#allocation5] sm:$0xff] %vm1114_vm2, %v1106_v47 }
 0x271 PF: > { %v1120_v48 = vld [vmem:[%s4106_s24] sm:$0xff]  ;;  %v1121_v49 = vld [vmem:[%s4106_s24 + $0x8] sm:$0xff]  ;;  %v1413_v50 = vlaneseq  ;;  %v5287_v51 = vmov 0.0|0.0   ;;  %s5356_s14 = sld [smem:[#allocation21_spill]]  ;;  %s5357_s28 = sld [smem:[#allocation20_spill]]  ;;  %v1122_v54 = vld [vmem:[%s4106_s24 + $0x10] sm:$0xff] }
 0x272   : > { %3579 = vmatprep.subr.bf16.mxu0 %v5287_v51  ;;  %v3580_v52 = vpack.c.bf16 %v1121_v49, %v1120_v48  ;;  %v3715_v53 = vld [vmem:[%s4121_s29] sm:$0xff]   ;;  %v1123_v55 = vld [vmem:[%s4106_s24 + $0x18] sm:$0xff]  ;;  %vm3878_vm3 = vmmov 0   ;;  %v5289_v56 = vmov 0.0   ;;  %v3716_v58 = vld [vmem:[%s4121_s29 + $0x8] sm:$0xff]   ;;  %vm1131_vm4 = vcmask 261120   ;;  %s5362_s11 = scalar_lea.vmem %s5254_s8, %s4094_s19 }
 0x273   : > { %3480 = vmatprep.mubr.msk.f32.mxu0 %vm3878_vm3, %v5289_v56  ;;  %3483 = vmatprep.subr.bf16.mxu1 %v3715_v53  ;;  %v3583_v57 = vpack.c.bf16 %v1123_v55, %v1122_v54  ;;  %s5358_s2 = sld [smem:[#allocation22_spill]]  ;;  %v4217_v60 = vshrl.u32 %v1413_v50, 7  ;;  %v3880_v22 = vmov 1966171168   ;;  %s5360_s17 = sld [smem:[#allocation39_spill]]  ;;  %vm1891_vm6 = vcmask 64512  }
 0x274   : > { %3581 = vmatpush3.bf16.msra.mxu0 %v3580_v52  ;;  %3484 = vmatpush3.bf16.msra.mxu1 %v3715_v53  ;;  %v1411_v23 = vunpack.c.l.s4 %v3880_v22  ;;  %v4280_v31 = vld [vmem:[%s5362_s11] ss:$0 sm:$0xff]  ;;  %s3881_s0 = smov 112   ;;  %s3882_s16 = smov 120  }
 0x275   : > { %3582 = vmatprep.subr.bf16.mxu0 %v5287_v51  ;;  %3485 = vmatprep.subr.bf16.mxu1 %v3716_v58  ;;  %v4224_v2 = vsub.s32 0, %v4217_v60  ;;  %v4230_v3 = vsub.s32 1, %v4217_v60  ;;  %v1763_v7 = vsub.s32 2, %v4217_v60  ;;  %v1774_v11 = vsub.s32 3, %v4217_v60  ;;  %s3883_s18 = smov 104   ;;  %s3884_s30 = smov 8  }
 0x276   : > { %v1785_v16 = vsub.s32 4, %v4217_v60  ;;  %v1796_v18 = vsub.s32 5, %v4217_v60  ;;  %v1807_v20 = vsub.s32 6, %v4217_v60  ;;  %v1412_v24 = vunpack.c.0.s8 %v1411_v23  ;;  %v4291_v40 = vld [vmem:[#allocation5 + $0x8] sm:$0xff]  ;;  %s3885_s20 = smov 16   ;;  %s3886_s26 = smov 24  }
 0x277   : > { %v3717_v59 = vld [vmem:[%s5356_s14] sm:$0xff]   ;;  %s1118_s24 = scalar_lea.vmem [#allocation4], %s5357_s28  ;;  %v3718_v62 = vld [vmem:[%s5356_s14 + $0x8] sm:$0xff]   ;;  %v3719_v63 = vld [vmem:[%s5356_s14 + $0x10] sm:$0xff]   ;;  %5359 = vst [vmem:[#allocation27_spill] sm:$0xff] %v4230_v3  ;;  %s3889_s29 = smov 96  }
 0x278   : > { %v1119_v61 = vld [vmem:[%s1118_s24] sm:$0xff]  ;;  %3487 = vmatprep.mubr.msk.bf16.mxu1 %vm1131_vm4, %v3717_v59  ;;  %3584 = vmatpush3.bf16.msra.mxu0 %v3583_v57  ;;  %v3720_v8 = vld [vmem:[%s5356_s14 + $0x18] sm:$0xff]   ;;  %v3722_v13 = vld [vmem:[%s5356_s14 + $0x28] sm:$0xff]   ;;  %v4273_v28 = vsub.s32 %v1412_v24, %v4217_v60  ;;  %s3888_s24 = smov 64   ;;  %s5382_s25 = sld [smem:[#allocation24_spill]] }
 0x279   : > { %3486 = vmatpush3.bf16.msra.mxu1 %v3716_v58  ;;  %3585 = vmatprep.subr.bf16.mxu0 %v5287_v51  ;;  %v4234_v4 = vld [vmem:[%s5358_s2] sm:$0xff]  ;;  %v3723_v14 = vld [vmem:[%s5356_s14 + $0x30] sm:$0xff]   ;;  %v3724_v15 = vld [vmem:[%s5356_s14 + $0x38] sm:$0xff]   ;;  %s5361_s21 = scalar_lea.vmem %s5360_s17, %s4094_s19  ;;  %s5371_s2 = sld [smem:[#allocation23_spill]] }
 0x27a   : > { %3603 = vmatprep.subr.bf16.mxu1 %v5287_v51  ;;  %v1742_v5 = vrot.slane %v4234_v4, %v4224_v2  ;;  %v1753_v6 = vrot.slane %v4234_v4, %v4230_v3  ;;  %v3721_v9 = vld [vmem:[%s5356_s14 + $0x20] sm:$0xff]   ;;  %v1764_v10 = vrot.slane %v4234_v4, %v1763_v7  ;;  %v1775_v12 = vrot.slane %v4234_v4, %v1774_v11  ;;  %v4289_v39 = vld [vmem:[#allocation5] sm:$0xff]  ;;  %s3887_s14 = smov 32   ;;  %s2684_s11 = scalar_lea.vmem [#allocation2], %s5357_s28 }
 0x27b   : > { %3481 = vmatmul.mubr.msk.f32.vlgmr.msra.gmra.mrb[0].mxu0 %vm1131_vm4, %v1119_v61  ;;  %v1786_v17 = vrot.slane %v4234_v4, %v1785_v16  ;;  %v1797_v19 = vrot.slane %v4234_v4, %v1796_v18  ;;  %v1808_v21 = vrot.slane %v4234_v4, %v1807_v20  ;;  %v3348_v25 = vld [vmem:[%s5361_s21] ss:$0 sm:$0xff]  ;;  %s5380_s21 = sld [smem:[#allocation43_spill]]  ;;  %p3001_p6 = scmp.eq.s32.totalorder %s3863_s3, 2 }
 0x27c   : > { %3488 = vmatmul.mubr.msk.bf16.vlgmr.msra.gmra.mrb[0].mxu1 %vm1131_vm4, %v3718_v62  ;;  %3511 = vmatprep.mubr.msk.f32.mxu0 %vm3878_vm3, %v5289_v56  ;;  %s5390_s7 = sld [smem:[#allocation51_spill]]  ;;  %p3395_p7 = scmp.ne.s32.totalorder %s3859_s27, 1 }
 0x27d   : > { %3491 = vmatprep.mubr.msk.bf16.mxu1 %vm1131_vm4, %v3719_v63  ;;  %1748 = vbcast.lane.b32.xlu1 %v1742_v5, 264 }
 0x27e   : > { %1744 = vbcast.lane.b32.xlu0 %v1742_v5, 256 }
 0x281   : > { %1759 = vbcast.lane.b32.xlu1 %v1753_v6, 264  ;;  %s5381_s9 = scalar_lea.vmem %s5380_s21, %s4094_s19 }
 0x282   : > { %1755 = vbcast.lane.b32.xlu0 %v1753_v6, 256 }
 0x284   : > { %3492 = vmatmul.mubr.msk.bf16.gmra.mrb[4].mxu1 %vm1131_vm4, %v3720_v8 }
 0x285   : > { %3495 = vmatprep.mubr.msk.bf16.mxu1 %vm1131_vm4, %v3721_v9  ;;  %1770 = vbcast.lane.b32.xlu1 %v1764_v10, 264 }
 0x286   : > { %1766 = vbcast.lane.b32.xlu0 %v1764_v10, 256 }
 0x289   : > { %1781 = vbcast.lane.b32.xlu1 %v1775_v12, 264 }
 0x28a   : > { %1777 = vbcast.lane.b32.xlu0 %v1775_v12, 256 }
 0x28c   : > { %3496 = vmatmul.mubr.msk.bf16.gmra.mrb[8].mxu1 %vm1131_vm4, %v3722_v13 }
 0x28d   : > { %3499 = vmatprep.mubr.msk.bf16.mxu1 %vm1131_vm4, %v3723_v14  ;;  %1792 = vbcast.lane.b32.xlu1 %v1786_v17, 264 }
 0x28e   : > { %1788 = vbcast.lane.b32.xlu0 %v1786_v17, 256 }
 0x291   : > { %1803 = vbcast.lane.b32.xlu1 %v1797_v19, 264 }
 0x292   : > { %1799 = vbcast.lane.b32.xlu0 %v1797_v19, 256 }
 0x294   : > { %3500 = vmatmul.mubr.msk.bf16.gmra.mrb[12].mxu1 %vm1131_vm4, %v3724_v15 }
 0x295   : > { %3568 = vmatprep.mubr.msk.f32.mxu1 %vm3878_vm3, %v5289_v56  ;;  %1814 = vbcast.lane.b32.xlu1 %v1808_v21, 264 }
 0x296   : > { %1810 = vbcast.lane.b32.xlu0 %v1808_v21, 256 }
 0x34e   : > { %v1201_v26 = vpop.f32.mrb[0].mxu0 }
 0x34f   : > { %v4270_v27 = vadd.f32 %v3348_v25, %v1201_v26  ;;  %v3482_v29 = vpop.f32.mrb[1].mxu0  ;;  %v3489_v30 = vpop.f32.mrb[0].mxu1 }
 0x350   : > { %v1345_v32 = vpop.f32.mrb[1].mxu1  ;;  %v1354_v54 = vadd.f32 %v3489_v30, %v4280_v31 }
 0x351   : > { %v4283_v33 = vmul.f32 0.5, %v4270_v27  ;;  %v3490_v34 = vpop.f32.mrb[2].mxu1  ;;  %v1346_v37 = vadd.f32 %v4280_v31, %v1345_v32 }
 0x352   : > { %v1348_v35 = vpop.f32.mrb[3].mxu1  ;;  %v4315_v57 = vadd.f32 %v1354_v54, %v4289_v39  ;;  %v1357_v58 = vadd.f32 %v3490_v34, %v4280_v31 }
 0x353   : > { %v1416_v36 = vrot.slane %v4283_v33, %v4273_v28  ;;  %v1349_v38 = vadd.f32 %v4280_v31, %v1348_v35  ;;  %v4295_v43 = vadd.f32 %v1346_v37, %v4289_v39 }
 0x354   : > { %v4330_v6 = vadd.f32 %v1357_v58, %v4291_v40 }
 0x355   : > { %v1424_v41 = vcombine.high %v1416_v36, %v1416_v36  ;;  %v1432_v42 = vrot.slane %v1416_v36, %v4273_v28  ;;  %v4299_v45 = vadd.f32 %v1349_v38, %v4291_v40  ;;  %v1409_v38 = vcombine.high %v4283_v33, %v4283_v33 }
 0x357   : > { %v1477_v44 = vrot.slane %v1432_v42, %v4224_v2  ;;  %v3493_v46 = vpop.f32.mrb[4].mxu1  ;;  %v1446_v48 = vrot.slane %v1424_v41, %v4273_v28  ;;  %v1454_v16 = vcombine.high %v1432_v42, %v1432_v42  ;;  %v1423_v42 = vrot.slane %v1409_v38, %v4273_v28 }
 0x358   : > { %v1361_v47 = vpop.f32.mrb[5].mxu1  ;;  %v1370_v26 = vadd.f32 %v3493_v46, %v4280_v31 }
 0x359   : > { %v4303_v49 = vmul.f32 %v1477_v44, %v4295_v43  ;;  %v4306_v50 = vmul.f32 %v1477_v44, %v4299_v45  ;;  %v3494_v52 = vpop.f32.mrb[6].mxu1  ;;  %v1481_v55 = vrot.slane %v1446_v48, %v4224_v2  ;;  %v1456_v11 = vcombine.high %v1446_v48, %v1446_v48 }
 0x35a   : > { %v1364_v53 = vpop.f32.mrb[7].mxu1  ;;  %v1373_v12 = vadd.f32 %v3494_v52, %v4280_v31  ;;  %v1362_v15 = vadd.f32 %v4280_v31, %v1361_v47  ;;  %v1485_v30 = vrot.slane %v1454_v16, %v4224_v2  ;;  %v4382_v34 = vadd.f32 %v1370_v26, %v4289_v39 }
 0x35b   : > { %1612 = vrot.lane.b32.xlu1 %v4306_v50, %s3881_s0  ;;  %1546 = vrot.lane.b32.xlu0 %v4303_v49, %s3882_s16  ;;  %v4325_v62 = vmul.f32 %v1481_v55, %v4315_v57  ;;  %v4337_v7 = vmul.f32 %v1481_v55, %v4330_v6  ;;  %v1489_v23 = vrot.slane %v1456_v11, %v4224_v2  ;;  %v1818_v26 = vsub.s32 7, %v4217_v60 }
 0x35c   : > { %v4364_v24 = vadd.f32 %v1373_v12, %v4291_v40  ;;  %v4371_v29 = vadd.f32 %v1362_v15, %v4289_v39  ;;  %5367 = vst [vmem:[#allocation32_spill] sm:$0xff] %v4382_v34  ;;  %v1365_v36 = vadd.f32 %v4280_v31, %v1364_v53  ;;  %v1425_v33 = vcombine.high %v1423_v42, %v1423_v42  ;;  %v4491_v12 = vpop.permute.xlu1 %1748 }
 0x35d   : > { %v4393_v37 = vmul.f32 %v1489_v23, %v4382_v34  ;;  %v1819_v38 = vrot.slane %v4234_v4, %v1818_v26  ;;  %vm1828_vm5 = vcmp.gt.f32.partialorder %v4491_v12, 0.5 }
 0x35e   : > { %v4379_v32 = vmul.f32 %v1489_v23, %v4364_v24  ;;  %v4385_v35 = vmul.f32 %v1485_v30, %v4371_v29  ;;  %v4402_v41 = vadd.f32 %v1365_v36, %v4291_v40  ;;  %v1453_v48 = vrot.slane %v1425_v33, %v4273_v28 }
 0x35f   : > { %v3497_v59 = vpop.f32.mrb[8].mxu1  ;;  %1676 = vrot.lane.b32.xlu1 %v4306_v50, %s3883_s18  ;;  %1548 = vrot.lane.b32.xlu0 %v4306_v50, %s3882_s16 }
 0x360   : > { %v4322_v61 = vpop.f32.mrb[9].mxu1  ;;  %v4410_v44 = vmul.f32 %v1485_v30, %v4402_v41  ;;  %v1386_v47 = vadd.f32 %v3497_v59, %v4280_v31  ;;  %v1497_v54 = vrot.slane %v1453_v48, %v4224_v2  ;;  %v4501_v15 = vpop.permute.xlu1 %1759 }
 0x361   : > { %v3498_v63 = vpop.f32.mrb[10].mxu1  ;;  %vm1830_vm8 = vcmp.gt.f32.partialorder %v4501_v15, 0.5 }
 0x362   : > { %v4327_v5 = vpop.f32.mrb[11].mxu1  ;;  %v1389_v46 = vadd.f32 %v3498_v63, %v4280_v31  ;;  %v4427_v53 = vadd.f32 %v1386_v47, %v4289_v39  ;;  %v1378_v63 = vadd.f32 %v4280_v31, %v4322_v61 }
 0x363   : > { %1550 = vrot.lane.b32.xlu1 %v4325_v62, %s3882_s16  ;;  %1610 = vrot.lane.b32.xlu0 %v4303_v49, %s3881_s0  ;;  %v1381_v59 = vadd.f32 %v4280_v31, %v4327_v5 }
 0x364   : > { %v4424_v52 = vadd.f32 %v1389_v46, %v4291_v40  ;;  %5369 = vst [vmem:[#allocation34_spill] sm:$0xff] %v4427_v53  ;;  %v4438_v58 = vmul.f32 %v1497_v54, %v4427_v53  ;;  %v4518_v23 = vpop.permute.xlu1 %1770 }
 0x365   : > { %vm1832_vm12 = vcmp.gt.f32.partialorder %v4518_v23, 0.5 }
 0x366   : > { %5368 = vst [vmem:[#allocation33_spill] sm:$0xff] %v4424_v52  ;;  %v4435_v55 = vmul.f32 %v1497_v54, %v4424_v52 }
 0x367   : > { %v3501_v8 = vpop.f32.mrb[12].mxu1  ;;  %1552 = vrot.lane.b32.xlu1 %v4337_v7, %s3882_s16  ;;  %1674 = vrot.lane.b32.xlu0 %v4303_v49, %s3883_s18 }
 0x368   : > { %v1402_v9 = vadd.f32 %v3501_v8, %v4280_v31  ;;  %v1393_v10 = vpop.f32.mrb[13].mxu1  ;;  %v1439_v8 = vrot.slane %v1423_v42, %v4273_v28  ;;  %v4529_v30 = vpop.permute.xlu1 %1781 }
 0x369   : > { %v1394_v13 = vadd.f32 %v4280_v31, %v1393_v10  ;;  %v3502_v14 = vpop.f32.mrb[14].mxu1  ;;  %v4457_v10 = vadd.f32 %v1378_v63, %v4289_v39  ;;  %vm1834_vm11 = vcmp.gt.f32.partialorder %v4529_v30, 0.5 }
 0x36a   : > { %v4348_v17 = vadd.f32 %v1402_v9, %v4289_v39  ;;  %v1405_v18 = vadd.f32 %v3502_v14, %v4280_v31  ;;  %v1396_v19 = vpop.f32.mrb[15].mxu1  ;;  %v4454_v9 = vadd.f32 %v1381_v59, %v4291_v40  ;;  %v1493_v11 = vrot.slane %v1439_v8, %v4224_v2 }
 0x36b   : > { %v4352_v20 = vadd.f32 %v1394_v13, %v4289_v39  ;;  %v1397_v21 = vadd.f32 %v4280_v31, %v1396_v19  ;;  %1616 = vrot.lane.b32.xlu1 %v4337_v7, %s3881_s0  ;;  %1614 = vrot.lane.b32.xlu0 %v4325_v62, %s3881_s0  ;;  %v1457_v39 = vcombine.high %v1453_v48, %v1453_v48  ;;  %v4495_v13 = vpop.permute.xlu0 %1744 }
 0x36c   : > { %5363 = vst [vmem:[#allocation28_spill] sm:$0xff] %v4348_v17  ;;  %v4358_v22 = vadd.f32 %v1405_v18, %v4291_v40  ;;  %v4465_v28 = vmul.f32 %v1493_v11, %v4454_v9  ;;  %v4468_v31 = vmul.f32 %v1493_v11, %v4457_v10  ;;  %v1455_v14 = vcombine.high %v1439_v8, %v1439_v8  ;;  %v4538_v42 = vpop.permute.xlu1 %1792 }
 0x36d   : > { %5364 = vst [vmem:[#allocation29_spill] sm:$0xff] %v4352_v20  ;;  %v4367_v25 = vadd.f32 %v1397_v21, %v4291_v40  ;;  %v1505_v40 = vrot.slane %v1457_v39, %v4224_v2  ;;  %vm1827_vm7 = vcmp.gt.f32.partialorder %v4495_v13, 0.5  ;;  %vm1836_vm1 = vcmp.gt.f32.partialorder %v4538_v42, 0.5 }
 0x36e   : > { %5365 = vst [vmem:[#allocation30_spill] sm:$0xff] %v4358_v22  ;;  %v1501_v18 = vrot.slane %v1455_v14, %v4224_v2 }
 0x36f   : > { %5366 = vst [vmem:[#allocation31_spill] sm:$0xff] %v4367_v25  ;;  %1680 = vrot.lane.b32.xlu1 %v4337_v7, %s3883_s18  ;;  %1678 = vrot.lane.b32.xlu0 %v4325_v62, %s3883_s18  ;;  %v4484_v61 = vmul.f32 %v1505_v40, %v4358_v22  ;;  %v4487_v5 = vmul.f32 %v1505_v40, %v4348_v17  ;;  %v4503_v16 = vpop.permute.xlu0 %1755 }
 0x370   : > { %v4511_v19 = vmul.f32 %v1501_v18, %v4367_v25  ;;  %v4514_v21 = vmul.f32 %v1501_v18, %v4352_v20  ;;  %v4542_v33 = vpop.permute.xlu1 %1803  ;;  %vm1829_vm9 = vcmp.gt.f32.partialorder %v4503_v16, 0.5 }
 0x371   : > { %vm1838_vm14 = vcmp.gt.f32.partialorder %v4542_v33, 0.5 }
 0x373   : > { %1560 = vrot.lane.b32.xlu1 %v4379_v32, %s3882_s16  ;;  %1554 = vrot.lane.b32.xlu0 %v4385_v35, %s3882_s16  ;;  %v4522_v2 = vpop.permute.xlu0 %1766 }
 0x374   : > { %v4546_v47 = vpop.permute.xlu1 %1814  ;;  %vm1831_vm10 = vcmp.gt.f32.partialorder %v4522_v2, 0.5 }
 0x377   : > { %1624 = vrot.lane.b32.xlu1 %v4379_v32, %s3881_s0  ;;  %1558 = vrot.lane.b32.xlu0 %v4393_v37, %s3882_s16  ;;  %v4531_v36 = vpop.permute.xlu0 %1777 }
 0x378   : > { %vm1833_vm13 = vcmp.gt.f32.partialorder %v4531_v36, 0.5 }
 0x37b   : > { %1688 = vrot.lane.b32.xlu1 %v4379_v32, %s3883_s18  ;;  %1618 = vrot.lane.b32.xlu0 %v4385_v35, %s3881_s0  ;;  %v4540_v60 = vpop.permute.xlu0 %1788 }
 0x37c   : > { %vm1835_vm2 = vcmp.gt.f32.partialorder %v4540_v60, 0.5 }
 0x37f   : > { %1556 = vrot.lane.b32.xlu1 %v4410_v44, %s3882_s16  ;;  %1622 = vrot.lane.b32.xlu0 %v4393_v37, %s3881_s0  ;;  %v4544_v46 = vpop.permute.xlu0 %1799 }
 0x380   : > { %vm1837_vm15 = vcmp.gt.f32.partialorder %v4544_v46, 0.5 }
 0x383   : > { %1620 = vrot.lane.b32.xlu1 %v4410_v44, %s3881_s0  ;;  %1682 = vrot.lane.b32.xlu0 %v4385_v35, %s3883_s18  ;;  %v4548_v48 = vpop.permute.xlu0 %1810 }
 0x387   : > { %1684 = vrot.lane.b32.xlu1 %v4410_v44, %s3883_s18  ;;  %1686 = vrot.lane.b32.xlu0 %v4393_v37, %s3883_s18 }
 0x38b   : > { %1568 = vrot.lane.b32.xlu1 %v4435_v55, %s3882_s16  ;;  %1566 = vrot.lane.b32.xlu0 %v4438_v58, %s3882_s16 }
 0x38f   : > { %1632 = vrot.lane.b32.xlu1 %v4435_v55, %s3881_s0  ;;  %1630 = vrot.lane.b32.xlu0 %v4438_v58, %s3881_s0 }
 0x393   : > { %1696 = vrot.lane.b32.xlu1 %v4435_v55, %s3883_s18  ;;  %1694 = vrot.lane.b32.xlu0 %v4438_v58, %s3883_s18 }
 0x397   : > { %1564 = vrot.lane.b32.xlu1 %v4465_v28, %s3882_s16  ;;  %1562 = vrot.lane.b32.xlu0 %v4468_v31, %s3882_s16 }
 0x39b   : > { %1628 = vrot.lane.b32.xlu1 %v4465_v28, %s3881_s0  ;;  %1626 = vrot.lane.b32.xlu0 %v4468_v31, %s3881_s0 }
 0x39f   : > { %1692 = vrot.lane.b32.xlu1 %v4465_v28, %s3883_s18  ;;  %1690 = vrot.lane.b32.xlu0 %v4468_v31, %s3883_s18 }
 0x3a3   : > { %1576 = vrot.lane.b32.xlu1 %v4484_v61, %s3882_s16  ;;  %1574 = vrot.lane.b32.xlu0 %v4487_v5, %s3882_s16 }
 0x3a7   : > { %1640 = vrot.lane.b32.xlu1 %v4484_v61, %s3881_s0  ;;  %1638 = vrot.lane.b32.xlu0 %v4487_v5, %s3881_s0 }
 0x3ab   : > { %1704 = vrot.lane.b32.xlu1 %v4484_v61, %s3883_s18  ;;  %1702 = vrot.lane.b32.xlu0 %v4487_v5, %s3883_s18 }
 0x3af   : > { %1572 = vrot.lane.b32.xlu1 %v4511_v19, %s3882_s16  ;;  %1570 = vrot.lane.b32.xlu0 %v4514_v21, %s3882_s16 }
 0x3b3   : > { %1636 = vrot.lane.b32.xlu1 %v4511_v19, %s3881_s0  ;;  %1634 = vrot.lane.b32.xlu0 %v4514_v21, %s3881_s0 }
 0x3b7   : > { %1700 = vrot.lane.b32.xlu1 %v4511_v19, %s3883_s18  ;;  %1698 = vrot.lane.b32.xlu0 %v4514_v21, %s3883_s18  ;;  %s5383_s18 = scalar_lea.vmem %s5258_s12, %s4094_s19 }
 0x3bb   : > { %1825 = vbcast.lane.b32.xlu1 %v1819_v38, 264  ;;  %1821 = vbcast.lane.b32.xlu0 %v1819_v38, 256 }
 0x3cd   : > { %v1613_v54 = vpop.permute.xlu1 %1612  ;;  %v1547_v59 = vpop.permute.xlu0 %1546 }
 0x3ce   : > { %v1594_v14 = vadd.f32 %v1547_v59, %v4303_v49 }
 0x3d1   : > { %v1677_v4 = vpop.permute.xlu1 %1676  ;;  %v1549_v63 = vpop.permute.xlu0 %1548 }
 0x3d2   : > { %v1595_v8 = vadd.f32 %v1549_v63, %v4306_v50 }
 0x3d4   : > { %v1659_v11 = vadd.f32 %v1613_v54, %v1595_v8 }
 0x3d5   : > { %v1551_v39 = vpop.permute.xlu1 %1550  ;;  %v1611_v40 = vpop.permute.xlu0 %1610 }
 0x3d6   : > { %v1723_v18 = vadd.f32 %v1677_v4, %v1659_v11  ;;  %v1658_v26 = vadd.f32 %v1611_v40, %v1594_v14  ;;  %v1596_v8 = vadd.f32 %v1551_v39, %v4325_v62 }
 0x3d8   : > { %v1876_v56 = vsel %vm1828_vm5, %v1723_v18, -1e+30 }
 0x3d9   : > { %v1553_v38 = vpop.permute.xlu1 %1552  ;;  %v1675_v51 = vpop.permute.xlu0 %1674  ;;  %v1893_v63 = vsel %vm1891_vm6, %v1876_v56, -inf }
 0x3da   : > { %v1722_v1 = vadd.f32 %v1675_v51, %v1658_v26  ;;  %v1597_v59 = vadd.f32 %v1553_v38, %v4337_v7 }
 0x3dc   : > { %v1875_v50 = vsel %vm1827_vm7, %v1722_v1, -1e+30 }
 0x3dd   : > { %v1617_v54 = vpop.permute.xlu1 %1616  ;;  %v1892_v49 = vsel %vm1891_vm6, %v1875_v50, -inf  ;;  %v1615_v4 = vpop.permute.xlu0 %1614 }
 0x3de   : > { %v1894_v11 = vmax.f32 %v1892_v49, %v1893_v63  ;;  %v1661_v40 = vadd.f32 %v1617_v54, %v1597_v59  ;;  %v1660_v18 = vadd.f32 %v1615_v4, %v1596_v8 }
 0x3e0   : > { %v1895_v14 = vrot.slane %v1894_v11, 4 }
 0x3e1   : > { %v1681_v51 = vpop.permute.xlu1 %1680  ;;  %v1679_v26 = vpop.permute.xlu0 %1678 }
 0x3e2   : > { %v1725_v0 = vadd.f32 %v1681_v51, %v1661_v40  ;;  %v1896_v1 = vmax.f32 %v1894_v11, %v1895_v14  ;;  %v1724_v3 = vadd.f32 %v1679_v26, %v1660_v18 }
 0x3e4   : > { %v1878_v17 = vsel %vm1830_vm8, %v1725_v0, -1e+30  ;;  %v1897_v7 = vrot.slane %v1896_v1, 2  ;;  %v1877_v62 = vsel %vm1829_vm9, %v1724_v3, -1e+30 }
 0x3e5   : > { %v1902_v39 = vsel %vm1891_vm6, %v1878_v17, -inf  ;;  %v1561_v38 = vpop.permute.xlu1 %1560  ;;  %v1901_v54 = vsel %vm1891_vm6, %v1877_v62, -inf  ;;  %v1555_v63 = vpop.permute.xlu0 %1554 }
 0x3e6   : > { %v1898_v49 = vmax.f32 %v1896_v1, %v1897_v7  ;;  %v1903_v59 = vmax.f32 %v1901_v54, %v1902_v39  ;;  %v1598_v39 = vadd.f32 %v1555_v63, %v4385_v35  ;;  %v1601_v54 = vadd.f32 %v1561_v38, %v4379_v32 }
 0x3e8   : > { %v1899_v4 = vrot.slane %v1898_v49, 1  ;;  %v1904_v8 = vrot.slane %v1903_v59, 4 }
 0x3e9   : > { %v1625_v11 = vpop.permute.xlu1 %1624  ;;  %v1559_v40 = vpop.permute.xlu0 %1558 }
 0x3ea   : > { %v1900_v14 = vmax.f32 %v1898_v49, %v1899_v4  ;;  %v1905_v18 = vmax.f32 %v1903_v59, %v1904_v8  ;;  %v1600_v8 = vadd.f32 %v1559_v40, %v4393_v37 }
 0x3ec   : > { %v1964_v51 = vsub.f32 %v1875_v50, %v1900_v14  ;;  %v1965_v0 = vsub.f32 %v1876_v56, %v1900_v14  ;;  %v1906_v26 = vrot.slane %v1905_v18, 2  ;;  %v1665_v50 = vadd.f32 %v1625_v11, %v1601_v54 }
 0x3ed   : > { %v1689_v22 = vpop.permute.xlu1 %1688  ;;  %v1619_v20 = vpop.permute.xlu0 %1618 }
 0x3ee   : > { %v1980_v3 = vmul.f32 1.442695, %v1964_v51  ;;  %v1982_v25 = vmul.f32 1.442695, %v1965_v0  ;;  %v1907_v53 = vmax.f32 %v1905_v18, %v1906_v26  ;;  %v1662_v56 = vadd.f32 %v1619_v20, %v1598_v39 }
 0x3ef   : > { %v1729_v26 = vadd.f32 %v1689_v22, %v1665_v50 }
 0x3f0   : > { %3725 = vpow2.f32 %v1980_v3  ;;  %v1908_v52 = vrot.slane %v1907_v53, 1 }
 0x3f1   : > { %v1557_v34 = vpop.permute.xlu1 %1556  ;;  %3727 = vpow2.f32 %v1982_v25  ;;  %v1623_v1 = vpop.permute.xlu0 %1622 }
 0x3f2   : > { %v1909_v7 = vmax.f32 %v1907_v53, %v1908_v52  ;;  %v1599_v14 = vadd.f32 %v1557_v34, %v4410_v44  ;;  %v1664_v35 = vadd.f32 %v1623_v1, %v1600_v8  ;;  %v5370_v44 = vmov 0.0  }
 0x3f3   : > { %v3369_v22 = vsel %vm1827_vm7, 1.0, %v5370_v44  ;;  %v4586_v52 = vsel %vm1834_vm11, %v1729_v26, -1e+30  ;;  %v3370_v38 = vsel %vm1828_vm5, 1.0, %v5370_v44  ;;  %vm1840_vm7 = vcmp.gt.f32.partialorder %v4546_v47, 0.5 }
 0x3f4   : > { %v1966_v49 = vsub.f32 %v1877_v62, %v1909_v7  ;;  %v1967_v59 = vsub.f32 %v1878_v17, %v1909_v7  ;;  %v1920_v39 = vsel %vm1891_vm6, %v4586_v52, -inf }
 0x3f5   : > { %v1621_v4 = vpop.permute.xlu1 %1620  ;;  %v1683_v18 = vpop.permute.xlu0 %1682 }
 0x3f6   : > { %v1984_v51 = vmul.f32 1.442695, %v1966_v49  ;;  %v1986_v0 = vmul.f32 1.442695, %v1967_v59  ;;  %v1726_v25 = vadd.f32 %v1683_v18, %v1662_v56  ;;  %v1663_v3 = vadd.f32 %v1621_v4, %v1599_v14 }
 0x3f8   : > { %3729 = vpow2.f32 %v1984_v51  ;;  %v4578_v17 = vsel %vm1831_vm10, %v1726_v25, -1e+30 }
 0x3f9   : > { %v1685_v32 = vpop.permute.xlu1 %1684  ;;  %3731 = vpow2.f32 %v1986_v0  ;;  %v1687_v34 = vpop.permute.xlu0 %1686  ;;  %v1910_v11 = vsel %vm1891_vm6, %v4578_v17, -inf }
 0x3fa   : > { %v1727_v20 = vadd.f32 %v1685_v32, %v1663_v3  ;;  %v3726_v37 = vpop.eup %3725  ;;  %v1728_v53 = vadd.f32 %v1687_v34, %v1664_v35  ;;  %v3372_v32 = vsel %vm1830_vm8, 1.0, %v5370_v44  ;;  %vm1839_vm8 = vcmp.gt.f32.partialorder %v4548_v48, 0.5 }
 0x3fb   : > { %v3728_v62 = vpop.eup %3727  ;;  %v4596_v13 = vmul.f32 %v3726_v37, %v3369_v22 }
 0x3fc   : > { %v4594_v63 = vsel %vm1832_vm12, %v1727_v20, -1e+30  ;;  %v4604_v1 = vsel %vm1833_vm13, %v1728_v53, -1e+30  ;;  %v4606_v7 = vmul.f32 %v3728_v62, %v3370_v38  ;;  %v3371_v20 = vsel %vm1829_vm9, 1.0, %v5370_v44 }
 0x3fd   : > { %v1911_v40 = vsel %vm1891_vm6, %v4594_v63, -inf  ;;  %v1569_v12 = vpop.permute.xlu1 %1568  ;;  %v1919_v49 = vsel %vm1891_vm6, %v4604_v1, -inf  ;;  %v1567_v59 = vpop.permute.xlu0 %1566  ;;  %v2044_v50 = vsel %vm1891_vm6, %v4596_v13, 0.0 }
 0x3fe   : > { %v1912_v54 = vmax.f32 %v1910_v11, %v1911_v40  ;;  %v1921_v56 = vmax.f32 %v1919_v49, %v1920_v39  ;;  %v2045_v4 = vsel %vm1891_vm6, %v4606_v7, 0.0  ;;  %v1605_v26 = vadd.f32 %v1569_v12, %v4435_v55 }
 0x3ff   : > { %v2046_v14 = vadd.f32 %v2045_v4, %v2044_v50  ;;  %v1604_v37 = vadd.f32 %v1567_v59, %v4438_v58 }
 0x400   : > { %v1913_v8 = vrot.slane %v1912_v54, 4  ;;  %v1922_v18 = vrot.slane %v1921_v56, 4 }
 0x401   : > { %v1633_v51 = vpop.permute.xlu1 %1632  ;;  %v1631_v25 = vpop.permute.xlu0 %1630  ;;  %v2047_v3 = vrot.slane %v2046_v14, 4 }
 0x402   : > { %v1914_v0 = vmax.f32 %v1912_v54, %v1913_v8  ;;  %v3730_v35 = vpop.eup %3729  ;;  %v1923_v34 = vmax.f32 %v1921_v56, %v1922_v18  ;;  %v1669_v62 = vadd.f32 %v1633_v51, %v1605_v26  ;;  %v1668_v40 = vadd.f32 %v1631_v25, %v1604_v37 }
 0x403   : > { %v3732_v22 = vpop.eup %3731  ;;  %v2048_v38 = vadd.f32 %v2047_v3, %v2046_v14  ;;  %v4624_v11 = vmul.f32 %v3730_v35, %v3371_v20 }
 0x404   : > { %v1915_v53 = vrot.slane %v1914_v0, 2  ;;  %v1924_v55 = vrot.slane %v1923_v34, 2  ;;  %v4627_v15 = vmul.f32 %v3732_v22, %v3372_v32 }
 0x405   : > { %v1697_v12 = vpop.permute.xlu1 %1696  ;;  %v1695_v16 = vpop.permute.xlu0 %1694  ;;  %v2049_v49 = vrot.slane %v2048_v38, 2  ;;  %v2053_v58 = vsel %vm1891_vm6, %v4624_v11, 0.0 }
 0x406   : > { %v1916_v39 = vmax.f32 %v1914_v0, %v1915_v53  ;;  %v1733_v54 = vadd.f32 %v1697_v12, %v1669_v62  ;;  %v1925_v59 = vmax.f32 %v1923_v34, %v1924_v55  ;;  %v1732_v50 = vadd.f32 %v1695_v16, %v1668_v40 }
 0x407   : > { %v2054_v56 = vsel %vm1891_vm6, %v4627_v15, 0.0  ;;  %v2050_v14 = vadd.f32 %v2049_v49, %v2048_v38 }
 0x408   : > { %v1917_v4 = vrot.slane %v1916_v39, 1  ;;  %v4636_v8 = vsel %vm1838_vm14, %v1733_v54, -1e+30  ;;  %v2055_v18 = vadd.f32 %v2054_v56, %v2053_v58  ;;  %v1926_v51 = vrot.slane %v1925_v59, 1 }
 0x409   : > { %v1938_v0 = vsel %vm1891_vm6, %v4636_v8, -inf  ;;  %v4642_v26 = vsel %vm1837_vm15, %v1732_v50, -1e+30  ;;  %v1565_v25 = vpop.permute.xlu1 %1564  ;;  %v1563_v32 = vpop.permute.xlu0 %1562  ;;  %v2051_v20 = vrot.slane %v2050_v14, 1 }
 0x40a   : > { %v1918_v3 = vmax.f32 %v1916_v39, %v1917_v4  ;;  %v1937_v35 = vsel %vm1891_vm6, %v4642_v26, -inf  ;;  %v1927_v34 = vmax.f32 %v1925_v59, %v1926_v51  ;;  %v2056_v22 = vrot.slane %v2055_v18, 4 }
 0x40b   : > { %v1939_v37 = vmax.f32 %v1937_v35, %v1938_v0  ;;  %v2052_v38 = vadd.f32 %v2051_v20, %v2050_v14  ;;  %v1603_v58 = vadd.f32 %v1565_v25, %v4465_v28 }
 0x40c   : > { %v1968_v53 = vsub.f32 %v4578_v17, %v1918_v3  ;;  %v1969_v62 = vsub.f32 %v4594_v63, %v1918_v3  ;;  %v1970_v55 = vsub.f32 %v4604_v1, %v1927_v34  ;;  %v1971_v40 = vsub.f32 %v4586_v52, %v1927_v34 }
 0x40d   : > { %v1940_v12 = vrot.slane %v1939_v37, 4  ;;  %v1629_v54 = vpop.permute.xlu1 %1628  ;;  %v2057_v39 = vadd.f32 %v2056_v22, %v2055_v18  ;;  %v1627_v50 = vpop.permute.xlu0 %1626  ;;  %vm2116_vm0 = vcmp.gt.f32.partialorder %v2052_v38, 0.0  ;;  %v1602_v17 = vadd.f32 %v1563_v32, %v4468_v31 }
 0x40e   : > { %v1988_v16 = vmul.f32 1.442695, %v1968_v53  ;;  %v1990_v49 = vmul.f32 1.442695, %v1969_v62  ;;  %v1992_v59 = vmul.f32 1.442695, %v1970_v55  ;;  %v1667_v63 = vadd.f32 %v1629_v54, %v1603_v58 }
 0x40f   : > { %v1994_v56 = vmul.f32 1.442695, %v1971_v40  ;;  %v1941_v4 = vmax.f32 %v1939_v37, %v1940_v12  ;;  %v2058_v14 = vrot.slane %v2057_v39, 2  ;;  %v1666_v52 = vadd.f32 %v1627_v50, %v1602_v17 }
 0x410   : > { %3733 = vpow2.f32 %v1988_v16  ;;  %v2124_v0 = vsel %vm2116_vm0, %v2052_v38, 1.0  ;;  %v3374_v50 = vsel %vm1832_vm12, 1.0, %v5370_v44 }
 0x411   : > { %3735 = vpow2.f32 %v1990_v49  ;;  %v1942_v1 = vrot.slane %v1941_v4, 2  ;;  %v1693_v51 = vpop.permute.xlu1 %1692  ;;  %v1691_v3 = vpop.permute.xlu0 %1690  ;;  %v2059_v35 = vadd.f32 %v2058_v14, %v2057_v39 }
 0x412   : > { %3737 = vpow2.f32 %v1992_v59  ;;  %v1731_v18 = vadd.f32 %v1693_v51, %v1667_v63  ;;  %v1730_v25 = vadd.f32 %v1691_v3, %v1666_v52  ;;  %v3376_v51 = vsel %vm1834_vm11, 1.0, %v5370_v44 }
 0x413   : > { %3739 = vpow2.f32 %v1994_v56  ;;  %v1943_v28 = vmax.f32 %v1941_v4, %v1942_v1  ;;  %v2060_v32 = vrot.slane %v2059_v35, 1  ;;  %v3373_v4 = vsel %vm1831_vm10, 1.0, %v5370_v44 }
 0x414   : > { %v4656_v31 = vsel %vm1836_vm1, %v1731_v18, -1e+30  ;;  %3741 = vrcp.f32 %v2124_v0  ;;  %v4662_v37 = vsel %vm1835_vm2, %v1730_v25, -1e+30 }
 0x415   : > { %v1944_v20 = vrot.slane %v1943_v28, 1  ;;  %v1929_v34 = vsel %vm1891_vm6, %v4656_v31, -inf  ;;  %v1577_v22 = vpop.permute.xlu1 %1576  ;;  %v1928_v53 = vsel %vm1891_vm6, %v4662_v37, -inf  ;;  %v1575_v62 = vpop.permute.xlu0 %1574  ;;  %v2061_v38 = vadd.f32 %v2060_v32, %v2059_v35 }
 0x416   : > { %v1930_v40 = vmax.f32 %v1928_v53, %v1929_v34 }
 0x417   : > { %v1945_v55 = vmax.f32 %v1943_v28, %v1944_v20  ;;  %vm2117_vm5 = vcmp.gt.f32.partialorder %v2061_v38, 0.0 }
 0x418   : > { %v1931_v39 = vrot.slane %v1930_v40, 4  ;;  %v2125_v49 = vsel %vm2117_vm5, %v2061_v38, 1.0  ;;  %vm2538_vm5 = vcmask 1041409  }
 0x419   : > { %v1974_v12 = vsub.f32 %v4642_v26, %v1945_v55  ;;  %v1975_v54 = vsub.f32 %v4636_v8, %v1945_v55  ;;  %v1641_v16 = vpop.permute.xlu1 %1640  ;;  %v1639_v59 = vpop.permute.xlu0 %1638  ;;  %v3375_v8 = vsel %vm1833_vm13, 1.0, %v5370_v44  ;;  %3743 = vrcp.f32 %v2125_v49 }
 0x41a   : > { %v3734_v58 = vpop.eup %3733  ;;  %v1932_v14 = vmax.f32 %v1930_v40, %v1931_v39  ;;  %v3380_v49 = vsel %vm1838_vm14, 1.0, %v5370_v44 }
 0x41b   : > { %v3736_v56 = vpop.eup %3735  ;;  %v2000_v17 = vmul.f32 1.442695, %v1974_v12  ;;  %v2002_v63 = vmul.f32 1.442695, %v1975_v54  ;;  %v4677_v1 = vmul.f32 %v3734_v58, %v3373_v4  ;;  %v3379_v58 = vsel %vm1837_vm15, 1.0, %v5370_v44 }
 0x41c   : > { %v3738_v26 = vpop.eup %3737  ;;  %v4679_v52 = vmul.f32 %v3736_v56, %v3374_v50  ;;  %v1933_v2 = vrot.slane %v1932_v14, 2  ;;  %v1609_v50 = vadd.f32 %v1577_v22, %v4484_v61 }
 0x41d   : > { %v3740_v23 = vpop.eup %3739  ;;  %3745 = vpow2.f32 %v2000_v17  ;;  %v4684_v0 = vpop.permute.xlu1 %1704  ;;  %v4686_v18 = vmul.f32 %v3738_v26, %v3375_v8  ;;  %v2062_v28 = vsel %vm1891_vm6, %v4677_v1, 0.0  ;;  %v1608_v17 = vadd.f32 %v1575_v62, %v4487_v5 }
 0x41e   : > { %v3742_v3 = vpop.eup %3741  ;;  %3747 = vpow2.f32 %v2002_v63  ;;  %v4688_v36 = vpop.permute.xlu0 %1702  ;;  %v4690_v35 = vmul.f32 %v3740_v23, %v3376_v51  ;;  %v1934_v25 = vmax.f32 %v1932_v14, %v1933_v2  ;;  %v2063_v53 = vsel %vm1891_vm6, %v4679_v52, 0.0 }
 0x41f   : > { %v4695_v32 = vmul.f32 %v3742_v3, %v4606_v7  ;;  %v4698_v30 = vmul.f32 %v3742_v3, %v4596_v13  ;;  %v2071_v20 = vsel %vm1891_vm6, %v4686_v18, 0.0  ;;  %v2064_v55 = vadd.f32 %v2063_v53, %v2062_v28 }
 0x420   : > { %v2072_v34 = vsel %vm1891_vm6, %v4690_v35, 0.0  ;;  %v1935_v38 = vrot.slane %v1934_v25, 1  ;;  %v1673_v63 = vadd.f32 %v1641_v16, %v1609_v50  ;;  %v1672_v23 = vadd.f32 %v1639_v59, %v1608_v17 }
 0x421   : > { %2174 = vrot.lane.b32.xlu1 %v4695_v32, %s3884_s30  ;;  %2172 = vrot.lane.b32.xlu0 %v4698_v30, %s3884_s30  ;;  %v1573_v7 = vpop.permute.xlu1 %1572  ;;  %v2073_v13 = vadd.f32 %v2072_v34, %v2071_v20  ;;  %v2065_v39 = vrot.slane %v2064_v55, 4 }
 0x422   : > { %v1571_v40 = vpop.permute.xlu0 %1570  ;;  %v1936_v12 = vmax.f32 %v1934_v25, %v1935_v38  ;;  %v1607_v61 = vadd.f32 %v1573_v7, %v4511_v19 }
 0x423   : > { %v2074_v54 = vrot.slane %v2073_v13, 4  ;;  %v3744_v46 = vpop.eup %3743  ;;  %v2066_v26 = vadd.f32 %v2065_v39, %v2064_v55  ;;  %v1606_v5 = vadd.f32 %v1571_v40, %v4514_v21 }
 0x424   : > { %v1972_v56 = vsub.f32 %v4662_v37, %v1936_v12  ;;  %v1973_v4 = vsub.f32 %v4656_v31, %v1936_v12  ;;  %v4734_v16 = vmul.f32 %v3744_v46, %v4627_v15  ;;  %v4739_v38 = vmul.f32 %v3744_v46, %v4624_v11 }
 0x425   : > { %2222 = vrot.lane.b32.xlu1 %v4695_v32, %s3885_s20  ;;  %2220 = vrot.lane.b32.xlu0 %v4698_v30, %s3885_s20  ;;  %v1637_v33 = vpop.permute.xlu1 %1636  ;;  %v2075_v14 = vadd.f32 %v2074_v54, %v2073_v13  ;;  %v2067_v3 = vrot.slane %v2066_v26, 2  ;;  %v1737_v15 = vadd.f32 %v4684_v0, %v1673_v63  ;;  %v1736_v54 = vadd.f32 %v4688_v36, %v1672_v23 }
 0x426   : > { %v1635_v22 = vpop.permute.xlu0 %1634  ;;  %v1996_v8 = vmul.f32 1.442695, %v1972_v56  ;;  %v1998_v31 = vmul.f32 1.442695, %v1973_v4  ;;  %v1671_v51 = vadd.f32 %v1637_v33, %v1607_v61 }
 0x427   : > { %v3746_v37 = vpop.eup %3745  ;;  %v2076_v2 = vrot.slane %v2075_v14, 2  ;;  %v1670_v19 = vadd.f32 %v1635_v22, %v1606_v5  ;;  %v2068_v53 = vadd.f32 %v2067_v3, %v2066_v26 }
 0x428   : > { %v3748_v62 = vpop.eup %3747  ;;  %v4727_v28 = vmul.f32 %v3746_v37, %v3379_v58  ;;  %3749 = vpow2.f32 %v1996_v8 }
 0x429   : > { %2270 = vrot.lane.b32.xlu1 %v4695_v32, %s3886_s26  ;;  %2268 = vrot.lane.b32.xlu0 %v4698_v30, %s3886_s26  ;;  %v1701_v59 = vpop.permute.xlu1 %1700  ;;  %v4736_v21 = vmul.f32 %v3748_v62, %v3380_v49  ;;  %3751 = vpow2.f32 %v1998_v31  ;;  %v2077_v34 = vadd.f32 %v2076_v2, %v2075_v14  ;;  %v2069_v49 = vrot.slane %v2068_v53, 1 }
 0x42a   : > { %v1735_v25 = vadd.f32 %v1701_v59, %v1671_v51  ;;  %v1699_v20 = vpop.permute.xlu0 %1698  ;;  %v2089_v13 = vsel %vm1891_vm6, %v4727_v28, 0.0  ;;  %v3377_v31 = vsel %vm1835_vm2, 1.0, %v5370_v44  ;;  %v3378_v62 = vsel %vm1836_vm1, 1.0, %v5370_v44 }
 0x42b   : > { %v1734_v7 = vadd.f32 %v1699_v20, %v1670_v19  ;;  %v2090_v55 = vsel %vm1891_vm6, %v4736_v21, 0.0  ;;  %v2078_v12 = vrot.slane %v2077_v34, 1  ;;  %v2070_v26 = vadd.f32 %v2069_v49, %v2068_v53 }
 0x42c   : > { %v4749_v40 = vsel %vm1840_vm7, %v1735_v25, -1e+30  ;;  %v2091_v56 = vadd.f32 %v2090_v55, %v2089_v13  ;;  %vm2332_vm1 = vcmask 130048   ;;  %vm2349_vm2 = vcmask 195584  }
 0x42d   : > { %2178 = vrot.lane.b32.xlu1 %v4734_v16, %s3884_s30  ;;  %2176 = vrot.lane.b32.xlu0 %v4739_v38, %s3884_s30  ;;  %v1947_v11 = vsel %vm1891_vm6, %v4749_v40, -inf  ;;  %v1887_v39 = vsel %vm1839_vm8, %v1734_v7, -1e+30  ;;  %v4760_v0 = vpop.permute.xlu1 %1825  ;;  %v2079_v50 = vadd.f32 %v2078_v12, %v2077_v34  ;;  %vm2118_vm12 = vcmp.gt.f32.partialorder %v2070_v26, 0.0 }
 0x42e   : > { %v1946_v58 = vsel %vm1891_vm6, %v1887_v39, -inf  ;;  %vm1842_vm9 = vcmp.gt.f32.partialorder %v4760_v0, 0.5  ;;  %v4764_v36 = vpop.permute.xlu0 %1821  ;;  %v2092_v37 = vrot.slane %v2091_v56, 4 }
 0x42f   : > { %v1948_v4 = vmax.f32 %v1946_v58, %v1947_v11  ;;  %v1890_v17 = vsel %vm1842_vm9, %v1737_v15, -1e+30  ;;  %vm1841_vm10 = vcmp.gt.f32.partialorder %v4764_v36, 0.5  ;;  %vm2119_vm11 = vcmp.gt.f32.partialorder %v2079_v50, 0.0 }
 0x430   : > { %v1956_v33 = vsel %vm1891_vm6, %v1890_v17, -inf  ;;  %v1889_v46 = vsel %vm1841_vm10, %v1736_v54, -1e+30  ;;  %v2127_v22 = vsel %vm2119_vm11, %v2079_v50, 1.0  ;;  %v2093_v2 = vadd.f32 %v2092_v37, %v2091_v56 }
 0x431   : > { %v1949_v63 = vrot.slane %v1948_v4, 4  ;;  %2226 = vrot.lane.b32.xlu1 %v4734_v16, %s3885_s20  ;;  %2224 = vrot.lane.b32.xlu0 %v4739_v38, %s3885_s20  ;;  %v1955_v61 = vsel %vm1891_vm6, %v1889_v46, -inf  ;;  %3753 = vrcp.f32 %v2127_v22  ;;  %v2126_v15 = vsel %vm2118_vm12, %v2070_v26, 1.0 }
 0x432   : > { %v1957_v14 = vmax.f32 %v1955_v61, %v1956_v33  ;;  %v3750_v8 = vpop.eup %3749  ;;  %v2094_v25 = vrot.slane %v2093_v2, 2  ;;  %3755 = vrcp.f32 %v2126_v15  ;;  %v3383_v48 = vsel %vm1841_vm10, 1.0, %v5370_v44 }
 0x433   : > { %v1950_v23 = vmax.f32 %v1948_v4, %v1949_v63  ;;  %v3752_v5 = vpop.eup %3751  ;;  %v4783_v3 = vmul.f32 %v3750_v8, %v3377_v31  ;;  %vm2546_vm10 = vcmask 1045509   ;;  %vm2548_vm11 = vcmask 1046534  }
 0x434   : > { %v1958_v51 = vrot.slane %v1957_v14, 4  ;;  %v4789_v59 = vmul.f32 %v3752_v5, %v3378_v62  ;;  %v2095_v7 = vadd.f32 %v2094_v25, %v2093_v2  ;;  %vm2550_vm12 = vcmask 1047559  }
 0x435   : > { %v1951_v19 = vrot.slane %v1950_v23, 2  ;;  %2274 = vrot.lane.b32.xlu1 %v4734_v16, %s3886_s26  ;;  %2272 = vrot.lane.b32.xlu0 %v4739_v38, %s3886_s26  ;;  %v2080_v42 = vsel %vm1891_vm6, %v4783_v3, 0.0 }
 0x436   : > { %v1959_v60 = vmax.f32 %v1957_v14, %v1958_v51  ;;  %v2081_v34 = vsel %vm1891_vm6, %v4789_v59, 0.0  ;;  %v2096_v54 = vrot.slane %v2095_v7, 1 }
 0x437   : > { %v1952_v20 = vmax.f32 %v1950_v23, %v1951_v19  ;;  %v2082_v13 = vadd.f32 %v2081_v34, %v2080_v42  ;;  %v3381_v19 = vsel %vm1839_vm8, 1.0, %v5370_v44  ;;  %vm2542_vm8 = vcmask 1043459  }
 0x438   : > { %v1960_v53 = vrot.slane %v1959_v60, 2  ;;  %v2097_v56 = vadd.f32 %v2096_v54, %v2095_v7 }
 0x439   : > { %v1953_v55 = vrot.slane %v1952_v20, 1  ;;  %v2083_v11 = vrot.slane %v2082_v13, 4 }
 0x43a   : > { %v1961_v12 = vmax.f32 %v1959_v60, %v1960_v53  ;;  %vm2121_vm13 = vcmp.gt.f32.partialorder %v2097_v56, 0.0  ;;  %v3384_v53 = vsel %vm1842_vm9, 1.0, %v5370_v44  ;;  %vm2544_vm9 = vcmask 1044484  }
 0x43b   : > { %v1954_v49 = vmax.f32 %v1952_v20, %v1953_v55  ;;  %v3754_v58 = vpop.eup %3753  ;;  %v2084_v4 = vadd.f32 %v2083_v11, %v2082_v13 }
 0x43c   : > { %v1962_v50 = vrot.slane %v1961_v12, 1  ;;  %v4797_v61 = vmul.f32 %v3754_v58, %v4690_v35  ;;  %v4800_v22 = vmul.f32 %v3754_v58, %v4686_v18  ;;  %v2129_v18 = vsel %vm2121_vm13, %v2097_v56, 1.0  ;;  %v3756_v5 = vpop.eup %3755 }
 0x43d   : > { %v1976_v33 = vsub.f32 %v1887_v39, %v1954_v49  ;;  %v1977_v63 = vsub.f32 %v4749_v40, %v1954_v49  ;;  %v2085_v8 = vrot.slane %v2084_v4, 2 }
 0x43e   : > { %v1963_v14 = vmax.f32 %v1961_v12, %v1962_v50  ;;  %2186 = vrot.lane.b32.xlu1 %v4797_v61, %s3884_s30  ;;  %2184 = vrot.lane.b32.xlu0 %v4800_v22, %s3884_s30 }
 0x43f   : > { %v2004_v26 = vmul.f32 1.442695, %v1976_v33  ;;  %v2006_v37 = vmul.f32 1.442695, %v1977_v63  ;;  %v2086_v23 = vadd.f32 %v2085_v8, %v2084_v4 }
 0x440   : > { %v1978_v31 = vsub.f32 %v1889_v46, %v1963_v14  ;;  %v1979_v39 = vsub.f32 %v1890_v17, %v1963_v14  ;;  %v4815_v17 = vmul.f32 %v3756_v5, %v4679_v52  ;;  %v4818_v46 = vmul.f32 %v3756_v5, %v4677_v1 }
 0x441   : > { %3757 = vpow2.f32 %v2004_v26  ;;  %v2087_v62 = vrot.slane %v2086_v23, 1  ;;  %v3382_v52 = vsel %vm1840_vm7, 1.0, %v5370_v44  ;;  %vm2540_vm7 = vcmask 1042434  }
 0x442   : > { %3759 = vpow2.f32 %v2006_v37  ;;  %v2008_v35 = vmul.f32 1.442695, %v1978_v31  ;;  %v2010_v40 = vmul.f32 1.442695, %v1979_v39  ;;  %2234 = vrot.lane.b32.xlu1 %v4797_v61, %s3885_s20  ;;  %2232 = vrot.lane.b32.xlu0 %v4800_v22, %s3885_s20 }
 0x443   : > { %v2088_v51 = vadd.f32 %v2087_v62, %v2086_v23 }
 0x444   : > { %3761 = vpow2.f32 %v2008_v35 }
 0x445   : > { %3763 = vpow2.f32 %v2010_v40  ;;  %vm2120_vm14 = vcmp.gt.f32.partialorder %v2088_v51, 0.0 }
 0x446   : > { %2282 = vrot.lane.b32.xlu1 %v4797_v61, %s3886_s26  ;;  %2280 = vrot.lane.b32.xlu0 %v4800_v22, %s3886_s26  ;;  %3765 = vrcp.f32 %v2129_v18  ;;  %v2128_v15 = vsel %vm2120_vm14, %v2088_v51, 1.0 }
 0x447   : > { %3767 = vrcp.f32 %v2128_v15 }
 0x44a   : > { %2182 = vrot.lane.b32.xlu1 %v4815_v17, %s3884_s30  ;;  %2180 = vrot.lane.b32.xlu0 %v4818_v46, %s3884_s30 }
 0x44b   : > { %v3758_v2 = vpop.eup %3757 }
 0x44c   : > { %v3760_v60 = vpop.eup %3759  ;;  %v4830_v25 = vmul.f32 %v3758_v2, %v3381_v19 }
 0x44d   : > { %v4832_v1 = vmul.f32 %v3760_v60, %v3382_v52 }
 0x44e   : > { %v3762_v42 = vpop.eup %3761  ;;  %v2098_v20 = vsel %vm1891_vm6, %v4830_v25, 0.0  ;;  %2230 = vrot.lane.b32.xlu1 %v4815_v17, %s3885_s20  ;;  %2228 = vrot.lane.b32.xlu0 %v4818_v46, %s3885_s20 }
 0x44f   : > { %v3764_v34 = vpop.eup %3763  ;;  %v2042_v47 = vmul.f32 %v3762_v42, %v3383_v48  ;;  %v2099_v36 = vsel %vm1891_vm6, %v4832_v1, 0.0 }
 0x450   : > { %v2043_v7 = vmul.f32 %v3764_v34, %v3384_v53  ;;  %v2100_v13 = vadd.f32 %v2099_v36, %v2098_v20  ;;  %v3766_v12 = vpop.eup %3765 }
 0x451   : > { %v2107_v55 = vsel %vm1891_vm6, %v2042_v47, 0.0  ;;  %v4855_v50 = vmul.f32 %v3766_v12, %v4736_v21  ;;  %v4858_v56 = vmul.f32 %v3766_v12, %v4727_v28  ;;  %v3768_v37 = vpop.eup %3767 }
 0x452   : > { %v2108_v54 = vsel %vm1891_vm6, %v2043_v7, 0.0  ;;  %v2101_v0 = vrot.slane %v2100_v13, 4  ;;  %2278 = vrot.lane.b32.xlu1 %v4815_v17, %s3886_s26  ;;  %2276 = vrot.lane.b32.xlu0 %v4818_v46, %s3886_s26  ;;  %v4873_v39 = vmul.f32 %v3768_v37, %v4789_v59  ;;  %v4876_v35 = vmul.f32 %v3768_v37, %v4783_v3 }
 0x453   : > { %v2109_v11 = vadd.f32 %v2108_v54, %v2107_v55 }
 0x454   : > { %v2102_v49 = vadd.f32 %v2101_v0, %v2100_v13 }
 0x455   : > { %v2110_v58 = vrot.slane %v2109_v11, 4 }
 0x456   : > { %v2103_v4 = vrot.slane %v2102_v49, 2  ;;  %2194 = vrot.lane.b32.xlu1 %v4855_v50, %s3884_s30  ;;  %2192 = vrot.lane.b32.xlu0 %v4858_v56, %s3884_s30 }
 0x457   : > { %v2111_v33 = vadd.f32 %v2110_v58, %v2109_v11 }
 0x458   : > { %v2104_v63 = vadd.f32 %v2103_v4, %v2102_v49 }
 0x459   : > { %v2112_v14 = vrot.slane %v2111_v33, 2 }
 0x45a   : > { %2242 = vrot.lane.b32.xlu1 %v4855_v50, %s3885_s20  ;;  %2240 = vrot.lane.b32.xlu0 %v4858_v56, %s3885_s20  ;;  %v2105_v21 = vrot.slane %v2104_v63, 1 }
 0x45b   : > { %v2113_v26 = vadd.f32 %v2112_v14, %v2111_v33 }
 0x45c   : > { %v2106_v31 = vadd.f32 %v2105_v21, %v2104_v63 }
 0x45d   : > { %v2114_v28 = vrot.slane %v2113_v26, 1 }
 0x45e   : > { %2290 = vrot.lane.b32.xlu1 %v4855_v50, %s3886_s26  ;;  %2288 = vrot.lane.b32.xlu0 %v4858_v56, %s3886_s26  ;;  %vm2122_vm0 = vcmp.gt.f32.partialorder %v2106_v31, 0.0 }
 0x45f   : > { %v2115_v8 = vadd.f32 %v2114_v28, %v2113_v26  ;;  %v2130_v23 = vsel %vm2122_vm0, %v2106_v31, 1.0 }
 0x461   : > { %vm2123_vm15 = vcmp.gt.f32.partialorder %v2115_v8, 0.0 }
 0x462   : > { %v2131_v40 = vsel %vm2123_vm15, %v2115_v8, 1.0  ;;  %2190 = vrot.lane.b32.xlu1 %v4873_v39, %s3884_s30  ;;  %2188 = vrot.lane.b32.xlu0 %v4876_v35, %s3884_s30 }
 0x463   : > { %3769 = vrcp.f32 %v2131_v40 }
 0x464   : > { %3771 = vrcp.f32 %v2130_v23 }
 0x466   : > { %2238 = vrot.lane.b32.xlu1 %v4873_v39, %s3885_s20  ;;  %2236 = vrot.lane.b32.xlu0 %v4876_v35, %s3885_s20 }
 0x46a   : > { %2286 = vrot.lane.b32.xlu1 %v4873_v39, %s3886_s26  ;;  %2284 = vrot.lane.b32.xlu0 %v4876_v35, %s3886_s26 }
 0x46d   : > { %v3770_v3 = vpop.eup %3769 }
 0x46e   : > { %v4890_v59 = vmul.f32 %v3770_v3, %v2042_v47  ;;  %v4892_v18 = vmul.f32 %v3770_v3, %v2043_v7  ;;  %v3772_v5 = vpop.eup %3771 }
 0x46f   : > { %v4903_v62 = vmul.f32 %v3772_v5, %v4832_v1  ;;  %v4906_v51 = vmul.f32 %v3772_v5, %v4830_v25 }
 0x470   : > { %2202 = vrot.lane.b32.xlu1 %v4892_v18, %s3884_s30  ;;  %2200 = vrot.lane.b32.xlu0 %v4890_v59, %s3884_s30 }
 0x474   : > { %2250 = vrot.lane.b32.xlu1 %v4892_v18, %s3885_s20  ;;  %2248 = vrot.lane.b32.xlu0 %v4890_v59, %s3885_s20 }
 0x478   : > { %2198 = vrot.lane.b32.xlu1 %v4903_v62, %s3884_s30  ;;  %2196 = vrot.lane.b32.xlu0 %v4906_v51, %s3884_s30 }
 0x47c   : > { %2246 = vrot.lane.b32.xlu1 %v4903_v62, %s3885_s20  ;;  %2244 = vrot.lane.b32.xlu0 %v4906_v51, %s3885_s20 }
 0x480   : > { %2294 = vrot.lane.b32.xlu1 %v4903_v62, %s3886_s26  ;;  %2292 = vrot.lane.b32.xlu0 %v4906_v51, %s3886_s26 }
 0x484   : > { %2298 = vrot.lane.b32.xlu1 %v4892_v18, %s3886_s26  ;;  %2296 = vrot.lane.b32.xlu0 %v4890_v59, %s3886_s26 }
 0x493   : > { %v2175_v2 = vpop.permute.xlu1 %2174  ;;  %v2173_v19 = vpop.permute.xlu0 %2172 }
 0x494   : > { %v2317_v25 = vsel %vm1891_vm6, %v4695_v32, %v2175_v2  ;;  %v2316_v1 = vsel %vm1891_vm6, %v4698_v30, %v2173_v19 }
 0x497   : > { %v2223_v60 = vpop.permute.xlu1 %2222  ;;  %v2221_v52 = vpop.permute.xlu0 %2220 }
 0x498   : > { %v2334_v42 = vsel %vm2332_vm1, %v2317_v25, %v2223_v60  ;;  %v2333_v48 = vsel %vm2332_vm1, %v2316_v1, %v2221_v52 }
 0x49b   : > { %v2271_v20 = vpop.permute.xlu1 %2270  ;;  %v2269_v34 = vpop.permute.xlu0 %2268 }
 0x49c   : > { %v2351_v53 = vsel %vm2349_vm2, %v2334_v42, %v2271_v20  ;;  %v2350_v47 = vsel %vm2349_vm2, %v2333_v48, %v2269_v34 }
 0x49d   : > { %2384 = vrot.lane.b32.xlu1 %v2351_v53, %s3887_s14  ;;  %2382 = vrot.lane.b32.xlu0 %v2350_v47, %s3887_s14 }
 0x49f   : > { %v2179_v36 = vpop.permute.xlu1 %2178  ;;  %v2177_v32 = vpop.permute.xlu0 %2176 }
 0x4a0   : > { %v2319_v30 = vsel %vm1891_vm6, %v4734_v16, %v2179_v36  ;;  %v2318_v55 = vsel %vm1891_vm6, %v4739_v38, %v2177_v32 }
 0x4a3   : > { %v2227_v7 = vpop.permute.xlu1 %2226  ;;  %v2225_v13 = vpop.permute.xlu0 %2224 }
 0x4a4   : > { %v2336_v15 = vsel %vm2332_vm1, %v2319_v30, %v2227_v7  ;;  %v2335_v12 = vsel %vm2332_vm1, %v2318_v55, %v2225_v13 }
 0x4a7   : > { %v2275_v54 = vpop.permute.xlu1 %2274  ;;  %v2273_v0 = vpop.permute.xlu0 %2272 }
 0x4a8   : > { %v2353_v11 = vsel %vm2349_vm2, %v2336_v15, %v2275_v54  ;;  %v2352_v49 = vsel %vm2349_vm2, %v2335_v12, %v2273_v0 }
 0x4a9   : > { %2388 = vrot.lane.b32.xlu1 %v2353_v11, %s3887_s14  ;;  %2386 = vrot.lane.b32.xlu0 %v2352_v49, %s3887_s14 }
 0x4b0   : > { %v2187_v58 = vpop.permute.xlu1 %2186  ;;  %v2185_v4 = vpop.permute.xlu0 %2184 }
 0x4b1   : > { %v2323_v38 = vsel %vm1891_vm6, %v4797_v61, %v2187_v58  ;;  %v2322_v63 = vsel %vm1891_vm6, %v4800_v22, %v2185_v4 }
 0x4b4   : > { %v2235_v16 = vpop.permute.xlu1 %2234  ;;  %v2233_v33 = vpop.permute.xlu0 %2232 }
 0x4b5   : > { %v2340_v14 = vsel %vm2332_vm1, %v2323_v38, %v2235_v16  ;;  %v2339_v26 = vsel %vm2332_vm1, %v2322_v63, %v2233_v33 }
 0x4b8   : > { %v2283_v21 = vpop.permute.xlu1 %2282  ;;  %v2281_v28 = vpop.permute.xlu0 %2280 }
 0x4b9   : > { %v2357_v37 = vsel %vm2349_vm2, %v2340_v14, %v2283_v21  ;;  %v2356_v8 = vsel %vm2349_vm2, %v2339_v26, %v2281_v28 }
 0x4ba   : > { %2396 = vrot.lane.b32.xlu1 %v2357_v37, %s3887_s14  ;;  %2394 = vrot.lane.b32.xlu0 %v2356_v8, %s3887_s14 }
 0x4bc   : > { %v2183_v31 = vpop.permute.xlu1 %2182  ;;  %v2181_v40 = vpop.permute.xlu0 %2180 }
 0x4bd   : > { %v2321_v22 = vsel %vm1891_vm6, %v4815_v17, %v2183_v31  ;;  %v2320_v3 = vsel %vm1891_vm6, %v4818_v46, %v2181_v40 }
 0x4c0   : > { %v2231_v61 = vpop.permute.xlu1 %2230  ;;  %v2229_v23 = vpop.permute.xlu0 %2228 }
 0x4c1   : > { %v2338_v5 = vsel %vm2332_vm1, %v2321_v22, %v2231_v61  ;;  %v2337_v2 = vsel %vm2332_vm1, %v2320_v3, %v2229_v23 }
 0x4c4   : > { %v2279_v19 = vpop.permute.xlu1 %2278  ;;  %v2277_v60 = vpop.permute.xlu0 %2276 }
 0x4c5   : > { %v2355_v52 = vsel %vm2349_vm2, %v2338_v5, %v2279_v19  ;;  %v2354_v25 = vsel %vm2349_vm2, %v2337_v2, %v2277_v60  ;;  %v2520_v60 = vld [vmem:[%s5371_s2 + $0x8] sm:$0xff] }
 0x4c6   : > { %2392 = vrot.lane.b32.xlu1 %v2355_v52, %s3887_s14  ;;  %2390 = vrot.lane.b32.xlu0 %v2354_v25, %s3887_s14  ;;  %v2522_v25 = vld [vmem:[%s5371_s2 + $0x18] sm:$0xff] }
 0x4c8   : > { %v2195_v1 = vpop.permute.xlu1 %2194  ;;  %v2193_v42 = vpop.permute.xlu0 %2192 }
 0x4c9   : > { %v2327_v46 = vsel %vm1891_vm6, %v4855_v50, %v2195_v1  ;;  %v2326_v20 = vsel %vm1891_vm6, %v4858_v56, %v2193_v42  ;;  %v5372_v42 = vmov 0.0|0.0  }
 0x4cc   : > { %v2243_v17 = vpop.permute.xlu1 %2242  ;;  %v2241_v48 = vpop.permute.xlu0 %2240 }
 0x4cd   : > { %v2344_v34 = vsel %vm2332_vm1, %v2327_v46, %v2243_v17  ;;  %v2343_v53 = vsel %vm2332_vm1, %v2326_v20, %v2241_v48 }
 0x4d0   : > { %v2291_v47 = vpop.permute.xlu1 %2290  ;;  %v2289_v36 = vpop.permute.xlu0 %2288 }
 0x4d1   : > { %v2361_v32 = vsel %vm2349_vm2, %v2344_v34, %v2291_v47  ;;  %v2360_v7 = vsel %vm2349_vm2, %v2343_v53, %v2289_v36 }
 0x4d2   : > { %2404 = vrot.lane.b32.xlu1 %v2361_v32, %s3887_s14  ;;  %2402 = vrot.lane.b32.xlu0 %v2360_v7, %s3887_s14 }
 0x4d4   : > { %v2191_v13 = vpop.permute.xlu1 %2190  ;;  %v2189_v30 = vpop.permute.xlu0 %2188 }
 0x4d5   : > { %v2325_v56 = vsel %vm1891_vm6, %v4873_v39, %v2191_v13  ;;  %v2324_v15 = vsel %vm1891_vm6, %v4876_v35, %v2189_v30 }
 0x4d8   : > { %v2239_v50 = vpop.permute.xlu1 %2238  ;;  %v2237_v55 = vpop.permute.xlu0 %2236 }
 0x4d9   : > { %v2342_v12 = vsel %vm2332_vm1, %v2325_v56, %v2239_v50  ;;  %v2341_v54 = vsel %vm2332_vm1, %v2324_v15, %v2237_v55 }
 0x4dc   : > { %v2287_v0 = vpop.permute.xlu1 %2286  ;;  %v2285_v11 = vpop.permute.xlu0 %2284 }
 0x4dd   : > { %v2359_v49 = vsel %vm2349_vm2, %v2342_v12, %v2287_v0  ;;  %v2358_v58 = vsel %vm2349_vm2, %v2341_v54, %v2285_v11 }
 0x4de   : > { %2400 = vrot.lane.b32.xlu1 %v2359_v49, %s3887_s14  ;;  %2398 = vrot.lane.b32.xlu0 %v2358_v58, %s3887_s14  ;;  %v5373_v58 = vld [vmem:[#allocation32_spill] sm:$0xff] }
 0x4e2   : > { %v2203_v4 = vpop.permute.xlu1 %2202  ;;  %v2201_v16 = vpop.permute.xlu0 %2200 }
 0x4e6   : > { %v2251_v39 = vpop.permute.xlu1 %2250  ;;  %v2249_v33 = vpop.permute.xlu0 %2248 }
 0x4ea   : > { %v2199_v38 = vpop.permute.xlu1 %2198  ;;  %v2197_v35 = vpop.permute.xlu0 %2196 }
 0x4eb   : > { %v2329_v26 = vsel %vm1891_vm6, %v4903_v62, %v2199_v38  ;;  %v2328_v21 = vsel %vm1891_vm6, %v4906_v51, %v2197_v35  ;;  %v2331_v62 = vsel %vm1891_vm6, %v4892_v18, %v2203_v4  ;;  %v2330_v51 = vsel %vm1891_vm6, %v4890_v59, %v2201_v16  ;;  %v2519_v18 = vld [vmem:[%s5371_s2] sm:$0xff]  ;;  %v2521_v59 = vld [vmem:[%s5371_s2 + $0x10] sm:$0xff] }
 0x4ec   : > { %v2348_v23 = vsel %vm2332_vm1, %v2331_v62, %v2251_v39  ;;  %v2347_v22 = vsel %vm2332_vm1, %v2330_v51, %v2249_v33  ;;  %v3586_v52 = vpack.c.bf16 %v2520_v60, %v2519_v18  ;;  %v3589_v1 = vpack.c.bf16 %v2522_v25, %v2521_v59 }
 0x4ed   : > { %vm2446_vm6 = vcmask 523520  }
 0x4ee   : > { %v2247_v63 = vpop.permute.xlu1 %2246  ;;  %v2245_v14 = vpop.permute.xlu0 %2244  ;;  %3587 = vmatpush3.bf16.msra.mxu0 %v3586_v52 }
 0x4ef   : > { %v2346_v28 = vsel %vm2332_vm1, %v2329_v26, %v2247_v63  ;;  %v2345_v37 = vsel %vm2332_vm1, %v2328_v21, %v2245_v14  ;;  %3588 = vmatprep.subr.bf16.mxu0 %v5372_v42  ;;  %v5374_v26 = vld [vmem:[#allocation33_spill] sm:$0xff] }
 0x4f2   : > { %v2295_v8 = vpop.permute.xlu1 %2294  ;;  %v2293_v31 = vpop.permute.xlu0 %2292  ;;  %3590 = vmatpush3.bf16.msra.mxu0 %v3589_v1 }
 0x4f3   : > { %v2363_v40 = vsel %vm2349_vm2, %v2346_v28, %v2295_v8  ;;  %v2362_v61 = vsel %vm2349_vm2, %v2345_v37, %v2293_v31  ;;  %3591 = vmatprep.subr.bf16.mxu0 %v5372_v42 }
 0x4f4   : > { %2408 = vrot.lane.b32.xlu1 %v2363_v40, %s3887_s14  ;;  %2406 = vrot.lane.b32.xlu0 %v2362_v61, %s3887_s14 }
 0x4f6   : > { %v2299_v3 = vpop.permute.xlu1 %2298  ;;  %v2297_v5 = vpop.permute.xlu0 %2296 }
 0x4f7   : > { %v2365_v2 = vsel %vm2349_vm2, %v2348_v23, %v2299_v3  ;;  %v2364_v19 = vsel %vm2349_vm2, %v2347_v22, %v2297_v5 }
 0x4f8   : > { %2412 = vrot.lane.b32.xlu1 %v2365_v2, %s3887_s14  ;;  %2410 = vrot.lane.b32.xlu0 %v2364_v19, %s3887_s14 }
 0x4fc   : > { %2627 = vrot.lane.b32.xlu1 %v4270_v27, %s3888_s24 }
 0x50f   : > { %v2385_v17 = vpop.permute.xlu1 %2384  ;;  %v2383_v48 = vpop.permute.xlu0 %2382 }
 0x510   : > { %v2431_v13 = vmul.f32 %v2385_v17, %v4299_v45  ;;  %v2430_v30 = vmul.f32 %v2383_v48, %v4295_v43 }
 0x512   : > { %v2448_v0 = vsel %vm2446_vm6, %v2431_v13, 0.0  ;;  %v2447_v11 = vsel %vm2446_vm6, %v2430_v30, 0.0 }
 0x513   : > { %v2449_v16 = vadd.f32 %v2448_v0, %v2447_v11  ;;  %v5378_v11 = vld [vmem:[#allocation30_spill] sm:$0xff] }
 0x51b   : > { %v2389_v46 = vpop.permute.xlu1 %2388  ;;  %v2387_v20 = vpop.permute.xlu0 %2386 }
 0x51c   : > { %v2433_v50 = vmul.f32 %v2389_v46, %v4330_v6  ;;  %v2432_v55 = vmul.f32 %v2387_v20, %v4315_v57 }
 0x51e   : > { %v2457_v49 = vsel %vm2446_vm6, %v2433_v50, 0.0  ;;  %v2456_v45 = vsel %vm2446_vm6, %v2432_v55, 0.0 }
 0x51f   : > { %v2458_v39 = vadd.f32 %v2457_v49, %v2456_v45  ;;  %v5379_v45 = vld [vmem:[#allocation28_spill] sm:$0xff] }
 0x521   : > { %v2459_v37 = vrot.slane %v2458_v39, 4 }
 0x523   : > { %v2460_v51 = vadd.f32 %v2459_v37, %v2458_v39 }
 0x525   : > { %v2461_v19 = vrot.slane %v2460_v51, 2 }
 0x527   : > { %v2462_v1 = vadd.f32 %v2461_v19, %v2460_v51 }
 0x529   : > { %v2463_v55 = vrot.slane %v2462_v1, 1 }
 0x52c   : > { %v2397_v34 = vpop.permute.xlu1 %2396  ;;  %v2395_v53 = vpop.permute.xlu0 %2394 }
 0x52d   : > { %v2436_v4 = vmul.f32 %v2395_v53, %v5373_v58 }
 0x52f   : > { %v2474_v14 = vsel %vm2446_vm6, %v2436_v4, 0.0  ;;  %v5043_v4 = vadd.f32 %v2463_v55, %v2462_v1  ;;  %v2686_v55 = vld [vmem:[%s5382_s25] sm:$0xff] }
 0x538   : > { %v2393_v47 = vpop.permute.xlu1 %2392  ;;  %v2391_v36 = vpop.permute.xlu0 %2390 }
 0x539   : > { %v2435_v56 = vmul.f32 %v2393_v47, %v4402_v41  ;;  %v2434_v15 = vmul.f32 %v2391_v36, %v4371_v29  ;;  %v2437_v29 = vmul.f32 %v2397_v34, %v4364_v24  ;;  %v5376_v34 = vld [vmem:[#allocation31_spill] sm:$0xff]  ;;  %v5377_v47 = vld [vmem:[#allocation29_spill] sm:$0xff] }
 0x53b   : > { %v2466_v43 = vsel %vm2446_vm6, %v2435_v56, 0.0  ;;  %v2465_v6 = vsel %vm2446_vm6, %v2434_v15, 0.0  ;;  %v2475_v63 = vsel %vm2446_vm6, %v2437_v29, 0.0 }
 0x53c   : > { %v2467_v33 = vadd.f32 %v2466_v43, %v2465_v6  ;;  %v2476_v31 = vadd.f32 %v2475_v63, %v2474_v14 }
 0x53e   : > { %v2468_v24 = vrot.slane %v2467_v33, 4  ;;  %v2477_v3 = vrot.slane %v2476_v31, 4 }
 0x540   : > { %v2469_v23 = vadd.f32 %v2468_v24, %v2467_v33  ;;  %v2478_v59 = vadd.f32 %v2477_v3, %v2476_v31 }
 0x542   : > { %v2470_v18 = vrot.slane %v2469_v23, 2 }
 0x544   : > { %v2405_v32 = vpop.permute.xlu1 %2404  ;;  %v2403_v7 = vpop.permute.xlu0 %2402  ;;  %v2471_v46 = vadd.f32 %v2470_v18, %v2469_v23 }
 0x545   : > { %v2441_v21 = vmul.f32 %v2405_v32, %v5374_v26  ;;  %v2479_v32 = vrot.slane %v2478_v59, 2 }
 0x547   : > { %v2493_v40 = vsel %vm2446_vm6, %v2441_v21, 0.0  ;;  %v2480_v6 = vadd.f32 %v2479_v32, %v2478_v59 }
 0x549   : > { %v2481_v63 = vrot.slane %v2480_v6, 1 }
 0x550   : > { %v2401_v12 = vpop.permute.xlu1 %2400  ;;  %v2399_v54 = vpop.permute.xlu0 %2398 }
 0x551   : > { %v2439_v57 = vmul.f32 %v2401_v12, %v4454_v9  ;;  %v2438_v41 = vmul.f32 %v2399_v54, %v4457_v10  ;;  %v5375_v9 = vld [vmem:[#allocation34_spill] sm:$0xff]  ;;  %v2450_v10 = vrot.slane %v2449_v16, 4  ;;  %v2472_v54 = vrot.slane %v2471_v46, 1 }
 0x552   : > { %v2440_v28 = vmul.f32 %v2403_v7, %v5375_v9 }
 0x553   : > { %v2484_v38 = vsel %vm2446_vm6, %v2439_v57, 0.0  ;;  %v2483_v35 = vsel %vm2446_vm6, %v2438_v41, 0.0  ;;  %v2451_v62 = vadd.f32 %v2450_v10, %v2449_v16 }
 0x554   : > { %v2485_v8 = vadd.f32 %v2484_v38, %v2483_v35  ;;  %v2492_v61 = vsel %vm2446_vm6, %v2440_v28, 0.0  ;;  %v5047_v38 = vadd.f32 %v2472_v54, %v2471_v46  ;;  %v2689_v54 = vld [vmem:[%s5382_s25 + $0x18] sm:$0xff] }
 0x555   : > { %v2494_v5 = vadd.f32 %v2493_v40, %v2492_v61  ;;  %v2452_v2 = vrot.slane %v2451_v62, 2 }
 0x556   : > { %v2486_v22 = vrot.slane %v2485_v8, 4 }
 0x557   : > { %v2495_v52 = vrot.slane %v2494_v5, 4  ;;  %v2453_v25 = vadd.f32 %v2452_v2, %v2451_v62 }
 0x558   : > { %v2487_v60 = vadd.f32 %v2486_v22, %v2485_v8  ;;  %v5056_v8 = vadd.f32 %v2481_v63, %v2480_v6 }
 0x559   : > { %v2496_v7 = vadd.f32 %v2495_v52, %v2494_v5  ;;  %v2454_v50 = vrot.slane %v2453_v25, 1 }
 0x55a   : > { %v2488_v20 = vrot.slane %v2487_v60, 2 }
 0x55b   : > { %v2497_v57 = vrot.slane %v2496_v7, 2  ;;  %v5045_v33 = vadd.f32 %v2454_v50, %v2453_v25  ;;  %v3385_v25 = vld [vmem:[%s5381_s9] ss:$0 sm:$0xff] }
 0x55c   : > { %v2489_v0 = vadd.f32 %v2488_v20, %v2487_v60 }
 0x55d   : > { %v2498_v14 = vadd.f32 %v2497_v57, %v2496_v7  ;;  %v2539_v9 = vsel %vm2538_vm5, %v5043_v4, %v5045_v33 }
 0x55e   : > { %v2490_v35 = vrot.slane %v2489_v0, 1  ;;  %v2541_v37 = vsel %vm2540_vm7, %v5047_v38, %v2539_v9 }
 0x55f   : > { %v2499_v31 = vrot.slane %v2498_v14, 1  ;;  %v2543_v51 = vsel %vm2542_vm8, %v5056_v8, %v2541_v37 }
 0x560   : > { %v5054_v24 = vadd.f32 %v2490_v35, %v2489_v0 }
 0x561   : > { %v5064_v3 = vadd.f32 %v2499_v31, %v2498_v14 }
 0x562   : > { %v2545_v22 = vsel %vm2544_vm9, %v5054_v24, %v2543_v51 }
 0x563   : > { %v2547_v19 = vsel %vm2546_vm10, %v5064_v3, %v2545_v22 }
 0x566   : > { %v2409_v17 = vpop.permute.xlu1 %2408  ;;  %v2407_v48 = vpop.permute.xlu0 %2406 }
 0x567   : > { %v2443_v53 = vmul.f32 %v2409_v17, %v5376_v34  ;;  %v2442_v36 = vmul.f32 %v2407_v48, %v5377_v47 }
 0x569   : > { %v2502_v13 = vsel %vm2446_vm6, %v2443_v53, 0.0  ;;  %v2501_v30 = vsel %vm2446_vm6, %v2442_v36, 0.0 }
 0x56a   : > { %v2503_v56 = vadd.f32 %v2502_v13, %v2501_v30  ;;  %v2413_v15 = vpop.permute.xlu1 %2412  ;;  %v2411_v12 = vpop.permute.xlu0 %2410 }
 0x56b   : > { %v2445_v49 = vmul.f32 %v2413_v15, %v5378_v11  ;;  %v2444_v43 = vmul.f32 %v2411_v12, %v5379_v45  ;;  %v2688_v15 = vld [vmem:[%s5382_s25 + $0x10] sm:$0xff] }
 0x56c   : > { %v2504_v41 = vrot.slane %v2503_v56, 4  ;;  %v3595_v11 = vpack.c.bf16 %v2689_v54, %v2688_v15  ;;  %v2909_v15 = vld [vmem:[%s4169_s5 + $0x28] sm:$0xff]  ;;  %v2910_v54 = vld [vmem:[%s4169_s5 + $0x30] sm:$0xff] }
 0x56d   : > { %v2511_v29 = vsel %vm2446_vm6, %v2445_v49, 0.0  ;;  %v2510_v58 = vsel %vm2446_vm6, %v2444_v43, 0.0 }
 0x56e   : > { %v2505_v16 = vadd.f32 %v2504_v41, %v2503_v56  ;;  %v2512_v39 = vadd.f32 %v2511_v29, %v2510_v58  ;;  %v2628_v46 = vpop.permute.xlu1 %2627  ;;  %v2687_v56 = vld [vmem:[%s5382_s25 + $0x8] sm:$0xff] }
 0x56f   : > { %v3592_v12 = vpack.c.bf16 %v2687_v56, %v2686_v55  ;;  %v2908_v56 = vld [vmem:[%s4169_s5 + $0x20] sm:$0xff] }
 0x570   : > { %v2506_v26 = vrot.slane %v2505_v16, 2  ;;  %v2513_v21 = vrot.slane %v2512_v39, 4 }
 0x572   : > { %v2507_v28 = vadd.f32 %v2506_v26, %v2505_v16  ;;  %v2514_v10 = vadd.f32 %v2513_v21, %v2512_v39 }
 0x574   : > { %v2508_v40 = vrot.slane %v2507_v28, 1  ;;  %v2515_v61 = vrot.slane %v2514_v10, 2 }
 0x576   : > { %v2516_v62 = vadd.f32 %v2515_v61, %v2514_v10  ;;  %v5060_v23 = vadd.f32 %v2508_v40, %v2507_v28 }
 0x578   : > { %v2517_v5 = vrot.slane %v2516_v62, 1  ;;  %v2549_v18 = vsel %vm2548_vm11, %v5060_v23, %v2547_v19 }
 0x57a   : > { %v5066_v2 = vadd.f32 %v2517_v5, %v2516_v62 }
 0x57c   : > { %v2551_v60 = vsel %vm2550_vm12, %v5066_v2, %v2549_v18 }
 0x57d   : > { %2552 = vrot.lane.b32.xlu0 %v2551_v60, %s3889_s29  ;;  %v2638_v59 = vsub.f32 %v4270_v27, %v2551_v60 }
 0x581   : > { %2640 = vrot.lane.b32.xlu0 %v2638_v59, %s3889_s29 }
 0x5ef   : > { %v2553_v52 = vpop.permute.xlu0 %2552 }
 0x5f0   : > { %3512 = vmatmul.mubr.msk.f32.vlgmr.msra.gmra.mrb[2].mxu0 %vm1131_vm4, %v2553_v52 }
 0x5f1   : > { %3522 = vmatprep.mubr.msk.f32.mxu0 %vm3878_vm3, %v5370_v44  ;;  %3593 = vmatpush3.bf16.msra.mxu0 %v3592_v12  ;;  %v3610_v12 = vpack.c.bf16 %v2909_v15, %v2908_v56 }
 0x5f2   : > { %3594 = vmatprep.subr.bf16.mxu0 %v5372_v42 }
 0x5f3   : > { %v2641_v36 = vpop.permute.xlu0 %2640 }
 0x5f5   : > { %3596 = vmatpush3.bf16.msra.mxu0 %v3595_v11 }
 0x5f6   : > { %3597 = vmatprep.subr.bf16.mxu0 %v5372_v42 }
 0x6c3   : > { %v2622_v1 = vpop.f32.mrb[2].mxu0 }
 0x6c4   : > { %v2623_v17 = vadd.f32 %v3385_v25, %v2622_v1  ;;  %v3513_v48 = vpop.f32.mrb[3].mxu0 }
 0x6c6   : > { %v2630_v20 = vadd.f32 %v2628_v46, %v2623_v17 }
 0x6c8   : > { %v3387_v34 = vmul.f32 -1.442695, %v2630_v20  ;;  %v2819_v20 = vld [vmem:[%s4149_s4] sm:$0xff] }
 0x6ca   : > { %3773 = vpow2.f32 %v3387_v34  ;;  %v2820_v34 = vld [vmem:[%s4149_s4 + $0x8] sm:$0xff] }
 0x6d4   : > { %v3774_v27 = vpop.eup %3773 }
 0x6d5   : > { %v2634_v53 = vadd.f32 1.0, %v3774_v27  ;;  %v3598_v27 = vpack.c.bf16 %v2820_v34, %v2819_v20  ;;  %v3394_v34 = vld [vmem:[%s5390_s7] ss:$0 sm:$0xff] }
 0x6d7   : > { %3775 = vrcp.f32 %v2634_v53  ;;  %v2821_v53 = vld [vmem:[%s4149_s4 + $0x10] sm:$0xff] }
 0x6e1   : > { %v3776_v47 = vpop.eup %3775 }
 0x6e2   : > { %v2643_v32 = vmul.f32 %v3776_v47, %v2641_v36  ;;  %v2822_v47 = vld [vmem:[%s4149_s4 + $0x18] sm:$0xff] }
 0x6e3   : > { %v3601_v36 = vpack.c.bf16 %v2822_v47, %v2821_v53 }
 0x6e4   : > { %2652 = vrot.lane.b32.xlu1 %v2643_v32, %s3887_s14  ;;  %v2646_v7 = vrot.slane %v2643_v32, 2  ;;  %v2645_v13 = vrot.slane %v2643_v32, 1  ;;  %v2647_v30 = vrot.slane %v2643_v32, 3  ;;  %v2648_v50 = vrot.slane %v2643_v32, 4 }
 0x6e5   : > { %v2649_v0 = vrot.slane %v2643_v32, 5  ;;  %v2650_v49 = vrot.slane %v2643_v32, 6  ;;  %v2651_v45 = vrot.slane %v2643_v32, 7  ;;  %v2904_v32 = vld [vmem:[%s4169_s5] sm:$0xff] }
 0x6e6   : > { %2656 = vrot.lane.b32.xlu0 %v2646_v7, %s3887_s14  ;;  %v2905_v7 = vld [vmem:[%s4169_s5 + $0x8] sm:$0xff] }
 0x6e8   : > { %2654 = vrot.lane.b32.xlu1 %v2645_v13, %s3887_s14  ;;  %v2906_v13 = vld [vmem:[%s4169_s5 + $0x10] sm:$0xff] }
 0x6ea   : > { %2658 = vrot.lane.b32.xlu0 %v2647_v30, %s3887_s14  ;;  %v3604_v30 = vpack.c.bf16 %v2905_v7, %v2904_v32 }
 0x6ec   : > { %2660 = vrot.lane.b32.xlu1 %v2648_v50, %s3887_s14  ;;  %v2907_v50 = vld [vmem:[%s4169_s5 + $0x18] sm:$0xff]  ;;  %3605 = vmatpush3.bf16.msra.mxu1 %v3604_v30 }
 0x6ed   : > { %v3607_v55 = vpack.c.bf16 %v2907_v50, %v2906_v13  ;;  %3606 = vmatprep.subr.bf16.mxu1 %v5372_v42 }
 0x6ee   : > { %2662 = vrot.lane.b32.xlu0 %v2649_v0, %s3887_s14  ;;  %v2911_v0 = vld [vmem:[%s4169_s5 + $0x38] sm:$0xff] }
 0x6ef   : > { %v3613_v11 = vpack.c.bf16 %v2911_v0, %v2910_v54 }
 0x6f0   : > { %2664 = vrot.lane.b32.xlu1 %v2650_v49, %s3887_s14  ;;  %3608 = vmatpush3.bf16.msra.mxu1 %v3607_v55  ;;  %v2912_v49 = vld [vmem:[%s4169_s5 + $0x40] sm:$0xff] }
 0x6f1   : > { %3609 = vmatprep.subr.bf16.mxu1 %v5372_v42 }
 0x6f2   : > { %2666 = vrot.lane.b32.xlu0 %v2651_v45, %s3887_s14  ;;  %v2913_v45 = vld [vmem:[%s4169_s5 + $0x48] sm:$0xff] }
 0x6f4   : > { %3611 = vmatpush3.bf16.msra.mxu1 %v3610_v12 }
 0x6f5   : > { %3612 = vmatprep.subr.bf16.mxu1 %v5372_v42 }
 0x6f8   : > { %3614 = vmatpush3.bf16.msra.mxu1 %v3613_v11 }
 0x6f9   : > { %3615 = vmatprep.subr.bf16.mxu1 %v5372_v42 }
 0x756   : > { %v2653_v43 = vpop.permute.xlu1 %2652 }
 0x757   : > { %v2676_v16 = vadd.f32 %v2653_v43, %v5045_v33  ;;  %v3616_v43 = vpack.c.bf16 %v2913_v45, %v2912_v49 }
 0x758   : > { %v2657_v6 = vpop.permute.xlu0 %2656 }
 0x759   : > { %v2678_v57 = vadd.f32 %v2657_v6, %v5047_v38  ;;  %v2914_v6 = vld [vmem:[%s4169_s5 + $0x50] sm:$0xff]  ;;  %3617 = vmatpush3.bf16.msra.mxu1 %v3616_v43 }
 0x75a   : > { %v2655_v41 = vpop.permute.xlu1 %2654  ;;  %3618 = vmatprep.subr.bf16.mxu1 %v5372_v42 }
 0x75b   : > { %v2677_v29 = vadd.f32 %v2655_v41, %v5043_v4  ;;  %v2700_v63 = vrot.slane %v2678_v57, 6  ;;  %v2915_v57 = vld [vmem:[%s4169_s5 + $0x58] sm:$0xff] }
 0x75c   : > { %v2659_v58 = vpop.permute.xlu0 %2658  ;;  %v3619_v41 = vpack.c.bf16 %v2915_v57, %v2914_v6 }
 0x75d   : > { %v2698_v39 = vrot.slane %v2677_v29, 7  ;;  %v2679_v35 = vadd.f32 %v2659_v58, %v5056_v8  ;;  %v2916_v29 = vld [vmem:[%s4169_s5 + $0x60] sm:$0xff]  ;;  %v2917_v58 = vld [vmem:[%s4169_s5 + $0x68] sm:$0xff] }
 0x75e   : > { %v2661_v14 = vpop.permute.xlu1 %2660  ;;  %3620 = vmatpush3.bf16.msra.mxu1 %v3619_v41 }
 0x75f   : > { %v2699_v26 = vsel %vm2538_vm5, %v2698_v39, %v2676_v16  ;;  %v2702_v21 = vrot.slane %v2679_v35, 5  ;;  %v2680_v9 = vadd.f32 %v2661_v14, %v5054_v24  ;;  %v3622_v16 = vpack.c.bf16 %v2917_v58, %v2916_v29  ;;  %3621 = vmatprep.subr.bf16.mxu1 %v5372_v42  ;;  %v5384_v14 = vld [vmem:[#allocation27_spill] sm:$0xff] }
 0x760   : > { %v2701_v28 = vsel %vm2540_vm7, %v2700_v63, %v2699_v26  ;;  %v2663_v10 = vpop.permute.xlu0 %2662  ;;  %v5385_v26 = vld [vmem:[#allocation25_spill] sm:$0xff] }
 0x761   : > { %v2703_v38 = vsel %vm2542_vm8, %v2702_v21, %v2701_v28  ;;  %v2704_v37 = vrot.slane %v2680_v9, 4  ;;  %v2681_v4 = vadd.f32 %v2663_v10, %v5064_v3  ;;  %v2812_v21 = vrot.slane %v5385_v26, %v5384_v14  ;;  %v5386_v28 = vld [vmem:[#allocation26_spill] sm:$0xff] }
 0x762   : > { %v2665_v33 = vpop.permute.xlu1 %2664  ;;  %3623 = vmatpush3.bf16.msra.mxu1 %v3622_v16  ;;  %v2817_v10 = vrot.slane %v5386_v28, %v5384_v14 }
 0x763   : > { %v2705_v31 = vsel %vm2544_vm9, %v2704_v37, %v2703_v38  ;;  %v2706_v8 = vrot.slane %v2681_v4, 3  ;;  %v2682_v40 = vadd.f32 %v2665_v33, %v5060_v23  ;;  %v2685_v23 = vld [vmem:[%s2684_s11] sm:$0xff]  ;;  %3624 = vmatprep.subr.bf16.mxu1 %v5372_v42  ;;  %v2919_v33 = vld [vmem:[%s4169_s5 + $0x78] sm:$0xff] }
 0x764   : > { %v2667_v61 = vpop.permute.xlu0 %2666 }
 0x765   : > { %v2707_v62 = vsel %vm2546_vm10, %v2706_v8, %v2705_v31  ;;  %v2708_v24 = vrot.slane %v2682_v40, 2  ;;  %v2683_v51 = vadd.f32 %v2667_v61, %v5066_v2  ;;  %v3389_v2 = vld [vmem:[%s5383_s18] ss:$0 sm:$0xff] }
 0x766   : > { %v3390_v8 = vld [vmem:[%s952_s22] ss:$0 sm:$0xff] }
 0x767   : > { %v2709_v22 = vsel %vm2548_vm11, %v2708_v24, %v2707_v62  ;;  %v2710_v5 = vrot.slane %v2683_v51, 1 }
 0x769   : > { %v2711_v19 = vsel %vm2550_vm12, %v2710_v5, %v2709_v22  ;;  %v3392_v22 = vld [vmem:[%s960_s13] ss:$0 sm:$0xff]  ;;  %s3031_s13 = scalar_select %p3001_p6, 1, 0 }
 0x76a   : > { %2712 = vrot.lane.b32.xlu1 %v2711_v19, %s3889_s29 }
 0x7dc   : > { %v2713_v3 = vpop.permute.xlu1 %2712 }
 0x7dd   : > { %3523 = vmatmul.mubr.msk.f32.vlgmr.msra.gmra.mrb[4].mxu0 %vm1131_vm4, %v2713_v3 }
 0x7de   : > { %3533 = vmatprep.mubr.msk.f32.mxu0 %vm3878_vm3, %v5370_v44  ;;  %3599 = vmatpush3.bf16.msra.mxu0 %v3598_v27 }
 0x7df   : > { %3600 = vmatprep.subr.bf16.mxu0 %v5372_v42  ;;  %v2918_v42 = vld [vmem:[%s4169_s5 + $0x70] sm:$0xff]  ;;  %s2999_s5 = scalar_lea.vmem [#allocation3], %s5357_s28  ;;  %s5389_s28 = sld [smem:[#allocation50_spill]] }
 0x7e0   : > { %v3625_v31 = vpack.c.bf16 %v2919_v33, %v2918_v42 }
 0x7e2   : > { %3602 = vmatpush3.bf16.msra.mxu0 %v3601_v36  ;;  %3626 = vmatpush3.bf16.msra.mxu1 %v3625_v31 }
 0x8b0   : > { %v2782_v18 = vpop.f32.mrb[4].mxu0 }
 0x8b1   : > { %v2786_v60 = vadd.f32 %v2782_v18, %v2685_v23  ;;  %v3524_v59 = vpop.f32.mrb[5].mxu0 }
 0x8b3   : > { %v5124_v52 = vadd.f32 %v3389_v2, %v2786_v60 }
 0x8b5   : > { %v2795_v25 = vsel %vm1131_vm4, %v5124_v52, 0.0 }
 0x8b6   : > { %2796 = vadd.xlane.f32.xlu0 %v2795_v25 }
 0x943   : > { %v2797_v44 = vpop.xlane.xlu0 %2796 }
 0x944   : > { %v2799_v1 = vmul.f32 0.03125, %v2797_v44 }
 0x946   : > { %v2800_v17 = vsub.f32 %v5124_v52, %v2799_v1 }
 0x948   : > { %v2801_v48 = vmul.f32 %v2800_v17, %v2800_v17 }
 0x94a   : > { %v2802_v46 = vsel %vm1131_vm4, %v2801_v48, 0.0  ;;  %v3393_v48 = vld [vmem:[%s5389_s28] ss:$0 sm:$0xff] }
 0x94b   : > { %2803 = vadd.xlane.f32.xlu1 %v2802_v46  ;;  %v3032_v46 = vstv %s3031_s13 }
 0x94c   : > { %vm3033_vm3 = vcmp.eq.s32.totalorder %v3032_v46, 1 }
 0x9d8   : > { %v2804_v39 = vpop.xlane.xlu1 %2803 }
 0x9d9   : > { %v2805_v35 = vmul.f32 0.03125, %v2804_v39 }
 0x9db   : > { %v2806_v63 = vadd.f32 1e-05, %v2805_v35 }
 0x9dd   : > { %3777 = vrsqrt.f32 %v2806_v63 }
 0x9e7   : > { %v3778_v9 = vpop.eup %3777 }
 0x9e8   : > { %v2808_v38 = vmul.f32 %v3778_v9, %v2800_v17 }
 0x9ea   : > { %v2813_v37 = vmul.f32 %v2812_v21, %v2808_v38 }
 0x9ec   : > { %v2818_v4 = vadd.f32 %v2817_v10, %v2813_v37 }
 0x9ee   : > { %3534 = vmatmul.mubr.msk.f32.vlgmr.msra.gmra.mrb[6].mxu0 %vm1131_vm4, %v2818_v4 }
 0xac1   : > { %v2899_v40 = vpop.f32.mrb[6].mxu0 }
 0xac2   : > { %v2900_v61 = vadd.f32 %v3390_v8, %v2899_v40  ;;  %v3535_v62 = vpop.f32.mrb[7].mxu0 }
 0xac4   : > { %v2903_v24 = vmax.f32 %v2900_v61, 0.0 }
 0xac6   : > { %3569 = vmatmul.mubr.f32.vlgmr.msra.gmra.mrb[16].mxu1 %v2903_v24 }
 0xb99   : > { %v2986_v51 = vpop.f32.mrb[16].mxu1 }
 0xb9a   : > { %v2990_v5 = vadd.f32 %v2986_v51, %v5124_v52  ;;  %v3570_v19 = vpop.f32.mrb[17].mxu1 }
 0xb9c   : > { %v2998_v3 = vadd.f32 %v3392_v22, %v2990_v5 }
 0xb9e   : > { %3000 = vst.msk [vmem:[%s2999_s5] sm:$0xff] %vm1131_vm4, %v2998_v3  ;;  %v3004_v23 = vsel %vm1131_vm4, %v2998_v3, 0.0 }
 0xb9f   : > { %3005 = vadd.xlane.f32.xlu0 %v3004_v23 }
 0xba5   : > { %v3040_v36 = vld [vmem:[#allocation3] sm:$0xff] (!%p3395_p7)  ;;  %v3041_v32 = vld [vmem:[#allocation3 + $0x8] sm:$0xff] (!%p3395_p7) }
 0xba6   : > { %3042 = vst.msk [vmem:[#allocation2] sm:$0xff] (!%p3395_p7), %vm1131_vm4, %v3040_v36  ;;  %3043 = vst.msk [vmem:[#allocation2 + $0x8] sm:$0xff] (!%p3395_p7), %vm1131_vm4, %v3041_v32 }
 0xc2c   : > { %v3006_v18 = vpop.xlane.xlu0 %3005 }
 0xc2d   : > { %v3007_v2 = vmul.f32 0.03125, %v3006_v18 }
 0xc2f   : > { %v3008_v60 = vsub.f32 %v2998_v3, %v3007_v2 }
 0xc31   : > { %v3009_v59 = vmul.f32 %v3008_v60, %v3008_v60 }
 0xc33   : > { %v3010_v25 = vsel %vm1131_vm4, %v3009_v59, 0.0 }
 0xc34   : > { %3011 = vadd.xlane.f32.xlu0 %v3010_v25 }
 0xcc1   : > { %v3012_v44 = vpop.xlane.xlu0 %3011 }
 0xcc2   : > { %v3013_v1 = vmul.f32 0.03125, %v3012_v44 }
 0xcc4   : > { %v3014_v52 = vadd.f32 1e-05, %v3013_v1 }
 0xcc6   : > { %3779 = vrsqrt.f32 %v3014_v52 }
 0xcd0   : > { %v3780_v17 = vpop.eup %3779 }
 0xcd1   : > { %v3016_v20 = vmul.f32 %v3780_v17, %v3008_v60 }
 0xcd2   : > { %3039 = sbr.rel (%p3395_p7) target bundleno = 3289 (0xcd9), region = 116 }
 0xcd3   : > { %v3023_v27 = vmul.f32 %v3393_v48, %v3016_v20 }
 0xcd5   : > { %v3030_v53 = vadd.f32 %v3394_v34, %v3023_v27 }
 0xcd7   : > { %v3034_v47 = vsel %vm3033_vm3, %v3030_v53, %v2998_v3 }
 0xcd8   : > { %3035 = vst.msk [vmem:[%s885_s10] sm:$0xff] %vm1131_vm4, %v3034_v47 }
 0xcd9 PF: > { %s5391_s3 = sld [smem:[#allocation10_spill]]  ;;  %s3397_s21 = sshll.u32 %s3859_s27, 7 }
 0xcda   : > { %s5393_s11 = sld [smem:[#allocation52_spill]]  ;;  %s3058_s16 = sshll.u32 %s885_s10, 4  ;;  %s3059_s16 = int_to_ptr.vmem [resolvable:$true] %s3058_s16 }
 0xcdb   : > { %s3781_s30 = scalar_lea.vmem %s3059_s16, 128  ;;  %s3890_s20 = smov [#allocation6]  }
 0xcdc   : > { %p3782_p9 = scmp.ne.s32.totalorder %s3059_s16, %s3781_s30  ;;  %s3785_s26 = sshll.u32 %s3890_s20, 4  ;;  %s3786_s26 = int_to_ptr.vmem [resolvable:$false] %s3785_s26 }
 0xcdd   : > { %s3787_s14 = scalar_lea.vmem %s3786_s26, 256  ;;  %p3788_p12 = scmp.lt.s32.totalorder %s3059_s16, %s3786_s26 }
 0xcde   : > { %p3783_p10 = pnand %p3782_p9, %p4053_p3  ;;  %p3789_p13 = scmp.lt.s32.totalorder %s3787_s14, %s3781_s30 }
 0xcdf   : > { %s5394_s18 = sand.u32 1, %s5391_s3  }
 0xce0   : > { %s5195_s0 = scalar_lea.hbm %s5393_s11, %s3397_s21  ;;  %s3045_s4 = scalar_lea.sflag [#allocation7], %s5394_s18 }
 0xce1   : > { %p3784_p11 = pneg %p3783_p10  ;;  %p3790_p0 = por %p3789_p13, %p3788_p12 }
 0xce3   : > { %p3791_p1 = pnand %p3790_p0, %p3784_p11 }
 0xce5   : > { %3794 = shalt.err (!%p3791_p1)
}
 0xce6   : > { %s3795_s27 = scalar_lea.hbm %s5195_s0, 128  ;;  %s3799_s2 = scalar_lea.hbm %s5393_s11, 256 }
 0xce7   : > { %p3796_p2 = scmp.ne.s32.totalorder %s5195_s0, %s3795_s27  ;;  %p3800_p6 = scmp.lt.u32.totalorder %s5195_s0, %s5393_s11 }
 0xce8   : > { %p3801_p7 = scmp.lt.u32.totalorder %s3799_s2, %s3795_s27  ;;  %p3803_p10 = scmp.lt.u32.totalorder %s3795_s27, %s5195_s0 }
 0xce9   : > { %p3797_p4 = pnand %p3796_p2, %p4053_p3 }
 0xcea   : > { %p3802_p9 = por %p3801_p7, %p3800_p6 }
 0xceb   : > { %p3798_p5 = pneg %p3797_p4 }
 0xcec   : > { %p3804_p11 = por %p3803_p10, %p3802_p9 }
 0xcee   : > { %p3805_p12 = pnand %p3804_p11, %p3798_p5 }
 0xcf0   : > { %3808 = shalt.err (!%p3805_p12)
}
 0xcf1   : > { %3627 = dma.vmem_to_hbm [thread:$0]  (%p4053_p3), %s3059_s16, 128, %s5195_s0, %s3045_s4  }
 0xcf2 PF: > { %s5395_s19 = sld [smem:[#allocation14_spill]]  ;;  %s5396_s22 = sld [smem:[#allocation9_spill]] }
 0xcf8   : > { %p3633_p13 = scmp.ge.s32.totalorder %s5395_s19, 2  ;;  %s3070_s24 = sand.u32 1, %s5396_s22  }
 0xcf9   : > { %s3071_s29 = scalar_lea.sflag [#allocation7], %s3070_s24 }
 0xcfa   : > { %p3630_p0 = pnand %p3633_p13, %p4064_p8 }
 0xcfc   : > { %3842 = dma.done.wait (!%p3630_p0), %s3071_s29, 128  }
 0xcfd   : > { %3844 = vsyncadd (!%p3630_p0), %s3071_s29, 4294967168  ;;  %s34_s0 = sadd.s32 1, %s5395_s19   ;;  %s5398_s2 = sld [smem:[#allocation10_spill]] }
 0xcfe   : > { %p31_p1 = scmp.ge.s32.totalorder %s34_s0, 8   ;;  %s5399_s25 = sld [smem:[#allocation11_spill]] }
 0xcff   : > { %s5400_s26 = sld [smem:[#allocation18_spill]]  ;;  %s5401_s27 = sld [smem:[#allocation12_spill]] }
 0xd00   : > { %s5402_s3 = sld [smem:[#allocation13_spill]]  ;;  %s5403_s28 = sld [smem:[#allocation15_spill]] }
 0xd01   : > { %s5404_s29 = sld [smem:[#allocation17_spill]]  ;;  %33 = sbr.rel (!%p31_p1) target bundleno = 24 (0x18), region = 205 }
 0xd08   :  { %3076 = vsyncpa [#allocation7], 1 }
 0xd09   :  { %3078 = vsyncpa [#allocation7 + $0x1], 1 }

</bundles_post_ra>
